<compile_context>
chip_gen: v5e
topology: v5e:2x2
jax: 0.10.0
libtpu: 0.0.40
codegen_flags: <defaults>
</compile_context>

<pallas_src>
import jax
import jax.numpy as jnp
from jax import lax
from jax.experimental import pallas as pl
from jax.experimental.pallas import tpu as pltpu

FEAT_C = 1280        # MobileNetV2 feature channels
HID = 8              # fc1 output features
NUM_CLASSES = 3
BATCH_TILE = 64      # max samples per grid step. f32 feature block = ~16 MiB,
                     # x2 pipeline buffers = ~32 MiB (+ ~2-4 MiB folded weight)
                     # -> fits the 48 MiB limit below on every generation
                     # (v7x 64 MiB physical VMEM is the binding constraint).
VMEM_LIMIT_BYTES = 48 * 1024 * 1024


def head_kernel(feats_ref, w1p_ref, b1_ref, w2_ref, b2_ref, o_ref):
    # feats_ref: (TB, C*HW)  native dtype (f32 or bf16), lane-dense
    # w1p_ref  : (HID, C*HW) same dtype; fc1 weight with the avg-pool folded in
    # b1_ref   : (1, HID) f32   w2_ref: (HID, NC) f32   b2_ref: (1, NC) f32

    # Global-avg-pool + flatten + fc1, all as one MXU matmul (f32 accumulate):
    #   pooled @ w1 == feats_flat @ (repeat(w1, HW, axis=0) / HW)
    # Dropout(p=0.3) is identity at inference (PyTorch eval semantics).
    h = lax.dot_general(
        feats_ref[...], w1p_ref[...],
        dimension_numbers=(((1,), (1,)), ((), ())),
        preferred_element_type=jnp.float32,
    ) + b1_ref[...]                                            # (TB, HID) f32
    h = jnp.maximum(h, 0.0)                                    # ReLU

    # fc2 + softmax over classes (dim=1). 8->3 is nowhere near the bottleneck.
    logits = jnp.dot(h, w2_ref[...],
                     preferred_element_type=jnp.float32) + b2_ref[...]  # (TB, NC)
    m = jnp.max(logits, axis=-1, keepdims=True)
    e = jnp.exp(logits - m)
    probs = e / jnp.sum(e, axis=-1, keepdims=True)             # exact division
    o_ref[...] = probs.astype(o_ref.dtype)


def _round_up(x, m):
    return ((x + m - 1) // m) * m


def _pick_batch_tile(B):
    if B <= 8:
        return B  # single tile (block dim == full array dim satisfies layout rule)
    # >= 2 sublane-aligned tiles so v7x's 2 TensorCores both get work,
    # capped at BATCH_TILE to stay inside the VMEM budget.
    tb = min(BATCH_TILE, _round_up(pl.cdiv(B, 2), 8))
    return min(tb, B)


def custom_model_head(feats_nchw, w1, b1, w2, b2):
    """feats_nchw: [B, 1280, H, W] MobileNetV2 feature maps (NCHW, f32 or bf16)."""
    B, C, H, W = feats_nchw.shape
    assert C == FEAT_C
    HW = H * W
    K = C * HW  # 62720 for 7x7 maps: an exact multiple of 128 (lane-dense)

    # NCHW -> (B, C*HW): contiguous, i.e. a FREE reshape (no transpose, no extra
    # HBM round trip).  No dtype cast here either: a wrapper-side f32->bf16 cast
    # would itself cost a full read+write of the dominant tensor.
    feats = feats_nchw.reshape(B, K)

    # Fold the average pool into fc1.  Stored transposed, (HID, K), so the
    # resident VMEM copy is sublane/lane aligned (~2 MiB f32) instead of a
    # (K, 8) layout that would lane-pad 16x.  Matched to the feature dtype so
    # the MXU consumes both operands directly.  (In a real pipeline this is a
    # one-time precompute, not per-call.)
    w1p = (jnp.repeat(w1.T, HW, axis=1) / jnp.float32(HW)).astype(feats.dtype)

    TB = _pick_batch_tile(B)
    grid = pl.cdiv(B, TB)  # non-divisible tail is fine: OOB rows are masked on store

    out = pl.pallas_call(
        head_kernel,
        out_shape=jax.ShapeDtypeStruct((B, NUM_CLASSES), jnp.float32),
        grid=(grid,),
        in_specs=[
            # Feature block: pipelined / double-buffered across the batch grid.
            pl.BlockSpec((TB, K), lambda i: (i, 0)),
            # Small resident weights/biases: same block every step (DMA'd once).
            pl.BlockSpec((HID, K), lambda i: (0, 0)),
            pl.BlockSpec((1, HID), lambda i: (0, 0)),
            pl.BlockSpec((HID, NUM_CLASSES), lambda i: (0, 0)),
            pl.BlockSpec((1, NUM_CLASSES), lambda i: (0, 0)),
        ],
        out_specs=pl.BlockSpec((TB, NUM_CLASSES), lambda i: (i, 0)),
        compiler_params=pltpu.CompilerParams(
            # Batch axis is fully independent -> v7x's 2 TensorCores split it.
            dimension_semantics=("parallel",),
            # Sized for the worst case (TB=64 f32 features, double-buffered);
            # fits v7x's 64 MiB physical VMEM and lifts v5e's 16 MiB default.
            vmem_limit_bytes=VMEM_LIMIT_BYTES,
        ),
    )(feats, w1p, b1, w2, b2)
    return out


def reference_head(feats_nchw, w1, b1, w2, b2):
    """Pure-JAX f32 reference of the same head (correctness check)."""
    B, C, H, W = feats_nchw.shape
    pooled = jnp.mean(feats_nchw.reshape(B, C, H * W), axis=-1)
    h = jnp.maximum(pooled @ w1 + b1, 0.0)
    logits = h @ w2 + b2
    return jax.nn.softmax(logits, axis=1)


def init_params(key):
    k1, k2 = jax.random.split(key)
    # Deterministic synthetic weights (shapes of nn.Linear(1280, 8), nn.Linear(8, 3)).
    w1 = jax.random.normal(k1, (FEAT_C, HID), jnp.float32) * 0.02
    b1 = jnp.zeros((1, HID), jnp.float32)
    w2 = jax.random.normal(k2, (HID, NUM_CLASSES), jnp.float32) * 0.1
    b2 = jnp.zeros((1, NUM_CLASSES), jnp.float32)
    return w1, b1, w2, b2


if __name__ == "__main__":
    key = jax.random.PRNGKey(0)
    kx, kp = jax.random.split(key)

    # Small, shape-consistent example: MobileNetV2 feature maps for batch=2
    # (what a 224x224 image produces: [B, 1280, 7, 7]).
    feats_nchw = jax.random.normal(kx, (2, FEAT_C, 7, 7), jnp.float32)
    w1, b1, w2, b2 = init_params(kp)

    out = custom_model_head(feats_nchw, w1, b1, w2, b2)
    out = jax.block_until_ready(out)

    ref = reference_head(feats_nchw, w1, b1, w2, b2)

    # Sanity: shape, softmax rows sum to 1, agreement with the f32 reference
    # (the folded-pool matmul only changes f32 accumulation order).
    assert out.shape == (2, NUM_CLASSES)
    assert bool(jnp.all(jnp.abs(jnp.sum(out, axis=1) - 1.0) < 1e-5))
    assert bool(jnp.all(jnp.abs(out - ref) < 1e-3))
    print("KERNEL_OK")
</pallas_src>

<mosaic_0001>
module attributes {stable_mosaic.version = 11 : i64} {
  func.func @head_kernel(%arg0: i32, %arg1: memref<2x62720xf32, #tpu.memory_space<vmem>>, %arg2: memref<8x62720xf32, #tpu.memory_space<vmem>>, %arg3: memref<1x8xf32, #tpu.memory_space<vmem>>, %arg4: memref<8x3xf32, #tpu.memory_space<vmem>>, %arg5: memref<1x3xf32, #tpu.memory_space<vmem>>, %arg6: memref<2x3xf32, #tpu.memory_space<vmem>>) attributes {dimension_semantics = [#tpu.dimension_semantics<parallel>], iteration_bounds = array<i64: 1>, scalar_prefetch = 0 : i64, scratch_operands = 0 : i64, tpu.core_type = #tpu.core_type<tc>, window_params = [{transform_indices = @transform_0, window_bounds = array<i64: 2, 62720>}, {pipeline_mode = #tpu.pipeline_mode<synchronous>, transform_indices = @transform_1, window_bounds = array<i64: 8, 62720>}, {pipeline_mode = #tpu.pipeline_mode<synchronous>, transform_indices = @transform_2, window_bounds = array<i64: 1, 8>}, {pipeline_mode = #tpu.pipeline_mode<synchronous>, transform_indices = @transform_3, window_bounds = array<i64: 8, 3>}, {pipeline_mode = #tpu.pipeline_mode<synchronous>, transform_indices = @transform_4, window_bounds = array<i64: 1, 3>}, {transform_indices = @transform_5, window_bounds = array<i64: 2, 3>}]} {
    %c0 = arith.constant 0 : index
    %c0_0 = arith.constant 0 : index
    %0 = vector.load %arg1[%c0, %c0_0] : memref<2x62720xf32, #tpu.memory_space<vmem>>, vector<2x62720xf32>
    %c0_1 = arith.constant 0 : index
    %c0_2 = arith.constant 0 : index
    %1 = vector.load %arg2[%c0_1, %c0_2] : memref<8x62720xf32, #tpu.memory_space<vmem>>, vector<8x62720xf32>
    %cst = arith.constant dense<0.000000e+00> : vector<2x8xf32>
    %2 = tpu.matmul %0, %1, %cst {dimension_numbers = #tpu.dot_dimension_numbers<[1], [1], [0], [0], [0, 0, 1, 0], [], []>} : vector<2x62720xf32>, vector<8x62720xf32>, vector<2x8xf32> -> vector<2x8xf32>
    %c0_3 = arith.constant 0 : index
    %c0_4 = arith.constant 0 : index
    %3 = vector.load %arg3[%c0_3, %c0_4] : memref<1x8xf32, #tpu.memory_space<vmem>>, vector<1x8xf32>
    %4 = vector.broadcast %3 : vector<1x8xf32> to vector<2x8xf32>
    %5 = arith.addf %2, %4 : vector<2x8xf32>
    %cst_5 = arith.constant 0.000000e+00 : f32
    %6 = vector.broadcast %cst_5 : f32 to vector<2x8xf32>
    %7 = arith.maximumf %5, %6 : vector<2x8xf32>
    %c0_6 = arith.constant 0 : index
    %c0_7 = arith.constant 0 : index
    %8 = vector.load %arg4[%c0_6, %c0_7] : memref<8x3xf32, #tpu.memory_space<vmem>>, vector<8x3xf32>
    %cst_8 = arith.constant dense<0.000000e+00> : vector<2x3xf32>
    %9 = tpu.matmul %7, %8, %cst_8 {dimension_numbers = #tpu.dot_dimension_numbers<[1], [0], [0], [1], [0, 0, 1, 1], [], []>} : vector<2x8xf32>, vector<8x3xf32>, vector<2x3xf32> -> vector<2x3xf32>
    %c0_9 = arith.constant 0 : index
    %c0_10 = arith.constant 0 : index
    %10 = vector.load %arg5[%c0_9, %c0_10] : memref<1x3xf32, #tpu.memory_space<vmem>>, vector<1x3xf32>
    %11 = vector.broadcast %10 : vector<1x3xf32> to vector<2x3xf32>
    %12 = arith.addf %9, %11 : vector<2x3xf32>
    %cst_11 = arith.constant dense<0xFF800000> : vector<2xf32>
    %13 = vector.multi_reduction <maximumf>, %12, %cst_11 [1] : vector<2x3xf32> to vector<2xf32>
    %14 = vector.shape_cast %13 : vector<2xf32> to vector<2x1xf32>
    %15 = vector.broadcast %14 : vector<2x1xf32> to vector<2x3xf32>
    %16 = arith.subf %12, %15 : vector<2x3xf32>
    %17 = math.exp %16 : vector<2x3xf32>
    %cst_12 = arith.constant dense<0.000000e+00> : vector<2xf32>
    %18 = vector.multi_reduction <add>, %17, %cst_12 [1] : vector<2x3xf32> to vector<2xf32>
    %19 = vector.shape_cast %18 : vector<2xf32> to vector<2x1xf32>
    %20 = vector.broadcast %19 : vector<2x1xf32> to vector<2x3xf32>
    %21 = arith.divf %17, %20 : vector<2x3xf32>
    %c0_13 = arith.constant 0 : index
    %c0_14 = arith.constant 0 : index
    %22 = vector.load %arg6[%c0_13, %c0_14] : memref<2x3xf32, #tpu.memory_space<vmem>>, vector<2x3xf32>
    tpu.vector_store %arg6[%c0_13, %c0_14], %21 {strides = array<i32>} : memref<2x3xf32, #tpu.memory_space<vmem>>, vector<2x3xf32>,
    return
  }
  func.func @transform_0(%arg0: i32) -> (i32, i32) {
    %c0_i32 = arith.constant 0 : i32
    %c0_i32_0 = arith.constant 0 : i32
    return %arg0, %c0_i32 : i32, i32
  }
  func.func @transform_1(%arg0: i32) -> (i32, i32) {
    %c0_i32 = arith.constant 0 : i32
    %c0_i32_0 = arith.constant 0 : i32
    %c0_i32_1 = arith.constant 0 : i32
    return %c0_i32, %c0_i32_0 : i32, i32
  }
  func.func @transform_2(%arg0: i32) -> (i32, i32) {
    %c0_i32 = arith.constant 0 : i32
    %c0_i32_0 = arith.constant 0 : i32
    %c0_i32_1 = arith.constant 0 : i32
    return %c0_i32, %c0_i32_0 : i32, i32
  }
  func.func @transform_3(%arg0: i32) -> (i32, i32) {
    %c0_i32 = arith.constant 0 : i32
    %c0_i32_0 = arith.constant 0 : i32
    %c0_i32_1 = arith.constant 0 : i32
    return %c0_i32, %c0_i32_0 : i32, i32
  }
  func.func @transform_4(%arg0: i32) -> (i32, i32) {
    %c0_i32 = arith.constant 0 : i32
    %c0_i32_0 = arith.constant 0 : i32
    %c0_i32_1 = arith.constant 0 : i32
    return %c0_i32, %c0_i32_0 : i32, i32
  }
  func.func @transform_5(%arg0: i32) -> (i32, i32) {
    %c0_i32 = arith.constant 0 : i32
    %c0_i32_0 = arith.constant 0 : i32
    return %arg0, %c0_i32 : i32, i32
  }
}

</mosaic_0001>

<bundles_post_ra>
// kernel: tpu_custom_call.1
= control target key start
LH: loop header
LB: loop body
LE: loop exit
PB: predicated region body
PF: predicated region fallthrough
CT: control target
= control target key end

     0   :  { %10 = vsyncpa [#allocation3], 0  ;;  %s13239_s0 = inlined_call_operand.hbm [shape: f32[2,62720], index: 0, kind: input, shape index: {}]   ;;  %s13240_s1 = inlined_call_operand.hbm [shape: f32[8,62720], index: 1, kind: input, shape index: {}]   ;;  %s13241_s2 = inlined_call_operand.hbm [shape: f32[1,8], index: 2, kind: input, shape index: {}]   ;;  %s13242_s3 = inlined_call_operand.vmem [shape: f32[8,3], index: 3, kind: input, shape index: {}]   ;;  %s13243_s4 = inlined_call_operand.hbm [shape: f32[1,3], index: 4, kind: input, shape index: {}]   ;;  %s13244_s5 = inlined_call_operand.hbm [shape: f32[2,3], index: 5, kind: output, shape index: {}]  }
   0x1   :  { %11 = vsyncpa [#allocation6], 0 }
   0x2   :  { %12 = vsyncpa [#allocation9], 0  ;;  %s30_s20 = sshll.u32 %s13240_s1, 4  ;;  %s31_s20 = int_to_ptr.hbm [resolvable:$true] %s30_s20 }
   0x3   :  { %13 = vsyncpa [#allocation4], 0  ;;  %s11935_s21 = smov [#allocation5]   ;;  %s19_s25 = sshll.u32 %s13239_s0, 4  ;;  %s20_s25 = int_to_ptr.hbm [resolvable:$true] %s19_s25 }
   0x4   :  { %s32_s22 = sshll.u32 %s11935_s21, 4  ;;  %s11936_s26 = smov [#allocation2]   ;;  %s33_s22 = int_to_ptr.vmem [resolvable:$true] %s32_s22 }
   0x5   :  { %35 = dma.hbm_to_vmem [thread:$0]  %s31_s20, 62720, %s33_s22, [#allocation6]  }
   0x6   :  { %s21_s27 = sshll.u32 %s11936_s26, 4  ;;  %s41_s30 = sshll.u32 %s13241_s2, 4  ;;  %s22_s27 = int_to_ptr.vmem [resolvable:$true] %s21_s27  ;;  %s42_s30 = int_to_ptr.hbm [resolvable:$true] %s41_s30 }
   0x7   :  { %24 = dma.hbm_to_vmem [thread:$0]  %s20_s25, 15680, %s22_s27, [#allocation3]  }
   0x8   :  { %s54_s7 = sshll.u32 %s13243_s4, 4  ;;  %s11937_s8 = smov [#allocation7]   ;;  %s55_s7 = int_to_ptr.hbm [resolvable:$true] %s54_s7 }
   0x9   :  { %s43_s9 = sshll.u32 %s11937_s8, 4  ;;  %s11938_s0 = smov [#allocation8]   ;;  %s44_s9 = int_to_ptr.vmem [resolvable:$true] %s43_s9 }
   0xa   :  { %46 = dma.hbm_to_vmem [thread:$0]  %s42_s30, 16, %s44_s9, [#allocation6]  }
   0xb   :  { %s56_s10 = sshll.u32 %s11938_s0, 4  ;;  %s57_s10 = int_to_ptr.vmem [resolvable:$true] %s56_s10 }
   0xc   :  { %59 = dma.hbm_to_vmem [thread:$0]  %s55_s7, 16, %s57_s10, [#allocation9]  }
   0xd   :  { %11927 = dma.done.wait [#allocation3], 15680  }
   0xe   :  { %11928 = vsyncadd [#allocation3], 4294951616 }
   0xf   :  { %11929 = dma.done.wait [#allocation6], 62736  }
  0x10   :  { %11930 = vsyncadd [#allocation6], 4294904560 }
  0x11   :  { %11931 = dma.done.wait [#allocation9], 16  }
  0x12   :  { %11932 = vsyncadd [#allocation9], 4294967280  ;;  %v201_v0 = vld [vmem:[#allocation5 + $0x10] sm:$0xff]  ;;  %v199_v1 = vld [vmem:[#allocation5] sm:$0xff]  ;;  %vm11726_vm0 = vcmask 64512   ;;  %vm11750_vm1 = vcmask 17408  }
  0x13   :  { %v202_v2 = vld [vmem:[#allocation5 + $0x18] sm:$0xff]  ;;  %1975 = vmatpush.xpose.msra.mxu2 %v201_v0  ;;  %1935 = vmatpush.xpose.msra.mxu0 %v199_v1  ;;  %v76_v3 = vld [vmem:[#allocation2] sm:$0xff]  ;;  %v203_v6 = vld [vmem:[#allocation5 + $0x20] sm:$0xff]  ;;  %s11783_s14 = sshll.u32 %s13244_s5, 4  ;;  %s11784_s14 = int_to_ptr.hbm [resolvable:$true] %s11783_s14 }
  0x14   :  { %v205_v4 = vld [vmem:[#allocation5 + $0x30] sm:$0xff]  ;;  %v200_v5 = vld [vmem:[#allocation5 + $0x8] sm:$0xff]  ;;  %1995 = vmatpush.xpose.msra.mxu3 %v202_v2  ;;  %816 = vst [vmem:[#allocation1] ss:$4 sm:$0xff] %v76_v3  ;;  %v206_v7 = vld [vmem:[#allocation5 + $0x38] sm:$0xff] }
  0x15   :  { %v204_v8 = vld [vmem:[#allocation5 + $0x28] sm:$0xff]  ;;  %1955 = vmatpush.xpose.msra.mxu1 %v200_v5  ;;  %v77_v9 = vld [vmem:[#allocation2 + $0x8] sm:$0xff]  ;;  %v207_v11 = vld [vmem:[#allocation5 + $0x40] sm:$0xff] }
  0x16   :  { %818 = vst [vmem:[#allocation1 + $0x20] ss:$4 sm:$0xff] %v77_v9  ;;  %v209_v10 = vld [vmem:[#allocation5 + $0x50] sm:$0xff]  ;;  %v210_v12 = vld [vmem:[#allocation5 + $0x58] sm:$0xff]  ;;  %v208_v13 = vld [vmem:[#allocation5 + $0x48] sm:$0xff] }
  0x17   :  { %2055 = vmatpush.xpose.msrb.mxu2 %v205_v4  ;;  %2015 = vmatpush.xpose.msrb.mxu0 %v203_v6  ;;  %v78_v14 = vld [vmem:[#allocation2 + $0x10] sm:$0xff]  ;;  %v79_v20 = vld [vmem:[#allocation2 + $0x18] sm:$0xff]  ;;  %v213_v24 = vld [vmem:[#allocation5 + $0x70] sm:$0xff] }
  0x18   :  { %2075 = vmatpush.xpose.msrb.mxu3 %v206_v7  ;;  %v211_v25 = vld [vmem:[#allocation5 + $0x60] sm:$0xff]  ;;  %v214_v26 = vld [vmem:[#allocation5 + $0x78] sm:$0xff]  ;;  %v212_v27 = vld [vmem:[#allocation5 + $0x68] sm:$0xff] }
  0x19   :  { %2035 = vmatpush.xpose.msrb.mxu1 %v204_v8  ;;  %v80_v28 = vld [vmem:[#allocation2 + $0x20] sm:$0xff]  ;;  %v81_v29 = vld [vmem:[#allocation2 + $0x28] sm:$0xff]  ;;  %v215_v39 = vld [vmem:[#allocation5 + $0x80] sm:$0xff] }
  0x1a   :  { %v217_v38 = vld [vmem:[#allocation5 + $0x90] sm:$0xff]  ;;  %v218_v40 = vld [vmem:[#allocation5 + $0x98] sm:$0xff]  ;;  %v216_v41 = vld [vmem:[#allocation5 + $0x88] sm:$0xff] }
  0x1b   :  { %v821_v15 = vld.sshfl [vmem:[#allocation1 + $0x10] sm:$0xff pattern:$0x73625140]  ;;  %v819_v16 = vld.sshfl [vmem:[#allocation1] sm:$0xff pattern:$0x73625140] }
  0x1c   :  { %1976 = vmatmul.f32.vlgmr.msra.gmra.mxu2 %v821_v15  ;;  %1936 = vmatmul.f32.vlgmr.msra.gmra.mxu0 %v819_v16  ;;  %v822_v17 = vld.sshfl [vmem:[#allocation1 + $0x18] sm:$0xff pattern:$0x73625140]  ;;  %v820_v18 = vld.sshfl [vmem:[#allocation1 + $0x8] sm:$0xff pattern:$0x73625140] }
  0x1d   :  { %1996 = vmatmul.f32.vlgmr.msra.gmra.mxu3 %v822_v17  ;;  %1956 = vmatmul.f32.vlgmr.msra.gmra.mxu1 %v820_v18  ;;  %v825_v19 = vld.sshfl [vmem:[#allocation1 + $0x30] sm:$0xff pattern:$0x73625140]  ;;  %v823_v21 = vld.sshfl [vmem:[#allocation1 + $0x20] sm:$0xff pattern:$0x73625140] }
  0x1e   :  { %2135 = vmatpush.xpose.msra.mxu2 %v209_v10  ;;  %v826_v22 = vld.sshfl [vmem:[#allocation1 + $0x38] sm:$0xff pattern:$0x73625140]  ;;  %2095 = vmatpush.xpose.msra.mxu0 %v207_v11  ;;  %v824_v23 = vld.sshfl [vmem:[#allocation1 + $0x28] sm:$0xff pattern:$0x73625140] }
  0x1f   :  { %2155 = vmatpush.xpose.msra.mxu3 %v210_v12  ;;  %2115 = vmatpush.xpose.msra.mxu1 %v208_v13  ;;  %827 = vst [vmem:[#allocation1] ss:$4 sm:$0xff] %v78_v14  ;;  %v221_v42 = vld [vmem:[#allocation5 + $0xb0] sm:$0xff]  ;;  %v219_v43 = vld [vmem:[#allocation5 + $0xa0] sm:$0xff]  ;;  %v222_v49 = vld [vmem:[#allocation5 + $0xb8] sm:$0xff] }
  0x20   :  { %828 = vst [vmem:[#allocation1 + $0x20] ss:$4 sm:$0xff] %v79_v20  ;;  %v82_v44 = vld [vmem:[#allocation2 + $0x30] sm:$0xff]  ;;  %v83_v45 = vld [vmem:[#allocation2 + $0x38] sm:$0xff]  ;;  %v225_v56 = vld [vmem:[#allocation5 + $0xd0] sm:$0xff] }
  0x21   :  { %v220_v50 = vld [vmem:[#allocation5 + $0xa8] sm:$0xff]  ;;  %v223_v57 = vld [vmem:[#allocation5 + $0xc0] sm:$0xff]  ;;  %v226_v58 = vld [vmem:[#allocation5 + $0xd8] sm:$0xff] }
  0x22   :  { %v224_v59 = vld [vmem:[#allocation5 + $0xc8] sm:$0xff]  ;;  %v85_v61 = vld [vmem:[#allocation2 + $0x48] sm:$0xff]  ;;  %v227_v7 = vld [vmem:[#allocation5 + $0xe0] sm:$0xff] }
  0x23   :  { %v84_v60 = vld [vmem:[#allocation2 + $0x40] sm:$0xff]  ;;  %v230_v8 = vld [vmem:[#allocation5 + $0xf8] sm:$0xff]  ;;  %v231_v15 = vld [vmem:[#allocation5 + $0x100] sm:$0xff] }
  0x24   :  { %2056 = vmatmul.f32.vlgmr.msrb.gmra.mxu2 %v825_v19  ;;  %2016 = vmatmul.f32.vlgmr.msrb.gmra.mxu0 %v823_v21  ;;  %v229_v6 = vld [vmem:[#allocation5 + $0xf0] sm:$0xff]  ;;  %v228_v9 = vld [vmem:[#allocation5 + $0xe8] sm:$0xff]  ;;  %v86_v10 = vld [vmem:[#allocation2 + $0x50] sm:$0xff] }
  0x25   :  { %2076 = vmatmul.f32.vlgmr.msrb.gmra.mxu3 %v826_v22  ;;  %2036 = vmatmul.f32.vlgmr.msrb.gmra.mxu1 %v824_v23  ;;  %v233_v14 = vld [vmem:[#allocation5 + $0x110] sm:$0xff]  ;;  %v87_v21 = vld [vmem:[#allocation2 + $0x58] sm:$0xff]  ;;  %v234_v22 = vld [vmem:[#allocation5 + $0x118] sm:$0xff] }
  0x26   :  { %2215 = vmatpush.xpose.msrb.mxu2 %v213_v24  ;;  %2175 = vmatpush.xpose.msrb.mxu0 %v211_v25  ;;  %v831_v30 = vld.sshfl [vmem:[#allocation1 + $0x10] sm:$0xff pattern:$0x73625140]  ;;  %v829_v31 = vld.sshfl [vmem:[#allocation1] sm:$0xff pattern:$0x73625140] }
  0x27   :  { %v832_v32 = vld.sshfl [vmem:[#allocation1 + $0x18] sm:$0xff pattern:$0x73625140]  ;;  %2235 = vmatpush.xpose.msrb.mxu3 %v214_v26  ;;  %2195 = vmatpush.xpose.msrb.mxu1 %v212_v27  ;;  %v830_v33 = vld.sshfl [vmem:[#allocation1 + $0x8] sm:$0xff pattern:$0x73625140] }
  0x28   :  { %v835_v34 = vld.sshfl [vmem:[#allocation1 + $0x30] sm:$0xff pattern:$0x73625140]  ;;  %v833_v35 = vld.sshfl [vmem:[#allocation1 + $0x20] sm:$0xff pattern:$0x73625140] }
  0x29   :  { %v836_v36 = vld.sshfl [vmem:[#allocation1 + $0x38] sm:$0xff pattern:$0x73625140]  ;;  %v834_v37 = vld.sshfl [vmem:[#allocation1 + $0x28] sm:$0xff pattern:$0x73625140] }
  0x2a   :  { %837 = vst [vmem:[#allocation1] ss:$4 sm:$0xff] %v80_v28  ;;  %v232_v23 = vld [vmem:[#allocation5 + $0x108] sm:$0xff]  ;;  %v237_v24 = vld [vmem:[#allocation5 + $0x130] sm:$0xff]  ;;  %v235_v25 = vld [vmem:[#allocation5 + $0x120] sm:$0xff] }
  0x2b   :  { %838 = vst [vmem:[#allocation1 + $0x20] ss:$4 sm:$0xff] %v81_v29  ;;  %v238_v26 = vld [vmem:[#allocation5 + $0x138] sm:$0xff]  ;;  %v236_v27 = vld [vmem:[#allocation5 + $0x128] sm:$0xff] }
  0x2c   :  { %2136 = vmatmul.f32.vlgmr.msra.gmra.mxu2 %v831_v30  ;;  %2096 = vmatmul.f32.vlgmr.msra.gmra.mxu0 %v829_v31  ;;  %v88_v28 = vld [vmem:[#allocation2 + $0x60] sm:$0xff] }
  0x2d   :  { %2156 = vmatmul.f32.vlgmr.msra.gmra.mxu3 %v832_v32  ;;  %2116 = vmatmul.f32.vlgmr.msra.gmra.mxu1 %v830_v33  ;;  %v241_v33 = vld [vmem:[#allocation5 + $0x150] sm:$0xff] }
  0x2e   :  { %2295 = vmatpush.xpose.msra.mxu2 %v217_v38  ;;  %2255 = vmatpush.xpose.msra.mxu0 %v215_v39  ;;  %v89_v39 = vld [vmem:[#allocation2 + $0x68] sm:$0xff] }
  0x2f   :  { %2315 = vmatpush.xpose.msra.mxu3 %v218_v40  ;;  %2275 = vmatpush.xpose.msra.mxu1 %v216_v41  ;;  %v242_v40 = vld [vmem:[#allocation5 + $0x158] sm:$0xff]  ;;  %v240_v41 = vld [vmem:[#allocation5 + $0x148] sm:$0xff] }
  0x31   :  { %v841_v46 = vld.sshfl [vmem:[#allocation1 + $0x10] sm:$0xff pattern:$0x73625140]  ;;  %v839_v47 = vld.sshfl [vmem:[#allocation1] sm:$0xff pattern:$0x73625140] }
  0x32   :  { %v842_v48 = vld.sshfl [vmem:[#allocation1 + $0x18] sm:$0xff pattern:$0x73625140]  ;;  %v840_v51 = vld.sshfl [vmem:[#allocation1 + $0x8] sm:$0xff pattern:$0x73625140] }
  0x33   :  { %v845_v52 = vld.sshfl [vmem:[#allocation1 + $0x30] sm:$0xff pattern:$0x73625140]  ;;  %v843_v53 = vld.sshfl [vmem:[#allocation1 + $0x20] sm:$0xff pattern:$0x73625140] }
  0x34   :  { %2216 = vmatmul.f32.vlgmr.msrb.gmra.mxu2 %v835_v34  ;;  %2176 = vmatmul.f32.vlgmr.msrb.gmra.mxu0 %v833_v35  ;;  %v846_v54 = vld.sshfl [vmem:[#allocation1 + $0x38] sm:$0xff pattern:$0x73625140]  ;;  %v844_v55 = vld.sshfl [vmem:[#allocation1 + $0x28] sm:$0xff pattern:$0x73625140] }
  0x35   :  { %2236 = vmatmul.f32.vlgmr.msrb.gmra.mxu3 %v836_v36  ;;  %2196 = vmatmul.f32.vlgmr.msrb.gmra.mxu1 %v834_v37  ;;  %847 = vst [vmem:[#allocation1] ss:$4 sm:$0xff] %v82_v44  ;;  %v239_v37 = vld [vmem:[#allocation5 + $0x140] sm:$0xff] }
  0x36   :  { %2375 = vmatpush.xpose.msrb.mxu2 %v221_v42  ;;  %2335 = vmatpush.xpose.msrb.mxu0 %v219_v43  ;;  %848 = vst [vmem:[#allocation1 + $0x20] ss:$4 sm:$0xff] %v83_v45  ;;  %v245_v42 = vld [vmem:[#allocation5 + $0x170] sm:$0xff] }
  0x37   :  { %2395 = vmatpush.xpose.msrb.mxu3 %v222_v49  ;;  %2355 = vmatpush.xpose.msrb.mxu1 %v220_v50  ;;  %v246_v49 = vld [vmem:[#allocation5 + $0x178] sm:$0xff]  ;;  %v244_v50 = vld [vmem:[#allocation5 + $0x168] sm:$0xff] }
  0x3c   :  { %2296 = vmatmul.f32.vlgmr.msra.gmra.mxu2 %v841_v46  ;;  %2256 = vmatmul.f32.vlgmr.msra.gmra.mxu0 %v839_v47  ;;  %v851_v62 = vld.sshfl [vmem:[#allocation1 + $0x10] sm:$0xff pattern:$0x73625140]  ;;  %v849_v63 = vld.sshfl [vmem:[#allocation1] sm:$0xff pattern:$0x73625140] }
  0x3d   :  { %2316 = vmatmul.f32.vlgmr.msra.gmra.mxu3 %v842_v48  ;;  %2276 = vmatmul.f32.vlgmr.msra.gmra.mxu1 %v840_v51  ;;  %v852_v0 = vld.sshfl [vmem:[#allocation1 + $0x18] sm:$0xff pattern:$0x73625140]  ;;  %v850_v1 = vld.sshfl [vmem:[#allocation1 + $0x8] sm:$0xff pattern:$0x73625140] }
  0x3e   :  { %2455 = vmatpush.xpose.msra.mxu2 %v225_v56  ;;  %2415 = vmatpush.xpose.msra.mxu0 %v223_v57  ;;  %v855_v2 = vld.sshfl [vmem:[#allocation1 + $0x30] sm:$0xff pattern:$0x73625140]  ;;  %v853_v3 = vld.sshfl [vmem:[#allocation1 + $0x20] sm:$0xff pattern:$0x73625140] }
  0x3f   :  { %2475 = vmatpush.xpose.msra.mxu3 %v226_v58  ;;  %2435 = vmatpush.xpose.msra.mxu1 %v224_v59  ;;  %v856_v4 = vld.sshfl [vmem:[#allocation1 + $0x38] sm:$0xff pattern:$0x73625140]  ;;  %v854_v5 = vld.sshfl [vmem:[#allocation1 + $0x28] sm:$0xff pattern:$0x73625140] }
  0x40   :  { %857 = vst [vmem:[#allocation1] ss:$4 sm:$0xff] %v84_v60  ;;  %v243_v46 = vld [vmem:[#allocation5 + $0x160] sm:$0xff]  ;;  %v249_v51 = vld [vmem:[#allocation5 + $0x190] sm:$0xff]  ;;  %v250_v58 = vld [vmem:[#allocation5 + $0x198] sm:$0xff] }
  0x41   :  { %858 = vst [vmem:[#allocation1 + $0x20] ss:$4 sm:$0xff] %v85_v61  ;;  %v90_v48 = vld [vmem:[#allocation2 + $0x70] sm:$0xff]  ;;  %v91_v57 = vld [vmem:[#allocation2 + $0x78] sm:$0xff]  ;;  %v253_v60 = vld [vmem:[#allocation5 + $0x1b0] sm:$0xff] }
  0x42   :  { %v248_v59 = vld [vmem:[#allocation5 + $0x188] sm:$0xff] }
  0x44   :  { %2376 = vmatmul.f32.vlgmr.msrb.gmra.mxu2 %v845_v52  ;;  %2336 = vmatmul.f32.vlgmr.msrb.gmra.mxu0 %v843_v53 }
  0x45   :  { %2396 = vmatmul.f32.vlgmr.msrb.gmra.mxu3 %v846_v54  ;;  %2356 = vmatmul.f32.vlgmr.msrb.gmra.mxu1 %v844_v55  ;;  %v247_v55 = vld [vmem:[#allocation5 + $0x180] sm:$0xff] }
  0x46   :  { %2535 = vmatpush.xpose.msrb.mxu2 %v229_v6  ;;  %2495 = vmatpush.xpose.msrb.mxu0 %v227_v7 }
  0x47   :  { %2555 = vmatpush.xpose.msrb.mxu3 %v230_v8  ;;  %2515 = vmatpush.xpose.msrb.mxu1 %v228_v9  ;;  %v861_v11 = vld.sshfl [vmem:[#allocation1 + $0x10] sm:$0xff pattern:$0x73625140]  ;;  %v859_v12 = vld.sshfl [vmem:[#allocation1] sm:$0xff pattern:$0x73625140] }
  0x48   :  { %v862_v13 = vld.sshfl [vmem:[#allocation1 + $0x18] sm:$0xff pattern:$0x73625140]  ;;  %v860_v16 = vld.sshfl [vmem:[#allocation1 + $0x8] sm:$0xff pattern:$0x73625140] }
  0x49   :  { %v865_v17 = vld.sshfl [vmem:[#allocation1 + $0x30] sm:$0xff pattern:$0x73625140]  ;;  %v863_v18 = vld.sshfl [vmem:[#allocation1 + $0x20] sm:$0xff pattern:$0x73625140] }
  0x4a   :  { %v866_v19 = vld.sshfl [vmem:[#allocation1 + $0x38] sm:$0xff pattern:$0x73625140]  ;;  %v864_v20 = vld.sshfl [vmem:[#allocation1 + $0x28] sm:$0xff pattern:$0x73625140] }
  0x4b   :  { %867 = vst [vmem:[#allocation1] ss:$4 sm:$0xff] %v86_v10  ;;  %v255_v9 = vld [vmem:[#allocation5 + $0x1c0] sm:$0xff] }
  0x4c   :  { %2456 = vmatmul.f32.vlgmr.msra.gmra.mxu2 %v851_v62  ;;  %2416 = vmatmul.f32.vlgmr.msra.gmra.mxu0 %v849_v63  ;;  %868 = vst [vmem:[#allocation1 + $0x20] ss:$4 sm:$0xff] %v87_v21  ;;  %v262_v21 = vld [vmem:[#allocation5 + $0x1f8] sm:$0xff] }
  0x4d   :  { %2476 = vmatmul.f32.vlgmr.msra.gmra.mxu3 %v852_v0  ;;  %2436 = vmatmul.f32.vlgmr.msra.gmra.mxu1 %v850_v1  ;;  %v251_v0 = vld [vmem:[#allocation5 + $0x1a0] sm:$0xff] }
  0x4e   :  { %2615 = vmatpush.xpose.msra.mxu2 %v233_v14  ;;  %2575 = vmatpush.xpose.msra.mxu0 %v231_v15  ;;  %v261_v14 = vld [vmem:[#allocation5 + $0x1f0] sm:$0xff] }
  0x4f   :  { %2635 = vmatpush.xpose.msra.mxu3 %v234_v22  ;;  %2595 = vmatpush.xpose.msra.mxu1 %v232_v23  ;;  %v260_v22 = vld [vmem:[#allocation5 + $0x1e8] sm:$0xff]  ;;  %v265_v23 = vld [vmem:[#allocation5 + $0x210] sm:$0xff] }
  0x52   :  { %v871_v29 = vld.sshfl [vmem:[#allocation1 + $0x10] sm:$0xff pattern:$0x73625140]  ;;  %v869_v30 = vld.sshfl [vmem:[#allocation1] sm:$0xff pattern:$0x73625140] }
  0x53   :  { %v872_v31 = vld.sshfl [vmem:[#allocation1 + $0x18] sm:$0xff pattern:$0x73625140]  ;;  %v870_v32 = vld.sshfl [vmem:[#allocation1 + $0x8] sm:$0xff pattern:$0x73625140] }
  0x54   :  { %2536 = vmatmul.f32.vlgmr.msrb.gmra.mxu2 %v855_v2  ;;  %2496 = vmatmul.f32.vlgmr.msrb.gmra.mxu0 %v853_v3  ;;  %877 = vst [vmem:[#allocation1] ss:$4 sm:$0xff] %v88_v28  ;;  %v875_v34 = vld.sshfl [vmem:[#allocation1 + $0x30] sm:$0xff pattern:$0x73625140]  ;;  %v92_v2 = vld [vmem:[#allocation2 + $0x80] sm:$0xff] }
  0x55   :  { %2556 = vmatmul.f32.vlgmr.msrb.gmra.mxu3 %v856_v4  ;;  %2516 = vmatmul.f32.vlgmr.msrb.gmra.mxu1 %v854_v5  ;;  %v873_v35 = vld.sshfl [vmem:[#allocation1 + $0x20] sm:$0xff pattern:$0x73625140]  ;;  %v876_v36 = vld.sshfl [vmem:[#allocation1 + $0x38] sm:$0xff pattern:$0x73625140] }
  0x56   :  { %2695 = vmatpush.xpose.msrb.mxu2 %v237_v24  ;;  %2655 = vmatpush.xpose.msrb.mxu0 %v235_v25  ;;  %v874_v38 = vld.sshfl [vmem:[#allocation1 + $0x28] sm:$0xff pattern:$0x73625140]  ;;  %v254_v3 = vld [vmem:[#allocation5 + $0x1b8] sm:$0xff] }
  0x57   :  { %2715 = vmatpush.xpose.msrb.mxu3 %v238_v26  ;;  %2675 = vmatpush.xpose.msrb.mxu1 %v236_v27  ;;  %878 = vst [vmem:[#allocation1 + $0x20] ss:$4 sm:$0xff] %v89_v39  ;;  %v252_v4 = vld [vmem:[#allocation5 + $0x1a8] sm:$0xff]  ;;  %v257_v5 = vld [vmem:[#allocation5 + $0x1d0] sm:$0xff]  ;;  %v263_v27 = vld [vmem:[#allocation5 + $0x200] sm:$0xff] }
  0x58   :  { %v270_v39 = vld [vmem:[#allocation5 + $0x238] sm:$0xff] }
  0x5b   :  { %v881_v43 = vld.sshfl [vmem:[#allocation1 + $0x10] sm:$0xff pattern:$0x73625140]  ;;  %v879_v44 = vld.sshfl [vmem:[#allocation1] sm:$0xff pattern:$0x73625140] }
  0x5c   :  { %2616 = vmatmul.f32.vlgmr.msra.gmra.mxu2 %v861_v11  ;;  %2576 = vmatmul.f32.vlgmr.msra.gmra.mxu0 %v859_v12  ;;  %v882_v45 = vld.sshfl [vmem:[#allocation1 + $0x18] sm:$0xff pattern:$0x73625140]  ;;  %v880_v47 = vld.sshfl [vmem:[#allocation1 + $0x8] sm:$0xff pattern:$0x73625140] }
  0x5d   :  { %2636 = vmatmul.f32.vlgmr.msra.gmra.mxu3 %v862_v13  ;;  %2596 = vmatmul.f32.vlgmr.msra.gmra.mxu1 %v860_v16  ;;  %887 = vst [vmem:[#allocation1] ss:$4 sm:$0xff] %v90_v48  ;;  %v93_v11 = vld [vmem:[#allocation2 + $0x88] sm:$0xff]  ;;  %v256_v13 = vld [vmem:[#allocation5 + $0x1c8] sm:$0xff] }
  0x5e   :  { %2775 = vmatpush.xpose.msra.mxu2 %v241_v33  ;;  %2735 = vmatpush.xpose.msra.mxu0 %v239_v37  ;;  %v885_v52 = vld.sshfl [vmem:[#allocation1 + $0x30] sm:$0xff pattern:$0x73625140]  ;;  %v883_v53 = vld.sshfl [vmem:[#allocation1 + $0x20] sm:$0xff pattern:$0x73625140] }
  0x5f   :  { %2795 = vmatpush.xpose.msra.mxu3 %v242_v40  ;;  %2755 = vmatpush.xpose.msra.mxu1 %v240_v41  ;;  %v886_v54 = vld.sshfl [vmem:[#allocation1 + $0x38] sm:$0xff pattern:$0x73625140]  ;;  %v884_v56 = vld.sshfl [vmem:[#allocation1 + $0x28] sm:$0xff pattern:$0x73625140] }
  0x60   :  { %888 = vst [vmem:[#allocation1 + $0x20] ss:$4 sm:$0xff] %v91_v57  ;;  %v258_v12 = vld [vmem:[#allocation5 + $0x1d8] sm:$0xff]  ;;  %v268_v40 = vld [vmem:[#allocation5 + $0x228] sm:$0xff]  ;;  %v11801_v41 = vld [vmem:[#allocation7] ss:$0 sm:$0xff] }
  0x64   :  { %2696 = vmatmul.f32.vlgmr.msrb.gmra.mxu2 %v865_v17  ;;  %2656 = vmatmul.f32.vlgmr.msrb.gmra.mxu0 %v863_v18  ;;  %v891_v61 = vld.sshfl [vmem:[#allocation1 + $0x10] sm:$0xff pattern:$0x73625140]  ;;  %v889_v62 = vld.sshfl [vmem:[#allocation1] sm:$0xff pattern:$0x73625140] }
  0x65   :  { %2716 = vmatmul.f32.vlgmr.msrb.gmra.mxu3 %v866_v19  ;;  %2676 = vmatmul.f32.vlgmr.msrb.gmra.mxu1 %v864_v20  ;;  %v892_v63 = vld.sshfl [vmem:[#allocation1 + $0x18] sm:$0xff pattern:$0x73625140]  ;;  %v890_v1 = vld.sshfl [vmem:[#allocation1 + $0x8] sm:$0xff pattern:$0x73625140] }
  0x66   :  { %2855 = vmatpush.xpose.msrb.mxu2 %v245_v42  ;;  %2815 = vmatpush.xpose.msrb.mxu0 %v243_v46  ;;  %897 = vst [vmem:[#allocation1] ss:$4 sm:$0xff] %v92_v2  ;;  %v259_v18 = vld [vmem:[#allocation5 + $0x1e0] sm:$0xff] }
  0x67   :  { %2875 = vmatpush.xpose.msrb.mxu3 %v246_v49  ;;  %2835 = vmatpush.xpose.msrb.mxu1 %v244_v50  ;;  %v895_v6 = vld.sshfl [vmem:[#allocation1 + $0x30] sm:$0xff pattern:$0x73625140]  ;;  %v893_v7 = vld.sshfl [vmem:[#allocation1 + $0x20] sm:$0xff pattern:$0x73625140] }
  0x68   :  { %v896_v8 = vld.sshfl [vmem:[#allocation1 + $0x38] sm:$0xff pattern:$0x73625140]  ;;  %v894_v10 = vld.sshfl [vmem:[#allocation1 + $0x28] sm:$0xff pattern:$0x73625140] }
  0x69   :  { %898 = vst [vmem:[#allocation1 + $0x20] ss:$4 sm:$0xff] %v93_v11  ;;  %v94_v20 = vld [vmem:[#allocation2 + $0x90] sm:$0xff] }
  0x6a   :  { %v271_v49 = vld [vmem:[#allocation5 + $0x240] sm:$0xff] }
  0x6c   :  { %2776 = vmatmul.f32.vlgmr.msra.gmra.mxu2 %v871_v29  ;;  %2736 = vmatmul.f32.vlgmr.msra.gmra.mxu0 %v869_v30  ;;  %v95_v29 = vld [vmem:[#allocation2 + $0x98] sm:$0xff]  ;;  %v266_v30 = vld [vmem:[#allocation5 + $0x218] sm:$0xff] }
  0x6d   :  { %2796 = vmatmul.f32.vlgmr.msra.gmra.mxu3 %v872_v31  ;;  %2756 = vmatmul.f32.vlgmr.msra.gmra.mxu1 %v870_v32  ;;  %v11982_v15 = vld.sshfl [vmem:[#allocation1 + $0x10] sm:$0xff pattern:$0x73625140]  ;;  %v11984_v16 = vld.sshfl [vmem:[#allocation1] sm:$0xff pattern:$0x73625140] }
  0x6e   :  { %2935 = vmatpush.xpose.msra.mxu2 %v249_v51  ;;  %2895 = vmatpush.xpose.msra.mxu0 %v247_v55  ;;  %v11986_v17 = vld.sshfl [vmem:[#allocation1 + $0x18] sm:$0xff pattern:$0x73625140]  ;;  %v11988_v19 = vld.sshfl [vmem:[#allocation1 + $0x8] sm:$0xff pattern:$0x73625140] }
  0x6f   :  { %2955 = vmatpush.xpose.msra.mxu3 %v250_v58  ;;  %2915 = vmatpush.xpose.msra.mxu1 %v248_v59  ;;  %907 = vst [vmem:[#allocation1] ss:$4 sm:$0xff] %v94_v20  ;;  %v264_v31 = vld [vmem:[#allocation5 + $0x208] sm:$0xff]  ;;  %v269_v32 = vld [vmem:[#allocation5 + $0x230] sm:$0xff] }
  0x70   :  { %v11990_v24 = vld.sshfl [vmem:[#allocation1 + $0x30] sm:$0xff pattern:$0x73625140]  ;;  %v11992_v25 = vld.sshfl [vmem:[#allocation1 + $0x20] sm:$0xff pattern:$0x73625140] }
  0x71   :  { %v11994_v26 = vld.sshfl [vmem:[#allocation1 + $0x38] sm:$0xff pattern:$0x73625140]  ;;  %v11996_v28 = vld.sshfl [vmem:[#allocation1 + $0x28] sm:$0xff pattern:$0x73625140] }
  0x72   :  { %908 = vst [vmem:[#allocation1 + $0x20] ss:$4 sm:$0xff] %v95_v29  ;;  %v97_v51 = vld [vmem:[#allocation2 + $0xa8] sm:$0xff]  ;;  %v99_v20 = vld [vmem:[#allocation2 + $0xb8] sm:$0xff] }
  0x73   :  { %v277_v59 = vld [vmem:[#allocation5 + $0x270] sm:$0xff] }
  0x74   :  { %2856 = vmatmul.f32.vlgmr.msrb.gmra.mxu2 %v875_v34  ;;  %2816 = vmatmul.f32.vlgmr.msrb.gmra.mxu0 %v873_v35  ;;  %v285_v29 = vld [vmem:[#allocation5 + $0x2b0] sm:$0xff] }
  0x75   :  { %2876 = vmatmul.f32.vlgmr.msrb.gmra.mxu3 %v876_v36  ;;  %2836 = vmatmul.f32.vlgmr.msrb.gmra.mxu1 %v874_v38  ;;  %v267_v36 = vld [vmem:[#allocation5 + $0x220] sm:$0xff]  ;;  %v96_v38 = vld [vmem:[#allocation2 + $0xa0] sm:$0xff] }
  0x76   :  { %3015 = vmatpush.xpose.msrb.mxu2 %v253_v60  ;;  %2975 = vmatpush.xpose.msrb.mxu0 %v251_v0  ;;  %v11998_v33 = vld.sshfl [vmem:[#allocation1 + $0x10] sm:$0xff pattern:$0x73625140]  ;;  %v12000_v34 = vld.sshfl [vmem:[#allocation1] sm:$0xff pattern:$0x73625140] }
  0x77   :  { %3035 = vmatpush.xpose.msrb.mxu3 %v254_v3  ;;  %2995 = vmatpush.xpose.msrb.mxu1 %v252_v4  ;;  %v12002_v35 = vld.sshfl [vmem:[#allocation1 + $0x18] sm:$0xff pattern:$0x73625140]  ;;  %v12004_v37 = vld.sshfl [vmem:[#allocation1 + $0x8] sm:$0xff pattern:$0x73625140] }
  0x78   :  { %917 = vst [vmem:[#allocation1] ss:$4 sm:$0xff] %v96_v38  ;;  %v98_v3 = vld [vmem:[#allocation2 + $0xb0] sm:$0xff] }
  0x79   :  { %v12010_v48 = vld.sshfl [vmem:[#allocation1 + $0x38] sm:$0xff pattern:$0x73625140]  ;;  %v12012_v50 = vld.sshfl [vmem:[#allocation1 + $0x28] sm:$0xff pattern:$0x73625140] }
  0x7c   :  { %2936 = vmatmul.f32.vlgmr.msra.gmra.mxu2 %v881_v43  ;;  %2896 = vmatmul.f32.vlgmr.msra.gmra.mxu0 %v879_v44  ;;  %v273_v43 = vld [vmem:[#allocation5 + $0x250] sm:$0xff] }
  0x7d   :  { %2956 = vmatmul.f32.vlgmr.msra.gmra.mxu3 %v882_v45  ;;  %2916 = vmatmul.f32.vlgmr.msra.gmra.mxu1 %v880_v47  ;;  %v12006_v44 = vld.sshfl [vmem:[#allocation1 + $0x30] sm:$0xff pattern:$0x73625140]  ;;  %v12008_v47 = vld.sshfl [vmem:[#allocation1 + $0x20] sm:$0xff pattern:$0x73625140] }
  0x7e   :  { %3095 = vmatpush.xpose.msra.mxu2 %v257_v5  ;;  %3055 = vmatpush.xpose.msra.mxu0 %v255_v9  ;;  %918 = vst [vmem:[#allocation1 + $0x20] ss:$4 sm:$0xff] %v97_v51  ;;  %v278_v5 = vld [vmem:[#allocation5 + $0x278] sm:$0xff] }
  0x7f   :  { %3115 = vmatpush.xpose.msra.mxu3 %v258_v12  ;;  %3075 = vmatpush.xpose.msra.mxu1 %v256_v13  ;;  %v12018_v60 = vld.sshfl [vmem:[#allocation1 + $0x10] sm:$0xff pattern:$0x73625140]  ;;  %v12022_v0 = vld.sshfl [vmem:[#allocation1 + $0x18] sm:$0xff pattern:$0x73625140] }
  0x80   :  { %v12024_v2 = vld.sshfl [vmem:[#allocation1 + $0x8] sm:$0xff pattern:$0x73625140] }
  0x81   :  { %v281_v12 = vld [vmem:[#allocation5 + $0x290] sm:$0xff] }
  0x84   :  { %3016 = vmatmul.f32.vlgmr.msrb.gmra.mxu2 %v885_v52  ;;  %2976 = vmatmul.f32.vlgmr.msrb.gmra.mxu0 %v883_v53  ;;  %v274_v53 = vld [vmem:[#allocation5 + $0x258] sm:$0xff] }
  0x85   :  { %3036 = vmatmul.f32.vlgmr.msrb.gmra.mxu3 %v886_v54  ;;  %2996 = vmatmul.f32.vlgmr.msrb.gmra.mxu1 %v884_v56  ;;  %v272_v54 = vld [vmem:[#allocation5 + $0x248] sm:$0xff]  ;;  %v12030_v13 = vld.sshfl [vmem:[#allocation1 + $0x30] sm:$0xff pattern:$0x73625140] }
  0x86   :  { %3175 = vmatpush.xpose.msrb.mxu2 %v261_v14  ;;  %3135 = vmatpush.xpose.msrb.mxu0 %v259_v18  ;;  %v279_v18 = vld [vmem:[#allocation5 + $0x280] sm:$0xff] }
  0x87   :  { %3195 = vmatpush.xpose.msrb.mxu3 %v262_v21  ;;  %3155 = vmatpush.xpose.msrb.mxu1 %v260_v22  ;;  %v282_v22 = vld [vmem:[#allocation5 + $0x298] sm:$0xff] }
  0x8c   :  { %3096 = vmatmul.f32.vlgmr.msra.gmra.mxu2 %v891_v61  ;;  %3056 = vmatmul.f32.vlgmr.msra.gmra.mxu0 %v889_v62 }
  0x8d   :  { %3116 = vmatmul.f32.vlgmr.msra.gmra.mxu3 %v892_v63  ;;  %3076 = vmatmul.f32.vlgmr.msra.gmra.mxu1 %v890_v1  ;;  %v12020_v63 = vld.sshfl [vmem:[#allocation1] sm:$0xff pattern:$0x73625140] }
  0x8e   :  { %3255 = vmatpush.xpose.msra.mxu2 %v265_v23  ;;  %3215 = vmatpush.xpose.msra.mxu0 %v263_v27  ;;  %v275_v1 = vld [vmem:[#allocation5 + $0x260] sm:$0xff]  ;;  %927 = vst [vmem:[#allocation1] ss:$4 sm:$0xff] %v98_v3  ;;  %v280_v23 = vld [vmem:[#allocation5 + $0x288] sm:$0xff]  ;;  %v293_v3 = vld [vmem:[#allocation5 + $0x2f0] sm:$0xff] }
  0x8f   :  { %3275 = vmatpush.xpose.msra.mxu3 %v266_v30  ;;  %3235 = vmatpush.xpose.msra.mxu1 %v264_v31 }
  0x94   :  { %3176 = vmatmul.f32.vlgmr.msrb.gmra.mxu2 %v895_v6  ;;  %3136 = vmatmul.f32.vlgmr.msrb.gmra.mxu0 %v893_v7  ;;  %v276_v6 = vld [vmem:[#allocation5 + $0x268] sm:$0xff] }
  0x95   :  { %3196 = vmatmul.f32.vlgmr.msrb.gmra.mxu3 %v896_v8  ;;  %3156 = vmatmul.f32.vlgmr.msrb.gmra.mxu1 %v894_v10  ;;  %v12042_v30 = vld.sshfl [vmem:[#allocation1 + $0x10] sm:$0xff pattern:$0x73625140] }
  0x96   :  { %3335 = vmatpush.xpose.msrb.mxu2 %v269_v32  ;;  %3295 = vmatpush.xpose.msrb.mxu0 %v267_v36  ;;  %v12048_v36 = vld.sshfl [vmem:[#allocation1 + $0x8] sm:$0xff pattern:$0x73625140] }
  0x97   :  { %3355 = vmatpush.xpose.msrb.mxu3 %v270_v39  ;;  %3315 = vmatpush.xpose.msrb.mxu1 %v268_v40  ;;  %v286_v39 = vld [vmem:[#allocation5 + $0x2b8] sm:$0xff]  ;;  %v284_v40 = vld [vmem:[#allocation5 + $0x2a8] sm:$0xff] }
  0x99   :  { %v1937_v42 = vpop.f32.mrf.mxu0 }
  0x9a   :  { %v1938_v45 = vadd.f32 %v11801_v41, %v1937_v42  ;;  %v1957_v46 = vpop.f32.mrf.mxu1 }
  0x9c   :  { %3256 = vmatmul.f32.vlgmr.msra.gmra.mxu2 %v11982_v15  ;;  %v1958_v52 = vadd.f32 %v1957_v46, %v1938_v45  ;;  %3216 = vmatmul.f32.vlgmr.msra.gmra.mxu0 %v11984_v16  ;;  %v12032_v16 = vld.sshfl [vmem:[#allocation1 + $0x20] sm:$0xff pattern:$0x73625140] }
  0x9d   :  { %3276 = vmatmul.f32.vlgmr.msra.gmra.mxu3 %v11986_v17  ;;  %3236 = vmatmul.f32.vlgmr.msra.gmra.mxu1 %v11988_v19  ;;  %v12034_v17 = vld.sshfl [vmem:[#allocation1 + $0x38] sm:$0xff pattern:$0x73625140]  ;;  %v12036_v19 = vld.sshfl [vmem:[#allocation1 + $0x28] sm:$0xff pattern:$0x73625140] }
  0x9e   :  { %3415 = vmatpush.xpose.msra.mxu2 %v273_v43  ;;  %3375 = vmatpush.xpose.msra.mxu0 %v271_v49  ;;  %928 = vst [vmem:[#allocation1 + $0x20] ss:$4 sm:$0xff] %v99_v20  ;;  %v289_v49 = vld [vmem:[#allocation5 + $0x2d0] sm:$0xff] }
  0x9f   :  { %v1977_v55 = vpop.f32.mrf.mxu2  ;;  %3435 = vmatpush.xpose.msra.mxu3 %v274_v53  ;;  %3395 = vmatpush.xpose.msra.mxu1 %v272_v54  ;;  %v101_v54 = vld [vmem:[#allocation2 + $0xc8] sm:$0xff] }
  0xa0   :  { %v1978_v56 = vadd.f32 %v1977_v55, %v1958_v52  ;;  %v1997_v57 = vpop.f32.mrf.mxu3  ;;  %v297_v20 = vld [vmem:[#allocation5 + $0x310] sm:$0xff] }
  0xa1   :  { %v2017_v58 = vpop.f32.mrf.mxu0 }
  0xa2   :  { %v1998_v61 = vadd.f32 %v1997_v57, %v1978_v56  ;;  %v2037_v62 = vpop.f32.mrf.mxu1  ;;  %v290_v56 = vld [vmem:[#allocation5 + $0x2d8] sm:$0xff]  ;;  %v288_v57 = vld [vmem:[#allocation5 + $0x2c8] sm:$0xff] }
  0xa4   :  { %v2018_v4 = vadd.f32 %v2017_v58, %v1998_v61  ;;  %3336 = vmatmul.f32.vlgmr.msrb.gmra.mxu2 %v11990_v24  ;;  %3296 = vmatmul.f32.vlgmr.msrb.gmra.mxu0 %v11992_v25 }
  0xa5   :  { %3356 = vmatmul.f32.vlgmr.msrb.gmra.mxu3 %v11994_v26  ;;  %3316 = vmatmul.f32.vlgmr.msrb.gmra.mxu1 %v11996_v28  ;;  %v12056_v52 = vld.sshfl [vmem:[#allocation1 + $0x20] sm:$0xff pattern:$0x73625140]  ;;  %v12058_v53 = vld.sshfl [vmem:[#allocation1 + $0x38] sm:$0xff pattern:$0x73625140] }
  0xa6   :  { %v2038_v7 = vadd.f32 %v2037_v62, %v2018_v4  ;;  %3495 = vmatpush.xpose.msrb.mxu2 %v277_v59  ;;  %3455 = vmatpush.xpose.msrb.mxu0 %v275_v1 }
  0xa7   :  { %v2057_v8 = vpop.f32.mrf.mxu2  ;;  %3515 = vmatpush.xpose.msrb.mxu3 %v278_v5  ;;  %3475 = vmatpush.xpose.msrb.mxu1 %v276_v6 }
  0xa8   :  { %v2058_v9 = vadd.f32 %v2057_v8, %v2038_v7  ;;  %v2077_v10 = vpop.f32.mrf.mxu3  ;;  %v102_v7 = vld [vmem:[#allocation2 + $0xd0] sm:$0xff] }
  0xa9   :  { %v2097_v11 = vpop.f32.mrf.mxu0 }
  0xaa   :  { %v2078_v14 = vadd.f32 %v2077_v10, %v2058_v9  ;;  %v2117_v15 = vpop.f32.mrf.mxu1  ;;  %v294_v9 = vld [vmem:[#allocation5 + $0x2f8] sm:$0xff]  ;;  %v292_v10 = vld [vmem:[#allocation5 + $0x2e8] sm:$0xff] }
  0xac   :  { %v2098_v21 = vadd.f32 %v2097_v11, %v2078_v14  ;;  %3416 = vmatmul.f32.vlgmr.msra.gmra.mxu2 %v11998_v33  ;;  %3376 = vmatmul.f32.vlgmr.msra.gmra.mxu0 %v12000_v34  ;;  %v12044_v33 = vld.sshfl [vmem:[#allocation1] sm:$0xff pattern:$0x73625140]  ;;  %v12046_v34 = vld.sshfl [vmem:[#allocation1 + $0x18] sm:$0xff pattern:$0x73625140] }
  0xad   :  { %3436 = vmatmul.f32.vlgmr.msra.gmra.mxu3 %v12002_v35  ;;  %3396 = vmatmul.f32.vlgmr.msra.gmra.mxu1 %v12004_v37  ;;  %v283_v35 = vld [vmem:[#allocation5 + $0x2a0] sm:$0xff]  ;;  %v100_v37 = vld [vmem:[#allocation2 + $0xc0] sm:$0xff] }
  0xae   :  { %v2118_v24 = vadd.f32 %v2117_v15, %v2098_v21  ;;  %3575 = vmatpush.xpose.msra.mxu2 %v281_v12  ;;  %3535 = vmatpush.xpose.msra.mxu0 %v279_v18  ;;  %937 = vst [vmem:[#allocation1] ss:$4 sm:$0xff] %v100_v37  ;;  %v301_v37 = vld [vmem:[#allocation5 + $0x330] sm:$0xff] }
  0xaf   :  { %v2137_v25 = vpop.f32.mrf.mxu2  ;;  %3595 = vmatpush.xpose.msra.mxu3 %v282_v22  ;;  %3555 = vmatpush.xpose.msra.mxu1 %v280_v23 }
  0xb0   :  { %v2138_v26 = vadd.f32 %v2137_v25, %v2118_v24  ;;  %v2157_v27 = vpop.f32.mrf.mxu3  ;;  %v103_v24 = vld [vmem:[#allocation2 + $0xd8] sm:$0xff] }
  0xb1   :  { %v2177_v28 = vpop.f32.mrf.mxu0 }
  0xb2   :  { %v2158_v31 = vadd.f32 %v2157_v27, %v2138_v26  ;;  %v2197_v32 = vpop.f32.mrf.mxu1  ;;  %v298_v26 = vld [vmem:[#allocation5 + $0x318] sm:$0xff]  ;;  %v296_v27 = vld [vmem:[#allocation5 + $0x308] sm:$0xff] }
  0xb4   :  { %v2178_v38 = vadd.f32 %v2177_v28, %v2158_v31  ;;  %3496 = vmatmul.f32.vlgmr.msrb.gmra.mxu2 %v12006_v44  ;;  %3456 = vmatmul.f32.vlgmr.msrb.gmra.mxu0 %v12008_v47  ;;  %v12054_v44 = vld.sshfl [vmem:[#allocation1 + $0x30] sm:$0xff pattern:$0x73625140] }
  0xb5   :  { %3516 = vmatmul.f32.vlgmr.msrb.gmra.mxu3 %v12010_v48  ;;  %3476 = vmatmul.f32.vlgmr.msrb.gmra.mxu1 %v12012_v50  ;;  %v287_v48 = vld [vmem:[#allocation5 + $0x2c0] sm:$0xff]  ;;  %v12060_v50 = vld.sshfl [vmem:[#allocation1 + $0x28] sm:$0xff pattern:$0x73625140] }
  0xb6   :  { %v2198_v41 = vadd.f32 %v2197_v32, %v2178_v38  ;;  %3655 = vmatpush.xpose.msrb.mxu2 %v285_v29  ;;  %3615 = vmatpush.xpose.msrb.mxu0 %v283_v35  ;;  %938 = vst [vmem:[#allocation1 + $0x20] ss:$4 sm:$0xff] %v101_v54  ;;  %v12068_v5 = vld.sshfl [vmem:[#allocation1] sm:$0xff pattern:$0x73625140]  ;;  %v305_v54 = vld [vmem:[#allocation5 + $0x350] sm:$0xff] }
  0xb7   :  { %v2217_v42 = vpop.f32.mrf.mxu2  ;;  %3675 = vmatpush.xpose.msrb.mxu3 %v286_v39  ;;  %3635 = vmatpush.xpose.msrb.mxu1 %v284_v40  ;;  %v12070_v6 = vld.sshfl [vmem:[#allocation1 + $0x18] sm:$0xff pattern:$0x73625140] }
  0xb8   :  { %v2218_v43 = vadd.f32 %v2217_v42, %v2198_v41  ;;  %v2237_v45 = vpop.f32.mrf.mxu3  ;;  %v104_v41 = vld [vmem:[#allocation2 + $0xe0] sm:$0xff] }
  0xb9   :  { %v2257_v46 = vpop.f32.mrf.mxu0 }
  0xba   :  { %v2238_v47 = vadd.f32 %v2237_v45, %v2218_v43  ;;  %v2277_v51 = vpop.f32.mrf.mxu1  ;;  %v302_v43 = vld [vmem:[#allocation5 + $0x338] sm:$0xff]  ;;  %v300_v45 = vld [vmem:[#allocation5 + $0x328] sm:$0xff] }
  0xbc   :  { %v2258_v55 = vadd.f32 %v2257_v46, %v2238_v47  ;;  %3576 = vmatmul.f32.vlgmr.msra.gmra.mxu2 %v12018_v60  ;;  %3536 = vmatmul.f32.vlgmr.msra.gmra.mxu0 %v12020_v63  ;;  %v12066_v60 = vld.sshfl [vmem:[#allocation1 + $0x10] sm:$0xff pattern:$0x73625140] }
  0xbd   :  { %3596 = vmatmul.f32.vlgmr.msra.gmra.mxu3 %v12022_v0  ;;  %3556 = vmatmul.f32.vlgmr.msra.gmra.mxu1 %v12024_v2  ;;  %v291_v0 = vld [vmem:[#allocation5 + $0x2e0] sm:$0xff]  ;;  %v12072_v2 = vld.sshfl [vmem:[#allocation1 + $0x8] sm:$0xff pattern:$0x73625140] }
  0xbe   :  { %v2278_v58 = vadd.f32 %v2277_v51, %v2258_v55  ;;  %3735 = vmatpush.xpose.msra.mxu2 %v289_v49  ;;  %3695 = vmatpush.xpose.msra.mxu0 %v287_v48  ;;  %947 = vst [vmem:[#allocation1] ss:$4 sm:$0xff] %v102_v7  ;;  %v12080_v22 = vld.sshfl [vmem:[#allocation1 + $0x20] sm:$0xff pattern:$0x73625140]  ;;  %v309_v7 = vld [vmem:[#allocation5 + $0x370] sm:$0xff] }
  0xbf   :  { %v2297_v59 = vpop.f32.mrf.mxu2  ;;  %3755 = vmatpush.xpose.msra.mxu3 %v290_v56  ;;  %3715 = vmatpush.xpose.msra.mxu1 %v288_v57  ;;  %v12082_v23 = vld.sshfl [vmem:[#allocation1 + $0x38] sm:$0xff pattern:$0x73625140] }
  0xc0   :  { %v2298_v61 = vadd.f32 %v2297_v59, %v2278_v58  ;;  %v2317_v62 = vpop.f32.mrf.mxu3  ;;  %v105_v58 = vld [vmem:[#allocation2 + $0xe8] sm:$0xff] }
  0xc1   :  { %v2337_v1 = vpop.f32.mrf.mxu0 }
  0xc2   :  { %v2318_v63 = vadd.f32 %v2317_v62, %v2298_v61  ;;  %v2357_v4 = vpop.f32.mrf.mxu1  ;;  %v306_v61 = vld [vmem:[#allocation5 + $0x358] sm:$0xff]  ;;  %v304_v62 = vld [vmem:[#allocation5 + $0x348] sm:$0xff] }
  0xc4   :  { %v2338_v8 = vadd.f32 %v2337_v1, %v2318_v63  ;;  %3656 = vmatmul.f32.vlgmr.msrb.gmra.mxu2 %v12030_v13  ;;  %3616 = vmatmul.f32.vlgmr.msrb.gmra.mxu0 %v12032_v16  ;;  %v12078_v13 = vld.sshfl [vmem:[#allocation1 + $0x30] sm:$0xff pattern:$0x73625140] }
  0xc5   :  { %3676 = vmatmul.f32.vlgmr.msrb.gmra.mxu3 %v12034_v17  ;;  %3636 = vmatmul.f32.vlgmr.msrb.gmra.mxu1 %v12036_v19  ;;  %v295_v17 = vld [vmem:[#allocation5 + $0x300] sm:$0xff]  ;;  %v12084_v19 = vld.sshfl [vmem:[#allocation1 + $0x28] sm:$0xff pattern:$0x73625140] }
  0xc6   :  { %v2358_v11 = vadd.f32 %v2357_v4, %v2338_v8  ;;  %3815 = vmatpush.xpose.msrb.mxu2 %v293_v3  ;;  %3775 = vmatpush.xpose.msrb.mxu0 %v291_v0  ;;  %948 = vst [vmem:[#allocation1 + $0x20] ss:$4 sm:$0xff] %v103_v24  ;;  %v12092_v39 = vld.sshfl [vmem:[#allocation1] sm:$0xff pattern:$0x73625140]  ;;  %v313_v24 = vld [vmem:[#allocation5 + $0x390] sm:$0xff] }
  0xc7   :  { %v2377_v12 = vpop.f32.mrf.mxu2  ;;  %3835 = vmatpush.xpose.msrb.mxu3 %v294_v9  ;;  %3795 = vmatpush.xpose.msrb.mxu1 %v292_v10  ;;  %v12094_v40 = vld.sshfl [vmem:[#allocation1 + $0x18] sm:$0xff pattern:$0x73625140] }
  0xc8   :  { %v2378_v14 = vadd.f32 %v2377_v12, %v2358_v11  ;;  %v2397_v15 = vpop.f32.mrf.mxu3  ;;  %v106_v11 = vld [vmem:[#allocation2 + $0xf0] sm:$0xff] }
  0xc9   :  { %v2417_v18 = vpop.f32.mrf.mxu0 }
  0xca   :  { %v2398_v16 = vadd.f32 %v2397_v15, %v2378_v14  ;;  %v2437_v21 = vpop.f32.mrf.mxu1  ;;  %v310_v14 = vld [vmem:[#allocation5 + $0x378] sm:$0xff]  ;;  %v308_v15 = vld [vmem:[#allocation5 + $0x368] sm:$0xff] }
  0xcc   :  { %v2418_v25 = vadd.f32 %v2417_v18, %v2398_v16  ;;  %3736 = vmatmul.f32.vlgmr.msra.gmra.mxu2 %v12042_v30  ;;  %3696 = vmatmul.f32.vlgmr.msra.gmra.mxu0 %v12044_v33  ;;  %v12090_v30 = vld.sshfl [vmem:[#allocation1 + $0x10] sm:$0xff pattern:$0x73625140] }
  0xcd   :  { %3756 = vmatmul.f32.vlgmr.msra.gmra.mxu3 %v12046_v34  ;;  %3716 = vmatmul.f32.vlgmr.msra.gmra.mxu1 %v12048_v36  ;;  %v299_v34 = vld [vmem:[#allocation5 + $0x320] sm:$0xff]  ;;  %v12096_v36 = vld.sshfl [vmem:[#allocation1 + $0x8] sm:$0xff pattern:$0x73625140] }
  0xce   :  { %v2438_v28 = vadd.f32 %v2437_v21, %v2418_v25  ;;  %3895 = vmatpush.xpose.msra.mxu2 %v297_v20  ;;  %3855 = vmatpush.xpose.msra.mxu0 %v295_v17  ;;  %957 = vst [vmem:[#allocation1] ss:$4 sm:$0xff] %v104_v41  ;;  %v12104_v56 = vld.sshfl [vmem:[#allocation1 + $0x20] sm:$0xff pattern:$0x73625140]  ;;  %v317_v41 = vld [vmem:[#allocation5 + $0x3b0] sm:$0xff] }
  0xcf   :  { %v2457_v29 = vpop.f32.mrf.mxu2  ;;  %3915 = vmatpush.xpose.msra.mxu3 %v298_v26  ;;  %3875 = vmatpush.xpose.msra.mxu1 %v296_v27  ;;  %v12106_v57 = vld.sshfl [vmem:[#allocation1 + $0x38] sm:$0xff pattern:$0x73625140] }
  0xd0   :  { %v2458_v31 = vadd.f32 %v2457_v29, %v2438_v28  ;;  %v2477_v32 = vpop.f32.mrf.mxu3  ;;  %v107_v28 = vld [vmem:[#allocation2 + $0xf8] sm:$0xff] }
  0xd1   :  { %v2497_v35 = vpop.f32.mrf.mxu0 }
  0xd2   :  { %v2478_v33 = vadd.f32 %v2477_v32, %v2458_v31  ;;  %v2517_v38 = vpop.f32.mrf.mxu1  ;;  %v314_v31 = vld [vmem:[#allocation5 + $0x398] sm:$0xff]  ;;  %v312_v32 = vld [vmem:[#allocation5 + $0x388] sm:$0xff] }
  0xd4   :  { %v2498_v42 = vadd.f32 %v2497_v35, %v2478_v33  ;;  %3816 = vmatmul.f32.vlgmr.msrb.gmra.mxu2 %v12054_v44  ;;  %3776 = vmatmul.f32.vlgmr.msrb.gmra.mxu0 %v12056_v52  ;;  %v12102_v44 = vld.sshfl [vmem:[#allocation1 + $0x30] sm:$0xff pattern:$0x73625140] }
  0xd5   :  { %3836 = vmatmul.f32.vlgmr.msrb.gmra.mxu3 %v12058_v53  ;;  %3796 = vmatmul.f32.vlgmr.msrb.gmra.mxu1 %v12060_v50  ;;  %v303_v53 = vld [vmem:[#allocation5 + $0x340] sm:$0xff]  ;;  %v12108_v50 = vld.sshfl [vmem:[#allocation1 + $0x28] sm:$0xff pattern:$0x73625140] }
  0xd6   :  { %v2518_v46 = vadd.f32 %v2517_v38, %v2498_v42  ;;  %3975 = vmatpush.xpose.msrb.mxu2 %v301_v37  ;;  %3935 = vmatpush.xpose.msrb.mxu0 %v299_v34  ;;  %958 = vst [vmem:[#allocation1 + $0x20] ss:$4 sm:$0xff] %v105_v58  ;;  %v12116_v9 = vld.sshfl [vmem:[#allocation1] sm:$0xff pattern:$0x73625140]  ;;  %v321_v58 = vld [vmem:[#allocation5 + $0x3d0] sm:$0xff] }
  0xd7   :  { %v2537_v49 = vpop.f32.mrf.mxu2  ;;  %3995 = vmatpush.xpose.msrb.mxu3 %v302_v43  ;;  %3955 = vmatpush.xpose.msrb.mxu1 %v300_v45  ;;  %v12118_v10 = vld.sshfl [vmem:[#allocation1 + $0x18] sm:$0xff pattern:$0x73625140] }
  0xd8   :  { %v2538_v47 = vadd.f32 %v2537_v49, %v2518_v46  ;;  %v2557_v51 = vpop.f32.mrf.mxu3  ;;  %v108_v46 = vld [vmem:[#allocation2 + $0x100] sm:$0xff] }
  0xd9   :  { %v2577_v48 = vpop.f32.mrf.mxu0 }
  0xda   :  { %v2558_v52 = vadd.f32 %v2557_v51, %v2538_v47  ;;  %v2597_v55 = vpop.f32.mrf.mxu1  ;;  %v318_v47 = vld [vmem:[#allocation5 + $0x3b8] sm:$0xff]  ;;  %v316_v51 = vld [vmem:[#allocation5 + $0x3a8] sm:$0xff] }
  0xdc   :  { %v2578_v59 = vadd.f32 %v2577_v48, %v2558_v52  ;;  %3896 = vmatmul.f32.vlgmr.msra.gmra.mxu2 %v12066_v60  ;;  %3856 = vmatmul.f32.vlgmr.msra.gmra.mxu0 %v12068_v5  ;;  %v12114_v60 = vld.sshfl [vmem:[#allocation1 + $0x10] sm:$0xff pattern:$0x73625140] }
  0xdd   :  { %3916 = vmatmul.f32.vlgmr.msra.gmra.mxu3 %v12070_v6  ;;  %3876 = vmatmul.f32.vlgmr.msra.gmra.mxu1 %v12072_v2  ;;  %v307_v6 = vld [vmem:[#allocation5 + $0x360] sm:$0xff]  ;;  %v12120_v2 = vld.sshfl [vmem:[#allocation1 + $0x8] sm:$0xff pattern:$0x73625140] }
  0xde   :  { %v2598_v1 = vadd.f32 %v2597_v55, %v2578_v59  ;;  %4055 = vmatpush.xpose.msra.mxu2 %v305_v54  ;;  %4015 = vmatpush.xpose.msra.mxu0 %v303_v53  ;;  %967 = vst [vmem:[#allocation1] ss:$4 sm:$0xff] %v106_v11  ;;  %v12128_v26 = vld.sshfl [vmem:[#allocation1 + $0x20] sm:$0xff pattern:$0x73625140]  ;;  %v325_v11 = vld [vmem:[#allocation5 + $0x3f0] sm:$0xff] }
  0xdf   :  { %v2617_v3 = vpop.f32.mrf.mxu2  ;;  %4075 = vmatpush.xpose.msra.mxu3 %v306_v61  ;;  %4035 = vmatpush.xpose.msra.mxu1 %v304_v62  ;;  %v12130_v27 = vld.sshfl [vmem:[#allocation1 + $0x38] sm:$0xff pattern:$0x73625140] }
  0xe0   :  { %v2618_v63 = vadd.f32 %v2617_v3, %v2598_v1  ;;  %v2637_v4 = vpop.f32.mrf.mxu3  ;;  %v109_v1 = vld [vmem:[#allocation2 + $0x108] sm:$0xff] }
  0xe1   :  { %v2657_v0 = vpop.f32.mrf.mxu0 }
  0xe2   :  { %v2638_v5 = vadd.f32 %v2637_v4, %v2618_v63  ;;  %v2677_v8 = vpop.f32.mrf.mxu1  ;;  %v322_v63 = vld [vmem:[#allocation5 + $0x3d8] sm:$0xff]  ;;  %v320_v4 = vld [vmem:[#allocation5 + $0x3c8] sm:$0xff] }
  0xe4   :  { %v2658_v12 = vadd.f32 %v2657_v0, %v2638_v5  ;;  %3976 = vmatmul.f32.vlgmr.msrb.gmra.mxu2 %v12078_v13  ;;  %3936 = vmatmul.f32.vlgmr.msrb.gmra.mxu0 %v12080_v22  ;;  %v12126_v13 = vld.sshfl [vmem:[#allocation1 + $0x30] sm:$0xff pattern:$0x73625140] }
  0xe5   :  { %3996 = vmatmul.f32.vlgmr.msrb.gmra.mxu3 %v12082_v23  ;;  %3956 = vmatmul.f32.vlgmr.msrb.gmra.mxu1 %v12084_v19  ;;  %v311_v23 = vld [vmem:[#allocation5 + $0x380] sm:$0xff]  ;;  %v12132_v19 = vld.sshfl [vmem:[#allocation1 + $0x28] sm:$0xff pattern:$0x73625140] }
  0xe6   :  { %v2678_v18 = vadd.f32 %v2677_v8, %v2658_v12  ;;  %4135 = vmatpush.xpose.msrb.mxu2 %v309_v7  ;;  %4095 = vmatpush.xpose.msrb.mxu0 %v307_v6  ;;  %968 = vst [vmem:[#allocation1 + $0x20] ss:$4 sm:$0xff] %v107_v28  ;;  %v12140_v43 = vld.sshfl [vmem:[#allocation1] sm:$0xff pattern:$0x73625140]  ;;  %v329_v28 = vld [vmem:[#allocation5 + $0x410] sm:$0xff] }
  0xe7   :  { %v2697_v20 = vpop.f32.mrf.mxu2  ;;  %4155 = vmatpush.xpose.msrb.mxu3 %v310_v14  ;;  %4115 = vmatpush.xpose.msrb.mxu1 %v308_v15  ;;  %v12142_v45 = vld.sshfl [vmem:[#allocation1 + $0x18] sm:$0xff pattern:$0x73625140] }
  0xe8   :  { %v2698_v16 = vadd.f32 %v2697_v20, %v2678_v18  ;;  %v2717_v21 = vpop.f32.mrf.mxu3  ;;  %v110_v18 = vld [vmem:[#allocation2 + $0x110] sm:$0xff] }
  0xe9   :  { %v2737_v17 = vpop.f32.mrf.mxu0 }
  0xea   :  { %v2718_v22 = vadd.f32 %v2717_v21, %v2698_v16  ;;  %v2757_v25 = vpop.f32.mrf.mxu1  ;;  %v326_v16 = vld [vmem:[#allocation5 + $0x3f8] sm:$0xff]  ;;  %v324_v21 = vld [vmem:[#allocation5 + $0x3e8] sm:$0xff] }
  0xec   :  { %v2738_v29 = vadd.f32 %v2737_v17, %v2718_v22  ;;  %4056 = vmatmul.f32.vlgmr.msra.gmra.mxu2 %v12090_v30  ;;  %4016 = vmatmul.f32.vlgmr.msra.gmra.mxu0 %v12092_v39  ;;  %v12138_v30 = vld.sshfl [vmem:[#allocation1 + $0x10] sm:$0xff pattern:$0x73625140] }
  0xed   :  { %4076 = vmatmul.f32.vlgmr.msra.gmra.mxu3 %v12094_v40  ;;  %4036 = vmatmul.f32.vlgmr.msra.gmra.mxu1 %v12096_v36  ;;  %v315_v40 = vld [vmem:[#allocation5 + $0x3a0] sm:$0xff]  ;;  %v12144_v36 = vld.sshfl [vmem:[#allocation1 + $0x8] sm:$0xff pattern:$0x73625140] }
  0xee   :  { %v2758_v35 = vadd.f32 %v2757_v25, %v2738_v29  ;;  %4215 = vmatpush.xpose.msra.mxu2 %v313_v24  ;;  %4175 = vmatpush.xpose.msra.mxu0 %v311_v23  ;;  %977 = vst [vmem:[#allocation1] ss:$4 sm:$0xff] %v108_v46  ;;  %v12152_v61 = vld.sshfl [vmem:[#allocation1 + $0x20] sm:$0xff pattern:$0x73625140]  ;;  %v333_v46 = vld [vmem:[#allocation5 + $0x430] sm:$0xff] }
  0xef   :  { %v2777_v37 = vpop.f32.mrf.mxu2  ;;  %4235 = vmatpush.xpose.msra.mxu3 %v314_v31  ;;  %4195 = vmatpush.xpose.msra.mxu1 %v312_v32  ;;  %v12154_v62 = vld.sshfl [vmem:[#allocation1 + $0x38] sm:$0xff pattern:$0x73625140] }
  0xf0   :  { %v2778_v33 = vadd.f32 %v2777_v37, %v2758_v35  ;;  %v2797_v38 = vpop.f32.mrf.mxu3  ;;  %v111_v35 = vld [vmem:[#allocation2 + $0x118] sm:$0xff] }
  0xf1   :  { %v2817_v34 = vpop.f32.mrf.mxu0 }
  0xf2   :  { %v2798_v39 = vadd.f32 %v2797_v38, %v2778_v33  ;;  %v2837_v42 = vpop.f32.mrf.mxu1  ;;  %v330_v33 = vld [vmem:[#allocation5 + $0x418] sm:$0xff]  ;;  %v328_v38 = vld [vmem:[#allocation5 + $0x408] sm:$0xff] }
  0xf4   :  { %v2818_v49 = vadd.f32 %v2817_v34, %v2798_v39  ;;  %4136 = vmatmul.f32.vlgmr.msrb.gmra.mxu2 %v12102_v44  ;;  %4096 = vmatmul.f32.vlgmr.msrb.gmra.mxu0 %v12104_v56  ;;  %v12150_v44 = vld.sshfl [vmem:[#allocation1 + $0x30] sm:$0xff pattern:$0x73625140] }
  0xf5   :  { %4156 = vmatmul.f32.vlgmr.msrb.gmra.mxu3 %v12106_v57  ;;  %4116 = vmatmul.f32.vlgmr.msrb.gmra.mxu1 %v12108_v50  ;;  %v319_v57 = vld [vmem:[#allocation5 + $0x3c0] sm:$0xff]  ;;  %v12156_v50 = vld.sshfl [vmem:[#allocation1 + $0x28] sm:$0xff pattern:$0x73625140] }
  0xf6   :  { %v2838_v48 = vadd.f32 %v2837_v42, %v2818_v49  ;;  %4295 = vmatpush.xpose.msrb.mxu2 %v317_v41  ;;  %4255 = vmatpush.xpose.msrb.mxu0 %v315_v40  ;;  %978 = vst [vmem:[#allocation1 + $0x20] ss:$4 sm:$0xff] %v109_v1  ;;  %v12164_v14 = vld.sshfl [vmem:[#allocation1] sm:$0xff pattern:$0x73625140]  ;;  %v337_v1 = vld [vmem:[#allocation5 + $0x450] sm:$0xff] }
  0xf7   :  { %v2857_v54 = vpop.f32.mrf.mxu2  ;;  %4315 = vmatpush.xpose.msrb.mxu3 %v318_v47  ;;  %4275 = vmatpush.xpose.msrb.mxu1 %v316_v51  ;;  %v12166_v15 = vld.sshfl [vmem:[#allocation1 + $0x18] sm:$0xff pattern:$0x73625140] }
  0xf8   :  { %v2858_v52 = vadd.f32 %v2857_v54, %v2838_v48  ;;  %v2877_v55 = vpop.f32.mrf.mxu3  ;;  %v112_v48 = vld [vmem:[#allocation2 + $0x120] sm:$0xff] }
  0xf9   :  { %v2897_v53 = vpop.f32.mrf.mxu0 }
  0xfa   :  { %v2878_v56 = vadd.f32 %v2877_v55, %v2858_v52  ;;  %v2917_v59 = vpop.f32.mrf.mxu1  ;;  %v334_v52 = vld [vmem:[#allocation5 + $0x438] sm:$0xff]  ;;  %v332_v55 = vld [vmem:[#allocation5 + $0x428] sm:$0xff] }
  0xfc   :  { %v2898_v3 = vadd.f32 %v2897_v53, %v2878_v56  ;;  %4216 = vmatmul.f32.vlgmr.msra.gmra.mxu2 %v12114_v60  ;;  %4176 = vmatmul.f32.vlgmr.msra.gmra.mxu0 %v12116_v9  ;;  %v12162_v60 = vld.sshfl [vmem:[#allocation1 + $0x10] sm:$0xff pattern:$0x73625140] }
  0xfd   :  { %4236 = vmatmul.f32.vlgmr.msra.gmra.mxu3 %v12118_v10  ;;  %4196 = vmatmul.f32.vlgmr.msra.gmra.mxu1 %v12120_v2  ;;  %v323_v10 = vld [vmem:[#allocation5 + $0x3e0] sm:$0xff]  ;;  %v12168_v2 = vld.sshfl [vmem:[#allocation1 + $0x8] sm:$0xff pattern:$0x73625140] }
  0xfe   :  { %v2918_v0 = vadd.f32 %v2917_v59, %v2898_v3  ;;  %4375 = vmatpush.xpose.msra.mxu2 %v321_v58  ;;  %4335 = vmatpush.xpose.msra.mxu0 %v319_v57  ;;  %987 = vst [vmem:[#allocation1] ss:$4 sm:$0xff] %v110_v18  ;;  %v12176_v31 = vld.sshfl [vmem:[#allocation1 + $0x20] sm:$0xff pattern:$0x73625140]  ;;  %v341_v18 = vld [vmem:[#allocation5 + $0x470] sm:$0xff] }
  0xff   :  { %v2937_v7 = vpop.f32.mrf.mxu2  ;;  %4395 = vmatpush.xpose.msra.mxu3 %v322_v63  ;;  %4355 = vmatpush.xpose.msra.mxu1 %v320_v4  ;;  %v12178_v32 = vld.sshfl [vmem:[#allocation1 + $0x38] sm:$0xff pattern:$0x73625140] }
 0x100   :  { %v2938_v5 = vadd.f32 %v2937_v7, %v2918_v0  ;;  %v2957_v8 = vpop.f32.mrf.mxu3  ;;  %v113_v0 = vld [vmem:[#allocation2 + $0x128] sm:$0xff] }
 0x101   :  { %v2977_v6 = vpop.f32.mrf.mxu0 }
 0x102   :  { %v2958_v9 = vadd.f32 %v2957_v8, %v2938_v5  ;;  %v2997_v12 = vpop.f32.mrf.mxu1  ;;  %v338_v5 = vld [vmem:[#allocation5 + $0x458] sm:$0xff]  ;;  %v336_v8 = vld [vmem:[#allocation5 + $0x448] sm:$0xff] }
 0x104   :  { %v2978_v20 = vadd.f32 %v2977_v6, %v2958_v9  ;;  %4296 = vmatmul.f32.vlgmr.msrb.gmra.mxu2 %v12126_v13  ;;  %4256 = vmatmul.f32.vlgmr.msrb.gmra.mxu0 %v12128_v26  ;;  %v12174_v13 = vld.sshfl [vmem:[#allocation1 + $0x30] sm:$0xff pattern:$0x73625140] }
 0x105   :  { %4316 = vmatmul.f32.vlgmr.msrb.gmra.mxu3 %v12130_v27  ;;  %4276 = vmatmul.f32.vlgmr.msrb.gmra.mxu1 %v12132_v19  ;;  %v327_v27 = vld [vmem:[#allocation5 + $0x400] sm:$0xff]  ;;  %v12180_v19 = vld.sshfl [vmem:[#allocation1 + $0x28] sm:$0xff pattern:$0x73625140] }
 0x106   :  { %v2998_v17 = vadd.f32 %v2997_v12, %v2978_v20  ;;  %4455 = vmatpush.xpose.msrb.mxu2 %v325_v11  ;;  %4415 = vmatpush.xpose.msrb.mxu0 %v323_v10  ;;  %988 = vst [vmem:[#allocation1 + $0x20] ss:$4 sm:$0xff] %v111_v35  ;;  %v12188_v47 = vld.sshfl [vmem:[#allocation1] sm:$0xff pattern:$0x73625140]  ;;  %v345_v35 = vld [vmem:[#allocation5 + $0x490] sm:$0xff] }
 0x107   :  { %v3017_v24 = vpop.f32.mrf.mxu2  ;;  %4475 = vmatpush.xpose.msrb.mxu3 %v326_v16  ;;  %4435 = vmatpush.xpose.msrb.mxu1 %v324_v21  ;;  %v12190_v51 = vld.sshfl [vmem:[#allocation1 + $0x18] sm:$0xff pattern:$0x73625140] }
 0x108   :  { %v3018_v22 = vadd.f32 %v3017_v24, %v2998_v17  ;;  %v3037_v25 = vpop.f32.mrf.mxu3  ;;  %v114_v17 = vld [vmem:[#allocation2 + $0x130] sm:$0xff] }
 0x109   :  { %v3057_v23 = vpop.f32.mrf.mxu0 }
 0x10a   :  { %v3038_v26 = vadd.f32 %v3037_v25, %v3018_v22  ;;  %v3077_v29 = vpop.f32.mrf.mxu1  ;;  %v342_v22 = vld [vmem:[#allocation5 + $0x478] sm:$0xff]  ;;  %v340_v25 = vld [vmem:[#allocation5 + $0x468] sm:$0xff] }
 0x10c   :  { %v3058_v37 = vadd.f32 %v3057_v23, %v3038_v26  ;;  %4376 = vmatmul.f32.vlgmr.msra.gmra.mxu2 %v12138_v30  ;;  %4336 = vmatmul.f32.vlgmr.msra.gmra.mxu0 %v12140_v43  ;;  %v12186_v30 = vld.sshfl [vmem:[#allocation1 + $0x10] sm:$0xff pattern:$0x73625140] }
 0x10d   :  { %4396 = vmatmul.f32.vlgmr.msra.gmra.mxu3 %v12142_v45  ;;  %4356 = vmatmul.f32.vlgmr.msra.gmra.mxu1 %v12144_v36  ;;  %v331_v45 = vld [vmem:[#allocation5 + $0x420] sm:$0xff]  ;;  %v12192_v36 = vld.sshfl [vmem:[#allocation1 + $0x8] sm:$0xff pattern:$0x73625140] }
 0x10e   :  { %v3078_v34 = vadd.f32 %v3077_v29, %v3058_v37  ;;  %4535 = vmatpush.xpose.msra.mxu2 %v329_v28  ;;  %4495 = vmatpush.xpose.msra.mxu0 %v327_v27  ;;  %997 = vst [vmem:[#allocation1] ss:$4 sm:$0xff] %v112_v48  ;;  %v12200_v63 = vld.sshfl [vmem:[#allocation1 + $0x20] sm:$0xff pattern:$0x73625140]  ;;  %v349_v48 = vld [vmem:[#allocation5 + $0x4b0] sm:$0xff] }
 0x10f   :  { %v3097_v41 = vpop.f32.mrf.mxu2  ;;  %4555 = vmatpush.xpose.msra.mxu3 %v330_v33  ;;  %4515 = vmatpush.xpose.msra.mxu1 %v328_v38  ;;  %v12202_v4 = vld.sshfl [vmem:[#allocation1 + $0x38] sm:$0xff pattern:$0x73625140] }
 0x110   :  { %v3098_v39 = vadd.f32 %v3097_v41, %v3078_v34  ;;  %v3117_v42 = vpop.f32.mrf.mxu3  ;;  %v115_v34 = vld [vmem:[#allocation2 + $0x138] sm:$0xff] }
 0x111   :  { %v3137_v40 = vpop.f32.mrf.mxu0 }
 0x112   :  { %v3118_v43 = vadd.f32 %v3117_v42, %v3098_v39  ;;  %v3157_v49 = vpop.f32.mrf.mxu1  ;;  %v346_v39 = vld [vmem:[#allocation5 + $0x498] sm:$0xff]  ;;  %v344_v42 = vld [vmem:[#allocation5 + $0x488] sm:$0xff] }
 0x114   :  { %v3138_v54 = vadd.f32 %v3137_v40, %v3118_v43  ;;  %4456 = vmatmul.f32.vlgmr.msrb.gmra.mxu2 %v12150_v44  ;;  %4416 = vmatmul.f32.vlgmr.msrb.gmra.mxu0 %v12152_v61  ;;  %v12198_v44 = vld.sshfl [vmem:[#allocation1 + $0x30] sm:$0xff pattern:$0x73625140] }
 0x115   :  { %4476 = vmatmul.f32.vlgmr.msrb.gmra.mxu3 %v12154_v62  ;;  %4436 = vmatmul.f32.vlgmr.msrb.gmra.mxu1 %v12156_v50  ;;  %v335_v62 = vld [vmem:[#allocation5 + $0x440] sm:$0xff]  ;;  %v12204_v50 = vld.sshfl [vmem:[#allocation1 + $0x28] sm:$0xff pattern:$0x73625140] }
 0x116   :  { %v3158_v53 = vadd.f32 %v3157_v49, %v3138_v54  ;;  %4615 = vmatpush.xpose.msrb.mxu2 %v333_v46  ;;  %4575 = vmatpush.xpose.msrb.mxu0 %v331_v45  ;;  %998 = vst [vmem:[#allocation1 + $0x20] ss:$4 sm:$0xff] %v113_v0  ;;  %v12212_v16 = vld.sshfl [vmem:[#allocation1] sm:$0xff pattern:$0x73625140]  ;;  %v353_v0 = vld [vmem:[#allocation5 + $0x4d0] sm:$0xff] }
 0x117   :  { %v3177_v58 = vpop.f32.mrf.mxu2  ;;  %4635 = vmatpush.xpose.msrb.mxu3 %v334_v52  ;;  %4595 = vmatpush.xpose.msrb.mxu1 %v332_v55  ;;  %v12214_v21 = vld.sshfl [vmem:[#allocation1 + $0x18] sm:$0xff pattern:$0x73625140] }
 0x118   :  { %v3178_v56 = vadd.f32 %v3177_v58, %v3158_v53  ;;  %v3197_v59 = vpop.f32.mrf.mxu3  ;;  %v116_v53 = vld [vmem:[#allocation2 + $0x140] sm:$0xff] }
 0x119   :  { %v3217_v57 = vpop.f32.mrf.mxu0 }
 0x11a   :  { %v3198_v61 = vadd.f32 %v3197_v59, %v3178_v56  ;;  %v3237_v3 = vpop.f32.mrf.mxu1  ;;  %v350_v56 = vld [vmem:[#allocation5 + $0x4b8] sm:$0xff]  ;;  %v348_v59 = vld [vmem:[#allocation5 + $0x4a8] sm:$0xff] }
 0x11c   :  { %v3218_v7 = vadd.f32 %v3217_v57, %v3198_v61  ;;  %4536 = vmatmul.f32.vlgmr.msra.gmra.mxu2 %v12162_v60  ;;  %4496 = vmatmul.f32.vlgmr.msra.gmra.mxu0 %v12164_v14  ;;  %v12210_v60 = vld.sshfl [vmem:[#allocation1 + $0x10] sm:$0xff pattern:$0x73625140] }
 0x11d   :  { %4556 = vmatmul.f32.vlgmr.msra.gmra.mxu3 %v12166_v15  ;;  %4516 = vmatmul.f32.vlgmr.msra.gmra.mxu1 %v12168_v2  ;;  %v339_v15 = vld [vmem:[#allocation5 + $0x460] sm:$0xff]  ;;  %v12216_v2 = vld.sshfl [vmem:[#allocation1 + $0x8] sm:$0xff pattern:$0x73625140] }
 0x11e   :  { %v3238_v6 = vadd.f32 %v3237_v3, %v3218_v7  ;;  %4695 = vmatpush.xpose.msra.mxu2 %v337_v1  ;;  %4655 = vmatpush.xpose.msra.mxu0 %v335_v62  ;;  %1007 = vst [vmem:[#allocation1] ss:$4 sm:$0xff] %v114_v17  ;;  %v12224_v33 = vld.sshfl [vmem:[#allocation1 + $0x20] sm:$0xff pattern:$0x73625140]  ;;  %v357_v17 = vld [vmem:[#allocation5 + $0x4f0] sm:$0xff] }
 0x11f   :  { %v3257_v11 = vpop.f32.mrf.mxu2  ;;  %4715 = vmatpush.xpose.msra.mxu3 %v338_v5  ;;  %4675 = vmatpush.xpose.msra.mxu1 %v336_v8  ;;  %v12226_v38 = vld.sshfl [vmem:[#allocation1 + $0x38] sm:$0xff pattern:$0x73625140] }
 0x120   :  { %v3258_v9 = vadd.f32 %v3257_v11, %v3238_v6  ;;  %v3277_v12 = vpop.f32.mrf.mxu3  ;;  %v117_v6 = vld [vmem:[#allocation2 + $0x148] sm:$0xff] }
 0x121   :  { %v3297_v10 = vpop.f32.mrf.mxu0 }
 0x122   :  { %v3278_v14 = vadd.f32 %v3277_v12, %v3258_v9  ;;  %v3317_v20 = vpop.f32.mrf.mxu1  ;;  %v354_v9 = vld [vmem:[#allocation5 + $0x4d8] sm:$0xff]  ;;  %v352_v12 = vld [vmem:[#allocation5 + $0x4c8] sm:$0xff] }
 0x124   :  { %v3298_v24 = vadd.f32 %v3297_v10, %v3278_v14  ;;  %4616 = vmatmul.f32.vlgmr.msrb.gmra.mxu2 %v12174_v13  ;;  %4576 = vmatmul.f32.vlgmr.msrb.gmra.mxu0 %v12176_v31  ;;  %v12222_v13 = vld.sshfl [vmem:[#allocation1 + $0x30] sm:$0xff pattern:$0x73625140] }
 0x125   :  { %4636 = vmatmul.f32.vlgmr.msrb.gmra.mxu3 %v12178_v32  ;;  %4596 = vmatmul.f32.vlgmr.msrb.gmra.mxu1 %v12180_v19  ;;  %v343_v32 = vld [vmem:[#allocation5 + $0x480] sm:$0xff]  ;;  %v12228_v19 = vld.sshfl [vmem:[#allocation1 + $0x28] sm:$0xff pattern:$0x73625140] }
 0x126   :  { %v3318_v23 = vadd.f32 %v3317_v20, %v3298_v24  ;;  %4775 = vmatpush.xpose.msrb.mxu2 %v341_v18  ;;  %4735 = vmatpush.xpose.msrb.mxu0 %v339_v15  ;;  %1008 = vst [vmem:[#allocation1 + $0x20] ss:$4 sm:$0xff] %v115_v34  ;;  %v12236_v52 = vld.sshfl [vmem:[#allocation1] sm:$0xff pattern:$0x73625140]  ;;  %v361_v34 = vld [vmem:[#allocation5 + $0x510] sm:$0xff] }
 0x127   :  { %v3337_v28 = vpop.f32.mrf.mxu2  ;;  %4795 = vmatpush.xpose.msrb.mxu3 %v342_v22  ;;  %4755 = vmatpush.xpose.msrb.mxu1 %v340_v25  ;;  %v12238_v55 = vld.sshfl [vmem:[#allocation1 + $0x18] sm:$0xff pattern:$0x73625140] }
 0x128   :  { %v3338_v26 = vadd.f32 %v3337_v28, %v3318_v23  ;;  %v3357_v29 = vpop.f32.mrf.mxu3  ;;  %v118_v23 = vld [vmem:[#allocation2 + $0x150] sm:$0xff] }
 0x129   :  { %v3377_v27 = vpop.f32.mrf.mxu0 }
 0x12a   :  { %v3358_v31 = vadd.f32 %v3357_v29, %v3338_v26  ;;  %v3397_v37 = vpop.f32.mrf.mxu1  ;;  %v358_v26 = vld [vmem:[#allocation5 + $0x4f8] sm:$0xff]  ;;  %v356_v29 = vld [vmem:[#allocation5 + $0x4e8] sm:$0xff] }
 0x12c   :  { %v3378_v41 = vadd.f32 %v3377_v27, %v3358_v31  ;;  %4696 = vmatmul.f32.vlgmr.msra.gmra.mxu2 %v12186_v30  ;;  %4656 = vmatmul.f32.vlgmr.msra.gmra.mxu0 %v12188_v47  ;;  %v12234_v30 = vld.sshfl [vmem:[#allocation1 + $0x10] sm:$0xff pattern:$0x73625140] }
 0x12d   :  { %4716 = vmatmul.f32.vlgmr.msra.gmra.mxu3 %v12190_v51  ;;  %4676 = vmatmul.f32.vlgmr.msra.gmra.mxu1 %v12192_v36  ;;  %v347_v51 = vld [vmem:[#allocation5 + $0x4a0] sm:$0xff]  ;;  %v12240_v36 = vld.sshfl [vmem:[#allocation1 + $0x8] sm:$0xff pattern:$0x73625140] }
 0x12e   :  { %v3398_v40 = vadd.f32 %v3397_v37, %v3378_v41  ;;  %4855 = vmatpush.xpose.msra.mxu2 %v345_v35  ;;  %4815 = vmatpush.xpose.msra.mxu0 %v343_v32  ;;  %1017 = vst [vmem:[#allocation1] ss:$4 sm:$0xff] %v116_v53  ;;  %v12248_v5 = vld.sshfl [vmem:[#allocation1 + $0x20] sm:$0xff pattern:$0x73625140]  ;;  %v365_v53 = vld [vmem:[#allocation5 + $0x530] sm:$0xff] }
 0x12f   :  { %v3417_v46 = vpop.f32.mrf.mxu2  ;;  %4875 = vmatpush.xpose.msra.mxu3 %v346_v39  ;;  %4835 = vmatpush.xpose.msra.mxu1 %v344_v42  ;;  %v12250_v8 = vld.sshfl [vmem:[#allocation1 + $0x38] sm:$0xff pattern:$0x73625140] }
 0x130   :  { %v3418_v43 = vadd.f32 %v3417_v46, %v3398_v40  ;;  %v3437_v49 = vpop.f32.mrf.mxu3  ;;  %v119_v40 = vld [vmem:[#allocation2 + $0x158] sm:$0xff] }
 0x131   :  { %v3457_v45 = vpop.f32.mrf.mxu0 }
 0x132   :  { %v3438_v47 = vadd.f32 %v3437_v49, %v3418_v43  ;;  %v3477_v54 = vpop.f32.mrf.mxu1  ;;  %v362_v43 = vld [vmem:[#allocation5 + $0x518] sm:$0xff]  ;;  %v360_v49 = vld [vmem:[#allocation5 + $0x508] sm:$0xff] }
 0x134   :  { %v3458_v58 = vadd.f32 %v3457_v45, %v3438_v47  ;;  %4776 = vmatmul.f32.vlgmr.msrb.gmra.mxu2 %v12198_v44  ;;  %4736 = vmatmul.f32.vlgmr.msrb.gmra.mxu0 %v12200_v63  ;;  %v12246_v44 = vld.sshfl [vmem:[#allocation1 + $0x30] sm:$0xff pattern:$0x73625140] }
 0x135   :  { %4796 = vmatmul.f32.vlgmr.msrb.gmra.mxu3 %v12202_v4  ;;  %4756 = vmatmul.f32.vlgmr.msrb.gmra.mxu1 %v12204_v50  ;;  %v351_v4 = vld [vmem:[#allocation5 + $0x4c0] sm:$0xff]  ;;  %v12252_v50 = vld.sshfl [vmem:[#allocation1 + $0x28] sm:$0xff pattern:$0x73625140] }
 0x136   :  { %v3478_v57 = vadd.f32 %v3477_v54, %v3458_v58  ;;  %4935 = vmatpush.xpose.msrb.mxu2 %v349_v48  ;;  %4895 = vmatpush.xpose.msrb.mxu0 %v347_v51  ;;  %1018 = vst [vmem:[#allocation1 + $0x20] ss:$4 sm:$0xff] %v117_v6  ;;  %v12260_v22 = vld.sshfl [vmem:[#allocation1] sm:$0xff pattern:$0x73625140]  ;;  %v369_v6 = vld [vmem:[#allocation5 + $0x550] sm:$0xff] }
 0x137   :  { %v3497_v1 = vpop.f32.mrf.mxu2  ;;  %4955 = vmatpush.xpose.msrb.mxu3 %v350_v56  ;;  %4915 = vmatpush.xpose.msrb.mxu1 %v348_v59  ;;  %v12262_v25 = vld.sshfl [vmem:[#allocation1 + $0x18] sm:$0xff pattern:$0x73625140] }
 0x138   :  { %v3498_v61 = vadd.f32 %v3497_v1, %v3478_v57  ;;  %v3517_v3 = vpop.f32.mrf.mxu3  ;;  %v120_v57 = vld [vmem:[#allocation2 + $0x160] sm:$0xff] }
 0x139   :  { %v3537_v62 = vpop.f32.mrf.mxu0 }
 0x13a   :  { %v3518_v63 = vadd.f32 %v3517_v3, %v3498_v61  ;;  %v3557_v7 = vpop.f32.mrf.mxu1  ;;  %v366_v61 = vld [vmem:[#allocation5 + $0x538] sm:$0xff]  ;;  %v364_v3 = vld [vmem:[#allocation5 + $0x528] sm:$0xff] }
 0x13c   :  { %v3538_v11 = vadd.f32 %v3537_v62, %v3518_v63  ;;  %4856 = vmatmul.f32.vlgmr.msra.gmra.mxu2 %v12210_v60  ;;  %4816 = vmatmul.f32.vlgmr.msra.gmra.mxu0 %v12212_v16  ;;  %v12258_v60 = vld.sshfl [vmem:[#allocation1 + $0x10] sm:$0xff pattern:$0x73625140] }
 0x13d   :  { %4876 = vmatmul.f32.vlgmr.msra.gmra.mxu3 %v12214_v21  ;;  %4836 = vmatmul.f32.vlgmr.msra.gmra.mxu1 %v12216_v2  ;;  %v355_v21 = vld [vmem:[#allocation5 + $0x4e0] sm:$0xff]  ;;  %v12264_v2 = vld.sshfl [vmem:[#allocation1 + $0x8] sm:$0xff pattern:$0x73625140] }
 0x13e   :  { %v3558_v10 = vadd.f32 %v3557_v7, %v3538_v11  ;;  %5015 = vmatpush.xpose.msra.mxu2 %v353_v0  ;;  %4975 = vmatpush.xpose.msra.mxu0 %v351_v4  ;;  %1027 = vst [vmem:[#allocation1] ss:$4 sm:$0xff] %v118_v23  ;;  %v12272_v39 = vld.sshfl [vmem:[#allocation1 + $0x20] sm:$0xff pattern:$0x73625140]  ;;  %v373_v23 = vld [vmem:[#allocation5 + $0x570] sm:$0xff] }
 0x13f   :  { %v3577_v18 = vpop.f32.mrf.mxu2  ;;  %5035 = vmatpush.xpose.msra.mxu3 %v354_v9  ;;  %4995 = vmatpush.xpose.msra.mxu1 %v352_v12  ;;  %v12274_v42 = vld.sshfl [vmem:[#allocation1 + $0x38] sm:$0xff pattern:$0x73625140] }
 0x140   :  { %v3578_v14 = vadd.f32 %v3577_v18, %v3558_v10  ;;  %v3597_v20 = vpop.f32.mrf.mxu3  ;;  %v121_v10 = vld [vmem:[#allocation2 + $0x168] sm:$0xff] }
 0x141   :  { %v3617_v15 = vpop.f32.mrf.mxu0 }
 0x142   :  { %v3598_v16 = vadd.f32 %v3597_v20, %v3578_v14  ;;  %v3637_v24 = vpop.f32.mrf.mxu1  ;;  %v370_v14 = vld [vmem:[#allocation5 + $0x558] sm:$0xff]  ;;  %v368_v20 = vld [vmem:[#allocation5 + $0x548] sm:$0xff] }
 0x144   :  { %v3618_v28 = vadd.f32 %v3617_v15, %v3598_v16  ;;  %4936 = vmatmul.f32.vlgmr.msrb.gmra.mxu2 %v12222_v13  ;;  %4896 = vmatmul.f32.vlgmr.msrb.gmra.mxu0 %v12224_v33  ;;  %v12270_v13 = vld.sshfl [vmem:[#allocation1 + $0x30] sm:$0xff pattern:$0x73625140] }
 0x145   :  { %4956 = vmatmul.f32.vlgmr.msrb.gmra.mxu3 %v12226_v38  ;;  %4916 = vmatmul.f32.vlgmr.msrb.gmra.mxu1 %v12228_v19  ;;  %v359_v38 = vld [vmem:[#allocation5 + $0x500] sm:$0xff]  ;;  %v12276_v19 = vld.sshfl [vmem:[#allocation1 + $0x28] sm:$0xff pattern:$0x73625140] }
 0x146   :  { %v3638_v27 = vadd.f32 %v3637_v24, %v3618_v28  ;;  %5095 = vmatpush.xpose.msrb.mxu2 %v357_v17  ;;  %5055 = vmatpush.xpose.msrb.mxu0 %v355_v21  ;;  %1028 = vst [vmem:[#allocation1 + $0x20] ss:$4 sm:$0xff] %v119_v40  ;;  %v12284_v56 = vld.sshfl [vmem:[#allocation1] sm:$0xff pattern:$0x73625140]  ;;  %v377_v40 = vld [vmem:[#allocation5 + $0x590] sm:$0xff] }
 0x147   :  { %v3657_v35 = vpop.f32.mrf.mxu2  ;;  %5115 = vmatpush.xpose.msrb.mxu3 %v358_v26  ;;  %5075 = vmatpush.xpose.msrb.mxu1 %v356_v29  ;;  %v12286_v59 = vld.sshfl [vmem:[#allocation1 + $0x18] sm:$0xff pattern:$0x73625140] }
 0x148   :  { %v3658_v31 = vadd.f32 %v3657_v35, %v3638_v27  ;;  %v3677_v37 = vpop.f32.mrf.mxu3  ;;  %v122_v27 = vld [vmem:[#allocation2 + $0x170] sm:$0xff] }
 0x149   :  { %v3697_v32 = vpop.f32.mrf.mxu0 }
 0x14a   :  { %v3678_v33 = vadd.f32 %v3677_v37, %v3658_v31  ;;  %v3717_v41 = vpop.f32.mrf.mxu1  ;;  %v374_v31 = vld [vmem:[#allocation5 + $0x578] sm:$0xff]  ;;  %v372_v37 = vld [vmem:[#allocation5 + $0x568] sm:$0xff] }
 0x14c   :  { %v3698_v46 = vadd.f32 %v3697_v32, %v3678_v33  ;;  %5016 = vmatmul.f32.vlgmr.msra.gmra.mxu2 %v12234_v30  ;;  %4976 = vmatmul.f32.vlgmr.msra.gmra.mxu0 %v12236_v52  ;;  %v12282_v30 = vld.sshfl [vmem:[#allocation1 + $0x10] sm:$0xff pattern:$0x73625140] }
 0x14d   :  { %5036 = vmatmul.f32.vlgmr.msra.gmra.mxu3 %v12238_v55  ;;  %4996 = vmatmul.f32.vlgmr.msra.gmra.mxu1 %v12240_v36  ;;  %v363_v55 = vld [vmem:[#allocation5 + $0x520] sm:$0xff]  ;;  %v12288_v36 = vld.sshfl [vmem:[#allocation1 + $0x8] sm:$0xff pattern:$0x73625140] }
 0x14e   :  { %v3718_v45 = vadd.f32 %v3717_v41, %v3698_v46  ;;  %5175 = vmatpush.xpose.msra.mxu2 %v361_v34  ;;  %5135 = vmatpush.xpose.msra.mxu0 %v359_v38  ;;  %1037 = vst [vmem:[#allocation1] ss:$4 sm:$0xff] %v120_v57  ;;  %v12296_v9 = vld.sshfl [vmem:[#allocation1 + $0x20] sm:$0xff pattern:$0x73625140]  ;;  %v381_v57 = vld [vmem:[#allocation5 + $0x5b0] sm:$0xff] }
 0x14f   :  { %v3737_v48 = vpop.f32.mrf.mxu2  ;;  %5195 = vmatpush.xpose.msra.mxu3 %v362_v43  ;;  %5155 = vmatpush.xpose.msra.mxu1 %v360_v49  ;;  %v12298_v12 = vld.sshfl [vmem:[#allocation1 + $0x38] sm:$0xff pattern:$0x73625140] }
 0x150   :  { %v3738_v47 = vadd.f32 %v3737_v48, %v3718_v45  ;;  %v3757_v54 = vpop.f32.mrf.mxu3  ;;  %v123_v45 = vld [vmem:[#allocation2 + $0x178] sm:$0xff] }
 0x151   :  { %v3777_v51 = vpop.f32.mrf.mxu0 }
 0x152   :  { %v3758_v52 = vadd.f32 %v3757_v54, %v3738_v47  ;;  %v3797_v58 = vpop.f32.mrf.mxu1  ;;  %v378_v47 = vld [vmem:[#allocation5 + $0x598] sm:$0xff]  ;;  %v376_v54 = vld [vmem:[#allocation5 + $0x588] sm:$0xff] }
 0x154   :  { %v3778_v1 = vadd.f32 %v3777_v51, %v3758_v52  ;;  %5096 = vmatmul.f32.vlgmr.msrb.gmra.mxu2 %v12246_v44  ;;  %5056 = vmatmul.f32.vlgmr.msrb.gmra.mxu0 %v12248_v5  ;;  %v12294_v44 = vld.sshfl [vmem:[#allocation1 + $0x30] sm:$0xff pattern:$0x73625140] }
 0x155   :  { %5116 = vmatmul.f32.vlgmr.msrb.gmra.mxu3 %v12250_v8  ;;  %5076 = vmatmul.f32.vlgmr.msrb.gmra.mxu1 %v12252_v50  ;;  %v367_v8 = vld [vmem:[#allocation5 + $0x540] sm:$0xff]  ;;  %v12300_v50 = vld.sshfl [vmem:[#allocation1 + $0x28] sm:$0xff pattern:$0x73625140] }
 0x156   :  { %v3798_v62 = vadd.f32 %v3797_v58, %v3778_v1  ;;  %5255 = vmatpush.xpose.msrb.mxu2 %v365_v53  ;;  %5215 = vmatpush.xpose.msrb.mxu0 %v363_v55  ;;  %1038 = vst [vmem:[#allocation1 + $0x20] ss:$4 sm:$0xff] %v121_v10  ;;  %v12308_v26 = vld.sshfl [vmem:[#allocation1] sm:$0xff pattern:$0x73625140]  ;;  %v385_v10 = vld [vmem:[#allocation5 + $0x5d0] sm:$0xff] }
 0x157   :  { %v3817_v0 = vpop.f32.mrf.mxu2  ;;  %5275 = vmatpush.xpose.msrb.mxu3 %v366_v61  ;;  %5235 = vmatpush.xpose.msrb.mxu1 %v364_v3  ;;  %v12310_v29 = vld.sshfl [vmem:[#allocation1 + $0x18] sm:$0xff pattern:$0x73625140] }
 0x158   :  { %v3818_v63 = vadd.f32 %v3817_v0, %v3798_v62  ;;  %v3837_v7 = vpop.f32.mrf.mxu3  ;;  %v124_v62 = vld [vmem:[#allocation2 + $0x180] sm:$0xff] }
 0x159   :  { %v3857_v4 = vpop.f32.mrf.mxu0 }
 0x15a   :  { %v3838_v5 = vadd.f32 %v3837_v7, %v3818_v63  ;;  %v3877_v11 = vpop.f32.mrf.mxu1  ;;  %v382_v63 = vld [vmem:[#allocation5 + $0x5b8] sm:$0xff]  ;;  %v380_v7 = vld [vmem:[#allocation5 + $0x5a8] sm:$0xff] }
 0x15c   :  { %v3858_v18 = vadd.f32 %v3857_v4, %v3838_v5  ;;  %5176 = vmatmul.f32.vlgmr.msra.gmra.mxu2 %v12258_v60  ;;  %5136 = vmatmul.f32.vlgmr.msra.gmra.mxu0 %v12260_v22  ;;  %v12306_v60 = vld.sshfl [vmem:[#allocation1 + $0x10] sm:$0xff pattern:$0x73625140] }
 0x15d   :  { %5196 = vmatmul.f32.vlgmr.msra.gmra.mxu3 %v12262_v25  ;;  %5156 = vmatmul.f32.vlgmr.msra.gmra.mxu1 %v12264_v2  ;;  %v371_v25 = vld [vmem:[#allocation5 + $0x560] sm:$0xff]  ;;  %v12312_v2 = vld.sshfl [vmem:[#allocation1 + $0x8] sm:$0xff pattern:$0x73625140] }
 0x15e   :  { %v3878_v15 = vadd.f32 %v3877_v11, %v3858_v18  ;;  %5335 = vmatpush.xpose.msra.mxu2 %v369_v6  ;;  %5295 = vmatpush.xpose.msra.mxu0 %v367_v8  ;;  %1047 = vst [vmem:[#allocation1] ss:$4 sm:$0xff] %v122_v27  ;;  %v12320_v43 = vld.sshfl [vmem:[#allocation1 + $0x20] sm:$0xff pattern:$0x73625140]  ;;  %v389_v27 = vld [vmem:[#allocation5 + $0x5f0] sm:$0xff] }
 0x15f   :  { %v3897_v17 = vpop.f32.mrf.mxu2  ;;  %5355 = vmatpush.xpose.msra.mxu3 %v370_v14  ;;  %5315 = vmatpush.xpose.msra.mxu1 %v368_v20  ;;  %v12322_v49 = vld.sshfl [vmem:[#allocation1 + $0x38] sm:$0xff pattern:$0x73625140] }
 0x160   :  { %v3898_v16 = vadd.f32 %v3897_v17, %v3878_v15  ;;  %v3917_v24 = vpop.f32.mrf.mxu3  ;;  %v125_v15 = vld [vmem:[#allocation2 + $0x188] sm:$0xff] }
 0x161   :  { %v3937_v21 = vpop.f32.mrf.mxu0 }
 0x162   :  { %v3918_v22 = vadd.f32 %v3917_v24, %v3898_v16  ;;  %v3957_v28 = vpop.f32.mrf.mxu1  ;;  %v386_v16 = vld [vmem:[#allocation5 + $0x5d8] sm:$0xff]  ;;  %v384_v24 = vld [vmem:[#allocation5 + $0x5c8] sm:$0xff] }
 0x164   :  { %v3938_v35 = vadd.f32 %v3937_v21, %v3918_v22  ;;  %5256 = vmatmul.f32.vlgmr.msrb.gmra.mxu2 %v12270_v13  ;;  %5216 = vmatmul.f32.vlgmr.msrb.gmra.mxu0 %v12272_v39  ;;  %v12318_v13 = vld.sshfl [vmem:[#allocation1 + $0x30] sm:$0xff pattern:$0x73625140] }
 0x165   :  { %5276 = vmatmul.f32.vlgmr.msrb.gmra.mxu3 %v12274_v42  ;;  %5236 = vmatmul.f32.vlgmr.msrb.gmra.mxu1 %v12276_v19  ;;  %v375_v42 = vld [vmem:[#allocation5 + $0x580] sm:$0xff]  ;;  %v12324_v19 = vld.sshfl [vmem:[#allocation1 + $0x28] sm:$0xff pattern:$0x73625140] }
 0x166   :  { %v3958_v32 = vadd.f32 %v3957_v28, %v3938_v35  ;;  %5415 = vmatpush.xpose.msrb.mxu2 %v373_v23  ;;  %5375 = vmatpush.xpose.msrb.mxu0 %v371_v25  ;;  %1048 = vst [vmem:[#allocation1 + $0x20] ss:$4 sm:$0xff] %v123_v45  ;;  %v12332_v61 = vld.sshfl [vmem:[#allocation1] sm:$0xff pattern:$0x73625140]  ;;  %v393_v45 = vld [vmem:[#allocation5 + $0x610] sm:$0xff] }
 0x167   :  { %v3977_v34 = vpop.f32.mrf.mxu2  ;;  %5435 = vmatpush.xpose.msrb.mxu3 %v374_v31  ;;  %5395 = vmatpush.xpose.msrb.mxu1 %v372_v37  ;;  %v12334_v3 = vld.sshfl [vmem:[#allocation1 + $0x18] sm:$0xff pattern:$0x73625140] }
 0x168   :  { %v3978_v33 = vadd.f32 %v3977_v34, %v3958_v32  ;;  %v3997_v41 = vpop.f32.mrf.mxu3  ;;  %v126_v32 = vld [vmem:[#allocation2 + $0x190] sm:$0xff] }
 0x169   :  { %v4017_v38 = vpop.f32.mrf.mxu0 }
 0x16a   :  { %v3998_v39 = vadd.f32 %v3997_v41, %v3978_v33  ;;  %v4037_v46 = vpop.f32.mrf.mxu1  ;;  %v390_v33 = vld [vmem:[#allocation5 + $0x5f8] sm:$0xff]  ;;  %v388_v41 = vld [vmem:[#allocation5 + $0x5e8] sm:$0xff] }
 0x16c   :  { %v4018_v48 = vadd.f32 %v4017_v38, %v3998_v39  ;;  %5336 = vmatmul.f32.vlgmr.msra.gmra.mxu2 %v12282_v30  ;;  %5296 = vmatmul.f32.vlgmr.msra.gmra.mxu0 %v12284_v56  ;;  %v12330_v30 = vld.sshfl [vmem:[#allocation1 + $0x10] sm:$0xff pattern:$0x73625140] }
 0x16d   :  { %5356 = vmatmul.f32.vlgmr.msra.gmra.mxu3 %v12286_v59  ;;  %5316 = vmatmul.f32.vlgmr.msra.gmra.mxu1 %v12288_v36  ;;  %v379_v59 = vld [vmem:[#allocation5 + $0x5a0] sm:$0xff]  ;;  %v12336_v36 = vld.sshfl [vmem:[#allocation1 + $0x8] sm:$0xff pattern:$0x73625140] }
 0x16e   :  { %v4038_v51 = vadd.f32 %v4037_v46, %v4018_v48  ;;  %5495 = vmatpush.xpose.msra.mxu2 %v377_v40  ;;  %5455 = vmatpush.xpose.msra.mxu0 %v375_v42  ;;  %1057 = vst [vmem:[#allocation1] ss:$4 sm:$0xff] %v124_v62  ;;  %v12344_v14 = vld.sshfl [vmem:[#allocation1 + $0x20] sm:$0xff pattern:$0x73625140]  ;;  %v397_v62 = vld [vmem:[#allocation5 + $0x630] sm:$0xff] }
 0x16f   :  { %v4057_v53 = vpop.f32.mrf.mxu2  ;;  %5515 = vmatpush.xpose.msra.mxu3 %v378_v47  ;;  %5475 = vmatpush.xpose.msra.mxu1 %v376_v54  ;;  %v12346_v20 = vld.sshfl [vmem:[#allocation1 + $0x38] sm:$0xff pattern:$0x73625140] }
 0x170   :  { %v4058_v52 = vadd.f32 %v4057_v53, %v4038_v51  ;;  %v4077_v58 = vpop.f32.mrf.mxu3  ;;  %v127_v51 = vld [vmem:[#allocation2 + $0x198] sm:$0xff] }
 0x171   :  { %v4097_v55 = vpop.f32.mrf.mxu0 }
 0x172   :  { %v4078_v56 = vadd.f32 %v4077_v58, %v4058_v52  ;;  %v4117_v1 = vpop.f32.mrf.mxu1  ;;  %v394_v52 = vld [vmem:[#allocation5 + $0x618] sm:$0xff]  ;;  %v392_v58 = vld [vmem:[#allocation5 + $0x608] sm:$0xff] }
 0x174   :  { %v4098_v0 = vadd.f32 %v4097_v55, %v4078_v56  ;;  %5416 = vmatmul.f32.vlgmr.msrb.gmra.mxu2 %v12294_v44  ;;  %5376 = vmatmul.f32.vlgmr.msrb.gmra.mxu0 %v12296_v9  ;;  %v12342_v44 = vld.sshfl [vmem:[#allocation1 + $0x30] sm:$0xff pattern:$0x73625140] }
 0x175   :  { %5436 = vmatmul.f32.vlgmr.msrb.gmra.mxu3 %v12298_v12  ;;  %5396 = vmatmul.f32.vlgmr.msrb.gmra.mxu1 %v12300_v50  ;;  %v383_v12 = vld [vmem:[#allocation5 + $0x5c0] sm:$0xff]  ;;  %v12348_v50 = vld.sshfl [vmem:[#allocation1 + $0x28] sm:$0xff pattern:$0x73625140] }
 0x176   :  { %v4118_v4 = vadd.f32 %v4117_v1, %v4098_v0  ;;  %5575 = vmatpush.xpose.msrb.mxu2 %v381_v57  ;;  %5535 = vmatpush.xpose.msrb.mxu0 %v379_v59  ;;  %1058 = vst [vmem:[#allocation1 + $0x20] ss:$4 sm:$0xff] %v125_v15  ;;  %v12356_v31 = vld.sshfl [vmem:[#allocation1] sm:$0xff pattern:$0x73625140]  ;;  %v401_v15 = vld [vmem:[#allocation5 + $0x650] sm:$0xff] }
 0x177   :  { %v4137_v6 = vpop.f32.mrf.mxu2  ;;  %5595 = vmatpush.xpose.msrb.mxu3 %v382_v63  ;;  %5555 = vmatpush.xpose.msrb.mxu1 %v380_v7  ;;  %v12358_v37 = vld.sshfl [vmem:[#allocation1 + $0x18] sm:$0xff pattern:$0x73625140] }
 0x178   :  { %v4138_v5 = vadd.f32 %v4137_v6, %v4118_v4  ;;  %v4157_v11 = vpop.f32.mrf.mxu3  ;;  %v128_v4 = vld [vmem:[#allocation2 + $0x1a0] sm:$0xff] }
 0x179   :  { %v4177_v8 = vpop.f32.mrf.mxu0 }
 0x17a   :  { %v4158_v9 = vadd.f32 %v4157_v11, %v4138_v5  ;;  %v4197_v18 = vpop.f32.mrf.mxu1  ;;  %v398_v5 = vld [vmem:[#allocation5 + $0x638] sm:$0xff]  ;;  %v396_v11 = vld [vmem:[#allocation5 + $0x628] sm:$0xff] }
 0x17c   :  { %v4178_v17 = vadd.f32 %v4177_v8, %v4158_v9  ;;  %5496 = vmatmul.f32.vlgmr.msra.gmra.mxu2 %v12306_v60  ;;  %5456 = vmatmul.f32.vlgmr.msra.gmra.mxu0 %v12308_v26  ;;  %v12354_v60 = vld.sshfl [vmem:[#allocation1 + $0x10] sm:$0xff pattern:$0x73625140] }
 0x17d   :  { %5516 = vmatmul.f32.vlgmr.msra.gmra.mxu3 %v12310_v29  ;;  %5476 = vmatmul.f32.vlgmr.msra.gmra.mxu1 %v12312_v2  ;;  %v387_v29 = vld [vmem:[#allocation5 + $0x5e0] sm:$0xff]  ;;  %v12360_v2 = vld.sshfl [vmem:[#allocation1 + $0x8] sm:$0xff pattern:$0x73625140] }
 0x17e   :  { %v4198_v21 = vadd.f32 %v4197_v18, %v4178_v17  ;;  %5655 = vmatpush.xpose.msra.mxu2 %v385_v10  ;;  %5615 = vmatpush.xpose.msra.mxu0 %v383_v12  ;;  %1067 = vst [vmem:[#allocation1] ss:$4 sm:$0xff] %v126_v32  ;;  %v12368_v47 = vld.sshfl [vmem:[#allocation1 + $0x20] sm:$0xff pattern:$0x73625140]  ;;  %v405_v32 = vld [vmem:[#allocation5 + $0x670] sm:$0xff] }
 0x17f   :  { %v4217_v23 = vpop.f32.mrf.mxu2  ;;  %5675 = vmatpush.xpose.msra.mxu3 %v386_v16  ;;  %5635 = vmatpush.xpose.msra.mxu1 %v384_v24  ;;  %v12370_v54 = vld.sshfl [vmem:[#allocation1 + $0x38] sm:$0xff pattern:$0x73625140] }
 0x180   :  { %v4218_v22 = vadd.f32 %v4217_v23, %v4198_v21  ;;  %v4237_v28 = vpop.f32.mrf.mxu3  ;;  %v129_v21 = vld [vmem:[#allocation2 + $0x1a8] sm:$0xff] }
 0x181   :  { %v4257_v25 = vpop.f32.mrf.mxu0 }
 0x182   :  { %v4238_v26 = vadd.f32 %v4237_v28, %v4218_v22  ;;  %v4277_v35 = vpop.f32.mrf.mxu1  ;;  %v402_v22 = vld [vmem:[#allocation5 + $0x658] sm:$0xff]  ;;  %v400_v28 = vld [vmem:[#allocation5 + $0x648] sm:$0xff] }
 0x184   :  { %v4258_v34 = vadd.f32 %v4257_v25, %v4238_v26  ;;  %5576 = vmatmul.f32.vlgmr.msrb.gmra.mxu2 %v12318_v13  ;;  %5536 = vmatmul.f32.vlgmr.msrb.gmra.mxu0 %v12320_v43  ;;  %v12366_v13 = vld.sshfl [vmem:[#allocation1 + $0x30] sm:$0xff pattern:$0x73625140] }
 0x185   :  { %5596 = vmatmul.f32.vlgmr.msrb.gmra.mxu3 %v12322_v49  ;;  %5556 = vmatmul.f32.vlgmr.msrb.gmra.mxu1 %v12324_v19  ;;  %v391_v49 = vld [vmem:[#allocation5 + $0x600] sm:$0xff]  ;;  %v12372_v19 = vld.sshfl [vmem:[#allocation1 + $0x28] sm:$0xff pattern:$0x73625140] }
 0x186   :  { %v4278_v38 = vadd.f32 %v4277_v35, %v4258_v34  ;;  %5735 = vmatpush.xpose.msrb.mxu2 %v389_v27  ;;  %5695 = vmatpush.xpose.msrb.mxu0 %v387_v29  ;;  %1068 = vst [vmem:[#allocation1 + $0x20] ss:$4 sm:$0xff] %v127_v51  ;;  %v12380_v63 = vld.sshfl [vmem:[#allocation1] sm:$0xff pattern:$0x73625140]  ;;  %v409_v51 = vld [vmem:[#allocation5 + $0x690] sm:$0xff] }
 0x187   :  { %v4297_v40 = vpop.f32.mrf.mxu2  ;;  %5755 = vmatpush.xpose.msrb.mxu3 %v390_v33  ;;  %5715 = vmatpush.xpose.msrb.mxu1 %v388_v41  ;;  %v12382_v7 = vld.sshfl [vmem:[#allocation1 + $0x18] sm:$0xff pattern:$0x73625140] }
 0x188   :  { %v4298_v39 = vadd.f32 %v4297_v40, %v4278_v38  ;;  %v4317_v46 = vpop.f32.mrf.mxu3  ;;  %v130_v38 = vld [vmem:[#allocation2 + $0x1b0] sm:$0xff] }
 0x189   :  { %v4337_v42 = vpop.f32.mrf.mxu0 }
 0x18a   :  { %v4318_v43 = vadd.f32 %v4317_v46, %v4298_v39  ;;  %v4357_v48 = vpop.f32.mrf.mxu1  ;;  %v406_v39 = vld [vmem:[#allocation5 + $0x678] sm:$0xff]  ;;  %v404_v46 = vld [vmem:[#allocation5 + $0x668] sm:$0xff] }
 0x18c   :  { %v4338_v53 = vadd.f32 %v4337_v42, %v4318_v43  ;;  %5656 = vmatmul.f32.vlgmr.msra.gmra.mxu2 %v12330_v30  ;;  %5616 = vmatmul.f32.vlgmr.msra.gmra.mxu0 %v12332_v61  ;;  %v12378_v30 = vld.sshfl [vmem:[#allocation1 + $0x10] sm:$0xff pattern:$0x73625140] }
 0x18d   :  { %5676 = vmatmul.f32.vlgmr.msra.gmra.mxu3 %v12334_v3  ;;  %5636 = vmatmul.f32.vlgmr.msra.gmra.mxu1 %v12336_v36  ;;  %v395_v3 = vld [vmem:[#allocation5 + $0x620] sm:$0xff]  ;;  %v12384_v36 = vld.sshfl [vmem:[#allocation1 + $0x8] sm:$0xff pattern:$0x73625140] }
 0x18e   :  { %v4358_v55 = vadd.f32 %v4357_v48, %v4338_v53  ;;  %5815 = vmatpush.xpose.msra.mxu2 %v393_v45  ;;  %5775 = vmatpush.xpose.msra.mxu0 %v391_v49  ;;  %1077 = vst [vmem:[#allocation1] ss:$4 sm:$0xff] %v128_v4  ;;  %v12392_v16 = vld.sshfl [vmem:[#allocation1 + $0x20] sm:$0xff pattern:$0x73625140]  ;;  %v413_v4 = vld [vmem:[#allocation5 + $0x6b0] sm:$0xff] }
 0x18f   :  { %v4377_v57 = vpop.f32.mrf.mxu2  ;;  %5835 = vmatpush.xpose.msra.mxu3 %v394_v52  ;;  %5795 = vmatpush.xpose.msra.mxu1 %v392_v58  ;;  %v12394_v24 = vld.sshfl [vmem:[#allocation1 + $0x38] sm:$0xff pattern:$0x73625140] }
 0x190   :  { %v4378_v56 = vadd.f32 %v4377_v57, %v4358_v55  ;;  %v4397_v1 = vpop.f32.mrf.mxu3  ;;  %v131_v55 = vld [vmem:[#allocation2 + $0x1b8] sm:$0xff] }
 0x191   :  { %v4417_v59 = vpop.f32.mrf.mxu0 }
 0x192   :  { %v4398_v61 = vadd.f32 %v4397_v1, %v4378_v56  ;;  %v4437_v0 = vpop.f32.mrf.mxu1  ;;  %v410_v56 = vld [vmem:[#allocation5 + $0x698] sm:$0xff]  ;;  %v408_v1 = vld [vmem:[#allocation5 + $0x688] sm:$0xff] }
 0x194   :  { %v4418_v6 = vadd.f32 %v4417_v59, %v4398_v61  ;;  %5736 = vmatmul.f32.vlgmr.msrb.gmra.mxu2 %v12342_v44  ;;  %5696 = vmatmul.f32.vlgmr.msrb.gmra.mxu0 %v12344_v14  ;;  %v12390_v44 = vld.sshfl [vmem:[#allocation1 + $0x30] sm:$0xff pattern:$0x73625140] }
 0x195   :  { %5756 = vmatmul.f32.vlgmr.msrb.gmra.mxu3 %v12346_v20  ;;  %5716 = vmatmul.f32.vlgmr.msrb.gmra.mxu1 %v12348_v50  ;;  %v399_v20 = vld [vmem:[#allocation5 + $0x640] sm:$0xff]  ;;  %v12396_v50 = vld.sshfl [vmem:[#allocation1 + $0x28] sm:$0xff pattern:$0x73625140] }
 0x196   :  { %v4438_v8 = vadd.f32 %v4437_v0, %v4418_v6  ;;  %5895 = vmatpush.xpose.msrb.mxu2 %v397_v62  ;;  %5855 = vmatpush.xpose.msrb.mxu0 %v395_v3  ;;  %1078 = vst [vmem:[#allocation1 + $0x20] ss:$4 sm:$0xff] %v129_v21  ;;  %v12404_v33 = vld.sshfl [vmem:[#allocation1] sm:$0xff pattern:$0x73625140]  ;;  %v417_v21 = vld [vmem:[#allocation5 + $0x6d0] sm:$0xff] }
 0x197   :  { %v4457_v10 = vpop.f32.mrf.mxu2  ;;  %5915 = vmatpush.xpose.msrb.mxu3 %v398_v5  ;;  %5875 = vmatpush.xpose.msrb.mxu1 %v396_v11  ;;  %v12406_v41 = vld.sshfl [vmem:[#allocation1 + $0x18] sm:$0xff pattern:$0x73625140] }
 0x198   :  { %v4458_v9 = vadd.f32 %v4457_v10, %v4438_v8  ;;  %v4477_v18 = vpop.f32.mrf.mxu3  ;;  %v132_v8 = vld [vmem:[#allocation2 + $0x1c0] sm:$0xff] }
 0x199   :  { %v4497_v12 = vpop.f32.mrf.mxu0 }
 0x19a   :  { %v4478_v14 = vadd.f32 %v4477_v18, %v4458_v9  ;;  %v4517_v17 = vpop.f32.mrf.mxu1  ;;  %v414_v9 = vld [vmem:[#allocation5 + $0x6b8] sm:$0xff]  ;;  %v412_v18 = vld [vmem:[#allocation5 + $0x6a8] sm:$0xff] }
 0x19c   :  { %v4498_v23 = vadd.f32 %v4497_v12, %v4478_v14  ;;  %5816 = vmatmul.f32.vlgmr.msra.gmra.mxu2 %v12354_v60  ;;  %5776 = vmatmul.f32.vlgmr.msra.gmra.mxu0 %v12356_v31  ;;  %v12402_v60 = vld.sshfl [vmem:[#allocation1 + $0x10] sm:$0xff pattern:$0x73625140] }
 0x19d   :  { %5836 = vmatmul.f32.vlgmr.msra.gmra.mxu3 %v12358_v37  ;;  %5796 = vmatmul.f32.vlgmr.msra.gmra.mxu1 %v12360_v2  ;;  %v403_v37 = vld [vmem:[#allocation5 + $0x660] sm:$0xff]  ;;  %v12408_v2 = vld.sshfl [vmem:[#allocation1 + $0x8] sm:$0xff pattern:$0x73625140] }
 0x19e   :  { %v4518_v25 = vadd.f32 %v4517_v17, %v4498_v23  ;;  %5975 = vmatpush.xpose.msra.mxu2 %v401_v15  ;;  %5935 = vmatpush.xpose.msra.mxu0 %v399_v20  ;;  %1087 = vst [vmem:[#allocation1] ss:$4 sm:$0xff] %v130_v38  ;;  %v12416_v52 = vld.sshfl [vmem:[#allocation1 + $0x20] sm:$0xff pattern:$0x73625140]  ;;  %v421_v38 = vld [vmem:[#allocation5 + $0x6f0] sm:$0xff] }
 0x19f   :  { %v4537_v27 = vpop.f32.mrf.mxu2  ;;  %5995 = vmatpush.xpose.msra.mxu3 %v402_v22  ;;  %5955 = vmatpush.xpose.msra.mxu1 %v400_v28  ;;  %v12418_v58 = vld.sshfl [vmem:[#allocation1 + $0x38] sm:$0xff pattern:$0x73625140] }
 0x1a0   :  { %v4538_v26 = vadd.f32 %v4537_v27, %v4518_v25  ;;  %v4557_v35 = vpop.f32.mrf.mxu3  ;;  %v133_v25 = vld [vmem:[#allocation2 + $0x1c8] sm:$0xff] }
 0x1a1   :  { %v4577_v29 = vpop.f32.mrf.mxu0 }
 0x1a2   :  { %v4558_v31 = vadd.f32 %v4557_v35, %v4538_v26  ;;  %v4597_v34 = vpop.f32.mrf.mxu1  ;;  %v418_v26 = vld [vmem:[#allocation5 + $0x6d8] sm:$0xff]  ;;  %v416_v35 = vld [vmem:[#allocation5 + $0x6c8] sm:$0xff] }
 0x1a4   :  { %v4578_v40 = vadd.f32 %v4577_v29, %v4558_v31  ;;  %5896 = vmatmul.f32.vlgmr.msrb.gmra.mxu2 %v12366_v13  ;;  %5856 = vmatmul.f32.vlgmr.msrb.gmra.mxu0 %v12368_v47  ;;  %v12414_v13 = vld.sshfl [vmem:[#allocation1 + $0x30] sm:$0xff pattern:$0x73625140] }
 0x1a5   :  { %5916 = vmatmul.f32.vlgmr.msrb.gmra.mxu3 %v12370_v54  ;;  %5876 = vmatmul.f32.vlgmr.msrb.gmra.mxu1 %v12372_v19  ;;  %v407_v54 = vld [vmem:[#allocation5 + $0x680] sm:$0xff]  ;;  %v12420_v19 = vld.sshfl [vmem:[#allocation1 + $0x28] sm:$0xff pattern:$0x73625140] }
 0x1a6   :  { %v4598_v42 = vadd.f32 %v4597_v34, %v4578_v40  ;;  %6055 = vmatpush.xpose.msrb.mxu2 %v405_v32  ;;  %6015 = vmatpush.xpose.msrb.mxu0 %v403_v37  ;;  %1088 = vst [vmem:[#allocation1 + $0x20] ss:$4 sm:$0xff] %v131_v55  ;;  %v12428_v5 = vld.sshfl [vmem:[#allocation1] sm:$0xff pattern:$0x73625140]  ;;  %v425_v55 = vld [vmem:[#allocation5 + $0x710] sm:$0xff] }
 0x1a7   :  { %v4617_v45 = vpop.f32.mrf.mxu2  ;;  %6075 = vmatpush.xpose.msrb.mxu3 %v406_v39  ;;  %6035 = vmatpush.xpose.msrb.mxu1 %v404_v46  ;;  %v12430_v11 = vld.sshfl [vmem:[#allocation1 + $0x18] sm:$0xff pattern:$0x73625140] }
 0x1a8   :  { %v4618_v43 = vadd.f32 %v4617_v45, %v4598_v42  ;;  %v4637_v48 = vpop.f32.mrf.mxu3  ;;  %v134_v42 = vld [vmem:[#allocation2 + $0x1d0] sm:$0xff] }
 0x1a9   :  { %v4657_v49 = vpop.f32.mrf.mxu0 }
 0x1aa   :  { %v4638_v47 = vadd.f32 %v4637_v48, %v4618_v43  ;;  %v4677_v53 = vpop.f32.mrf.mxu1  ;;  %v422_v43 = vld [vmem:[#allocation5 + $0x6f8] sm:$0xff]  ;;  %v420_v48 = vld [vmem:[#allocation5 + $0x6e8] sm:$0xff] }
 0x1ac   :  { %v4658_v57 = vadd.f32 %v4657_v49, %v4638_v47  ;;  %5976 = vmatmul.f32.vlgmr.msra.gmra.mxu2 %v12378_v30  ;;  %5936 = vmatmul.f32.vlgmr.msra.gmra.mxu0 %v12380_v63  ;;  %v12426_v30 = vld.sshfl [vmem:[#allocation1 + $0x10] sm:$0xff pattern:$0x73625140] }
 0x1ad   :  { %5996 = vmatmul.f32.vlgmr.msra.gmra.mxu3 %v12382_v7  ;;  %5956 = vmatmul.f32.vlgmr.msra.gmra.mxu1 %v12384_v36  ;;  %v411_v7 = vld [vmem:[#allocation5 + $0x6a0] sm:$0xff]  ;;  %v12432_v36 = vld.sshfl [vmem:[#allocation1 + $0x8] sm:$0xff pattern:$0x73625140] }
 0x1ae   :  { %v4678_v59 = vadd.f32 %v4677_v53, %v4658_v57  ;;  %6135 = vmatpush.xpose.msra.mxu2 %v409_v51  ;;  %6095 = vmatpush.xpose.msra.mxu0 %v407_v54  ;;  %1097 = vst [vmem:[#allocation1] ss:$4 sm:$0xff] %v132_v8  ;;  %v12440_v22 = vld.sshfl [vmem:[#allocation1 + $0x20] sm:$0xff pattern:$0x73625140]  ;;  %v429_v8 = vld [vmem:[#allocation5 + $0x730] sm:$0xff] }
 0x1af   :  { %v4697_v62 = vpop.f32.mrf.mxu2  ;;  %6155 = vmatpush.xpose.msra.mxu3 %v410_v56  ;;  %6115 = vmatpush.xpose.msra.mxu1 %v408_v1  ;;  %v12442_v28 = vld.sshfl [vmem:[#allocation1 + $0x38] sm:$0xff pattern:$0x73625140] }
 0x1b0   :  { %v4698_v61 = vadd.f32 %v4697_v62, %v4678_v59  ;;  %v4717_v0 = vpop.f32.mrf.mxu3  ;;  %v135_v59 = vld [vmem:[#allocation2 + $0x1d8] sm:$0xff] }
 0x1b1   :  { %v4737_v3 = vpop.f32.mrf.mxu0 }
 0x1b2   :  { %v4718_v63 = vadd.f32 %v4717_v0, %v4698_v61  ;;  %v4757_v6 = vpop.f32.mrf.mxu1  ;;  %v426_v61 = vld [vmem:[#allocation5 + $0x718] sm:$0xff]  ;;  %v424_v0 = vld [vmem:[#allocation5 + $0x708] sm:$0xff] }
 0x1b4   :  { %v4738_v10 = vadd.f32 %v4737_v3, %v4718_v63  ;;  %6056 = vmatmul.f32.vlgmr.msrb.gmra.mxu2 %v12390_v44  ;;  %6016 = vmatmul.f32.vlgmr.msrb.gmra.mxu0 %v12392_v16  ;;  %v12438_v44 = vld.sshfl [vmem:[#allocation1 + $0x30] sm:$0xff pattern:$0x73625140] }
 0x1b5   :  { %6076 = vmatmul.f32.vlgmr.msrb.gmra.mxu3 %v12394_v24  ;;  %6036 = vmatmul.f32.vlgmr.msrb.gmra.mxu1 %v12396_v50  ;;  %v415_v24 = vld [vmem:[#allocation5 + $0x6c0] sm:$0xff]  ;;  %v12444_v50 = vld.sshfl [vmem:[#allocation1 + $0x28] sm:$0xff pattern:$0x73625140] }
 0x1b6   :  { %v4758_v12 = vadd.f32 %v4757_v6, %v4738_v10  ;;  %6215 = vmatpush.xpose.msrb.mxu2 %v413_v4  ;;  %6175 = vmatpush.xpose.msrb.mxu0 %v411_v7  ;;  %1098 = vst [vmem:[#allocation1 + $0x20] ss:$4 sm:$0xff] %v133_v25  ;;  %v12452_v39 = vld.sshfl [vmem:[#allocation1] sm:$0xff pattern:$0x73625140]  ;;  %v433_v25 = vld [vmem:[#allocation5 + $0x750] sm:$0xff] }
 0x1b7   :  { %v4777_v15 = vpop.f32.mrf.mxu2  ;;  %6235 = vmatpush.xpose.msrb.mxu3 %v414_v9  ;;  %6195 = vmatpush.xpose.msrb.mxu1 %v412_v18  ;;  %v12454_v46 = vld.sshfl [vmem:[#allocation1 + $0x18] sm:$0xff pattern:$0x73625140] }
 0x1b8   :  { %v4778_v14 = vadd.f32 %v4777_v15, %v4758_v12  ;;  %v4797_v17 = vpop.f32.mrf.mxu3  ;;  %v136_v12 = vld [vmem:[#allocation2 + $0x1e0] sm:$0xff] }
 0x1b9   :  { %v4817_v20 = vpop.f32.mrf.mxu0 }
 0x1ba   :  { %v4798_v16 = vadd.f32 %v4797_v17, %v4778_v14  ;;  %v4837_v23 = vpop.f32.mrf.mxu1  ;;  %v430_v14 = vld [vmem:[#allocation5 + $0x738] sm:$0xff]  ;;  %v428_v17 = vld [vmem:[#allocation5 + $0x728] sm:$0xff] }
 0x1bc   :  { %v4818_v27 = vadd.f32 %v4817_v20, %v4798_v16  ;;  %6136 = vmatmul.f32.vlgmr.msra.gmra.mxu2 %v12402_v60  ;;  %6096 = vmatmul.f32.vlgmr.msra.gmra.mxu0 %v12404_v33  ;;  %v12450_v60 = vld.sshfl [vmem:[#allocation1 + $0x10] sm:$0xff pattern:$0x73625140] }
 0x1bd   :  { %6156 = vmatmul.f32.vlgmr.msra.gmra.mxu3 %v12406_v41  ;;  %6116 = vmatmul.f32.vlgmr.msra.gmra.mxu1 %v12408_v2  ;;  %v419_v41 = vld [vmem:[#allocation5 + $0x6e0] sm:$0xff]  ;;  %v12456_v2 = vld.sshfl [vmem:[#allocation1 + $0x8] sm:$0xff pattern:$0x73625140] }
 0x1be   :  { %v4838_v29 = vadd.f32 %v4837_v23, %v4818_v27  ;;  %6295 = vmatpush.xpose.msra.mxu2 %v417_v21  ;;  %6255 = vmatpush.xpose.msra.mxu0 %v415_v24  ;;  %1107 = vst [vmem:[#allocation1] ss:$4 sm:$0xff] %v134_v42  ;;  %v12464_v56 = vld.sshfl [vmem:[#allocation1 + $0x20] sm:$0xff pattern:$0x73625140]  ;;  %v437_v42 = vld [vmem:[#allocation5 + $0x770] sm:$0xff] }
 0x1bf   :  { %v4857_v32 = vpop.f32.mrf.mxu2  ;;  %6315 = vmatpush.xpose.msra.mxu3 %v418_v26  ;;  %6275 = vmatpush.xpose.msra.mxu1 %v416_v35  ;;  %v12466_v1 = vld.sshfl [vmem:[#allocation1 + $0x38] sm:$0xff pattern:$0x73625140] }
 0x1c0   :  { %v4858_v31 = vadd.f32 %v4857_v32, %v4838_v29  ;;  %v4877_v34 = vpop.f32.mrf.mxu3  ;;  %v137_v29 = vld [vmem:[#allocation2 + $0x1e8] sm:$0xff] }
 0x1c1   :  { %v4897_v37 = vpop.f32.mrf.mxu0 }
 0x1c2   :  { %v4878_v33 = vadd.f32 %v4877_v34, %v4858_v31  ;;  %v4917_v40 = vpop.f32.mrf.mxu1  ;;  %v434_v31 = vld [vmem:[#allocation5 + $0x758] sm:$0xff]  ;;  %v432_v34 = vld [vmem:[#allocation5 + $0x748] sm:$0xff] }
 0x1c4   :  { %v4898_v45 = vadd.f32 %v4897_v37, %v4878_v33  ;;  %6216 = vmatmul.f32.vlgmr.msrb.gmra.mxu2 %v12414_v13  ;;  %6176 = vmatmul.f32.vlgmr.msrb.gmra.mxu0 %v12416_v52  ;;  %v12462_v13 = vld.sshfl [vmem:[#allocation1 + $0x30] sm:$0xff pattern:$0x73625140] }
 0x1c5   :  { %6236 = vmatmul.f32.vlgmr.msrb.gmra.mxu3 %v12418_v58  ;;  %6196 = vmatmul.f32.vlgmr.msrb.gmra.mxu1 %v12420_v19  ;;  %v423_v58 = vld [vmem:[#allocation5 + $0x700] sm:$0xff]  ;;  %v12468_v19 = vld.sshfl [vmem:[#allocation1 + $0x28] sm:$0xff pattern:$0x73625140] }
 0x1c6   :  { %v4918_v49 = vadd.f32 %v4917_v40, %v4898_v45  ;;  %6375 = vmatpush.xpose.msrb.mxu2 %v421_v38  ;;  %6335 = vmatpush.xpose.msrb.mxu0 %v419_v41  ;;  %1108 = vst [vmem:[#allocation1 + $0x20] ss:$4 sm:$0xff] %v135_v59  ;;  %v12476_v9 = vld.sshfl [vmem:[#allocation1] sm:$0xff pattern:$0x73625140]  ;;  %v441_v59 = vld [vmem:[#allocation5 + $0x790] sm:$0xff] }
 0x1c7   :  { %v4937_v51 = vpop.f32.mrf.mxu2  ;;  %6395 = vmatpush.xpose.msrb.mxu3 %v422_v43  ;;  %6355 = vmatpush.xpose.msrb.mxu1 %v420_v48  ;;  %v12478_v18 = vld.sshfl [vmem:[#allocation1 + $0x18] sm:$0xff pattern:$0x73625140] }
 0x1c8   :  { %v4938_v47 = vadd.f32 %v4937_v51, %v4918_v49  ;;  %v4957_v53 = vpop.f32.mrf.mxu3  ;;  %v138_v49 = vld [vmem:[#allocation2 + $0x1f0] sm:$0xff] }
 0x1c9   :  { %v4977_v54 = vpop.f32.mrf.mxu0 }
 0x1ca   :  { %v4958_v52 = vadd.f32 %v4957_v53, %v4938_v47  ;;  %v4997_v57 = vpop.f32.mrf.mxu1  ;;  %v438_v47 = vld [vmem:[#allocation5 + $0x778] sm:$0xff]  ;;  %v436_v53 = vld [vmem:[#allocation5 + $0x768] sm:$0xff] }
 0x1cc   :  { %v4978_v62 = vadd.f32 %v4977_v54, %v4958_v52  ;;  %6296 = vmatmul.f32.vlgmr.msra.gmra.mxu2 %v12426_v30  ;;  %6256 = vmatmul.f32.vlgmr.msra.gmra.mxu0 %v12428_v5  ;;  %v12474_v30 = vld.sshfl [vmem:[#allocation1 + $0x10] sm:$0xff pattern:$0x73625140] }
 0x1cd   :  { %6316 = vmatmul.f32.vlgmr.msra.gmra.mxu3 %v12430_v11  ;;  %6276 = vmatmul.f32.vlgmr.msra.gmra.mxu1 %v12432_v36  ;;  %v427_v11 = vld [vmem:[#allocation5 + $0x720] sm:$0xff]  ;;  %v12480_v36 = vld.sshfl [vmem:[#allocation1 + $0x8] sm:$0xff pattern:$0x73625140] }
 0x1ce   :  { %v4998_v3 = vadd.f32 %v4997_v57, %v4978_v62  ;;  %6455 = vmatpush.xpose.msra.mxu2 %v425_v55  ;;  %6415 = vmatpush.xpose.msra.mxu0 %v423_v58  ;;  %1117 = vst [vmem:[#allocation1] ss:$4 sm:$0xff] %v136_v12  ;;  %v12488_v26 = vld.sshfl [vmem:[#allocation1 + $0x20] sm:$0xff pattern:$0x73625140]  ;;  %v445_v12 = vld [vmem:[#allocation5 + $0x7b0] sm:$0xff] }
 0x1cf   :  { %v5017_v4 = vpop.f32.mrf.mxu2  ;;  %6475 = vmatpush.xpose.msra.mxu3 %v426_v61  ;;  %6435 = vmatpush.xpose.msra.mxu1 %v424_v0  ;;  %v12490_v35 = vld.sshfl [vmem:[#allocation1 + $0x38] sm:$0xff pattern:$0x73625140] }
 0x1d0   :  { %v5018_v63 = vadd.f32 %v5017_v4, %v4998_v3  ;;  %v5037_v6 = vpop.f32.mrf.mxu3  ;;  %v139_v3 = vld [vmem:[#allocation2 + $0x1f8] sm:$0xff] }
 0x1d1   :  { %v5057_v7 = vpop.f32.mrf.mxu0 }
 0x1d2   :  { %v5038_v5 = vadd.f32 %v5037_v6, %v5018_v63  ;;  %v5077_v10 = vpop.f32.mrf.mxu1  ;;  %v442_v63 = vld [vmem:[#allocation5 + $0x798] sm:$0xff]  ;;  %v440_v6 = vld [vmem:[#allocation5 + $0x788] sm:$0xff] }
 0x1d4   :  { %v5058_v15 = vadd.f32 %v5057_v7, %v5038_v5  ;;  %6376 = vmatmul.f32.vlgmr.msrb.gmra.mxu2 %v12438_v44  ;;  %6336 = vmatmul.f32.vlgmr.msrb.gmra.mxu0 %v12440_v22  ;;  %v12486_v44 = vld.sshfl [vmem:[#allocation1 + $0x30] sm:$0xff pattern:$0x73625140] }
 0x1d5   :  { %6396 = vmatmul.f32.vlgmr.msrb.gmra.mxu3 %v12442_v28  ;;  %6356 = vmatmul.f32.vlgmr.msrb.gmra.mxu1 %v12444_v50  ;;  %v431_v28 = vld [vmem:[#allocation5 + $0x740] sm:$0xff]  ;;  %v12492_v50 = vld.sshfl [vmem:[#allocation1 + $0x28] sm:$0xff pattern:$0x73625140] }
 0x1d6   :  { %v5078_v20 = vadd.f32 %v5077_v10, %v5058_v15  ;;  %6535 = vmatpush.xpose.msrb.mxu2 %v429_v8  ;;  %6495 = vmatpush.xpose.msrb.mxu0 %v427_v11  ;;  %1118 = vst [vmem:[#allocation1 + $0x20] ss:$4 sm:$0xff] %v137_v29  ;;  %v12500_v43 = vld.sshfl [vmem:[#allocation1] sm:$0xff pattern:$0x73625140]  ;;  %v449_v29 = vld [vmem:[#allocation5 + $0x7d0] sm:$0xff] }
 0x1d7   :  { %v5097_v21 = vpop.f32.mrf.mxu2  ;;  %6555 = vmatpush.xpose.msrb.mxu3 %v430_v14  ;;  %6515 = vmatpush.xpose.msrb.mxu1 %v428_v17  ;;  %v12502_v48 = vld.sshfl [vmem:[#allocation1 + $0x18] sm:$0xff pattern:$0x73625140] }
 0x1d8   :  { %v5098_v16 = vadd.f32 %v5097_v21, %v5078_v20  ;;  %v5117_v23 = vpop.f32.mrf.mxu3  ;;  %v140_v20 = vld [vmem:[#allocation2 + $0x200] sm:$0xff] }
 0x1d9   :  { %v5137_v24 = vpop.f32.mrf.mxu0 }
 0x1da   :  { %v5118_v22 = vadd.f32 %v5117_v23, %v5098_v16  ;;  %v5157_v27 = vpop.f32.mrf.mxu1  ;;  %v446_v16 = vld [vmem:[#allocation5 + $0x7b8] sm:$0xff]  ;;  %v444_v23 = vld [vmem:[#allocation5 + $0x7a8] sm:$0xff] }
 0x1dc   :  { %v5138_v32 = vadd.f32 %v5137_v24, %v5118_v22  ;;  %6456 = vmatmul.f32.vlgmr.msra.gmra.mxu2 %v12450_v60  ;;  %6416 = vmatmul.f32.vlgmr.msra.gmra.mxu0 %v12452_v39  ;;  %v12498_v60 = vld.sshfl [vmem:[#allocation1 + $0x10] sm:$0xff pattern:$0x73625140] }
 0x1dd   :  { %6476 = vmatmul.f32.vlgmr.msra.gmra.mxu3 %v12454_v46  ;;  %6436 = vmatmul.f32.vlgmr.msra.gmra.mxu1 %v12456_v2  ;;  %v435_v46 = vld [vmem:[#allocation5 + $0x760] sm:$0xff]  ;;  %v12504_v2 = vld.sshfl [vmem:[#allocation1 + $0x8] sm:$0xff pattern:$0x73625140] }
 0x1de   :  { %v5158_v37 = vadd.f32 %v5157_v27, %v5138_v32  ;;  %6615 = vmatpush.xpose.msra.mxu2 %v433_v25  ;;  %6575 = vmatpush.xpose.msra.mxu0 %v431_v28  ;;  %1127 = vst [vmem:[#allocation1] ss:$4 sm:$0xff] %v138_v49  ;;  %v12512_v61 = vld.sshfl [vmem:[#allocation1 + $0x20] sm:$0xff pattern:$0x73625140]  ;;  %v453_v49 = vld [vmem:[#allocation5 + $0x7f0] sm:$0xff] }
 0x1df   :  { %v5177_v38 = vpop.f32.mrf.mxu2  ;;  %6635 = vmatpush.xpose.msra.mxu3 %v434_v31  ;;  %6595 = vmatpush.xpose.msra.mxu1 %v432_v34  ;;  %v12514_v0 = vld.sshfl [vmem:[#allocation1 + $0x38] sm:$0xff pattern:$0x73625140] }
 0x1e0   :  { %v5178_v33 = vadd.f32 %v5177_v38, %v5158_v37  ;;  %v5197_v40 = vpop.f32.mrf.mxu3  ;;  %v141_v37 = vld [vmem:[#allocation2 + $0x208] sm:$0xff] }
 0x1e1   :  { %v5217_v41 = vpop.f32.mrf.mxu0 }
 0x1e2   :  { %v5198_v39 = vadd.f32 %v5197_v40, %v5178_v33  ;;  %v5237_v45 = vpop.f32.mrf.mxu1  ;;  %v450_v33 = vld [vmem:[#allocation5 + $0x7d8] sm:$0xff]  ;;  %v448_v40 = vld [vmem:[#allocation5 + $0x7c8] sm:$0xff] }
 0x1e4   :  { %v5218_v51 = vadd.f32 %v5217_v41, %v5198_v39  ;;  %6536 = vmatmul.f32.vlgmr.msrb.gmra.mxu2 %v12462_v13  ;;  %6496 = vmatmul.f32.vlgmr.msrb.gmra.mxu0 %v12464_v56  ;;  %v12510_v13 = vld.sshfl [vmem:[#allocation1 + $0x30] sm:$0xff pattern:$0x73625140] }
 0x1e5   :  { %6556 = vmatmul.f32.vlgmr.msrb.gmra.mxu3 %v12466_v1  ;;  %6516 = vmatmul.f32.vlgmr.msrb.gmra.mxu1 %v12468_v19  ;;  %v439_v1 = vld [vmem:[#allocation5 + $0x780] sm:$0xff]  ;;  %v12516_v19 = vld.sshfl [vmem:[#allocation1 + $0x28] sm:$0xff pattern:$0x73625140] }
 0x1e6   :  { %v5238_v54 = vadd.f32 %v5237_v45, %v5218_v51  ;;  %6695 = vmatpush.xpose.msrb.mxu2 %v437_v42  ;;  %6655 = vmatpush.xpose.msrb.mxu0 %v435_v46  ;;  %1128 = vst [vmem:[#allocation1 + $0x20] ss:$4 sm:$0xff] %v139_v3  ;;  %v12524_v14 = vld.sshfl [vmem:[#allocation1] sm:$0xff pattern:$0x73625140]  ;;  %v457_v3 = vld [vmem:[#allocation5 + $0x810] sm:$0xff] }
 0x1e7   :  { %v5257_v55 = vpop.f32.mrf.mxu2  ;;  %6715 = vmatpush.xpose.msrb.mxu3 %v438_v47  ;;  %6675 = vmatpush.xpose.msrb.mxu1 %v436_v53  ;;  %v12526_v17 = vld.sshfl [vmem:[#allocation1 + $0x18] sm:$0xff pattern:$0x73625140] }
 0x1e8   :  { %v5258_v52 = vadd.f32 %v5257_v55, %v5238_v54  ;;  %v5277_v57 = vpop.f32.mrf.mxu3  ;;  %v142_v54 = vld [vmem:[#allocation2 + $0x210] sm:$0xff] }
 0x1e9   :  { %v5297_v58 = vpop.f32.mrf.mxu0 }
 0x1ea   :  { %v5278_v56 = vadd.f32 %v5277_v57, %v5258_v52  ;;  %v5317_v62 = vpop.f32.mrf.mxu1  ;;  %v454_v52 = vld [vmem:[#allocation5 + $0x7f8] sm:$0xff]  ;;  %v452_v57 = vld [vmem:[#allocation5 + $0x7e8] sm:$0xff] }
 0x1ec   :  { %v5298_v4 = vadd.f32 %v5297_v58, %v5278_v56  ;;  %6616 = vmatmul.f32.vlgmr.msra.gmra.mxu2 %v12474_v30  ;;  %6576 = vmatmul.f32.vlgmr.msra.gmra.mxu0 %v12476_v9  ;;  %v12522_v30 = vld.sshfl [vmem:[#allocation1 + $0x10] sm:$0xff pattern:$0x73625140] }
 0x1ed   :  { %6636 = vmatmul.f32.vlgmr.msra.gmra.mxu3 %v12478_v18  ;;  %6596 = vmatmul.f32.vlgmr.msra.gmra.mxu1 %v12480_v36  ;;  %v443_v18 = vld [vmem:[#allocation5 + $0x7a0] sm:$0xff]  ;;  %v12528_v36 = vld.sshfl [vmem:[#allocation1 + $0x8] sm:$0xff pattern:$0x73625140] }
 0x1ee   :  { %v5318_v7 = vadd.f32 %v5317_v62, %v5298_v4  ;;  %6775 = vmatpush.xpose.msra.mxu2 %v441_v59  ;;  %6735 = vmatpush.xpose.msra.mxu0 %v439_v1  ;;  %1137 = vst [vmem:[#allocation1] ss:$4 sm:$0xff] %v140_v20  ;;  %v12536_v31 = vld.sshfl [vmem:[#allocation1 + $0x20] sm:$0xff pattern:$0x73625140]  ;;  %v461_v20 = vld [vmem:[#allocation5 + $0x830] sm:$0xff] }
 0x1ef   :  { %v5337_v8 = vpop.f32.mrf.mxu2  ;;  %6795 = vmatpush.xpose.msra.mxu3 %v442_v63  ;;  %6755 = vmatpush.xpose.msra.mxu1 %v440_v6  ;;  %v12538_v34 = vld.sshfl [vmem:[#allocation1 + $0x38] sm:$0xff pattern:$0x73625140] }
 0x1f0   :  { %v5338_v5 = vadd.f32 %v5337_v8, %v5318_v7  ;;  %v5357_v10 = vpop.f32.mrf.mxu3  ;;  %v143_v7 = vld [vmem:[#allocation2 + $0x218] sm:$0xff] }
 0x1f1   :  { %v5377_v11 = vpop.f32.mrf.mxu0 }
 0x1f2   :  { %v5358_v9 = vadd.f32 %v5357_v10, %v5338_v5  ;;  %v5397_v15 = vpop.f32.mrf.mxu1  ;;  %v458_v5 = vld [vmem:[#allocation5 + $0x818] sm:$0xff]  ;;  %v456_v10 = vld [vmem:[#allocation5 + $0x808] sm:$0xff] }
 0x1f4   :  { %v5378_v21 = vadd.f32 %v5377_v11, %v5358_v9  ;;  %6696 = vmatmul.f32.vlgmr.msrb.gmra.mxu2 %v12486_v44  ;;  %6656 = vmatmul.f32.vlgmr.msrb.gmra.mxu0 %v12488_v26  ;;  %v12534_v44 = vld.sshfl [vmem:[#allocation1 + $0x30] sm:$0xff pattern:$0x73625140] }
 0x1f5   :  { %6716 = vmatmul.f32.vlgmr.msrb.gmra.mxu3 %v12490_v35  ;;  %6676 = vmatmul.f32.vlgmr.msrb.gmra.mxu1 %v12492_v50  ;;  %v447_v35 = vld [vmem:[#allocation5 + $0x7c0] sm:$0xff]  ;;  %v12540_v50 = vld.sshfl [vmem:[#allocation1 + $0x28] sm:$0xff pattern:$0x73625140] }
 0x1f6   :  { %v5398_v24 = vadd.f32 %v5397_v15, %v5378_v21  ;;  %6855 = vmatpush.xpose.msrb.mxu2 %v445_v12  ;;  %6815 = vmatpush.xpose.msrb.mxu0 %v443_v18  ;;  %1138 = vst [vmem:[#allocation1 + $0x20] ss:$4 sm:$0xff] %v141_v37  ;;  %v12548_v47 = vld.sshfl [vmem:[#allocation1] sm:$0xff pattern:$0x73625140]  ;;  %v465_v37 = vld [vmem:[#allocation5 + $0x850] sm:$0xff] }
 0x1f7   :  { %v5417_v25 = vpop.f32.mrf.mxu2  ;;  %6875 = vmatpush.xpose.msrb.mxu3 %v446_v16  ;;  %6835 = vmatpush.xpose.msrb.mxu1 %v444_v23  ;;  %v12550_v53 = vld.sshfl [vmem:[#allocation1 + $0x18] sm:$0xff pattern:$0x73625140] }
 0x1f8   :  { %v5418_v22 = vadd.f32 %v5417_v25, %v5398_v24  ;;  %v5437_v27 = vpop.f32.mrf.mxu3  ;;  %v144_v24 = vld [vmem:[#allocation2 + $0x220] sm:$0xff] }
 0x1f9   :  { %v5457_v28 = vpop.f32.mrf.mxu0 }
 0x1fa   :  { %v5438_v26 = vadd.f32 %v5437_v27, %v5418_v22  ;;  %v5477_v32 = vpop.f32.mrf.mxu1  ;;  %v462_v22 = vld [vmem:[#allocation5 + $0x838] sm:$0xff]  ;;  %v460_v27 = vld [vmem:[#allocation5 + $0x828] sm:$0xff] }
 0x1fc   :  { %v5458_v38 = vadd.f32 %v5457_v28, %v5438_v26  ;;  %6776 = vmatmul.f32.vlgmr.msra.gmra.mxu2 %v12498_v60  ;;  %6736 = vmatmul.f32.vlgmr.msra.gmra.mxu0 %v12500_v43  ;;  %v12546_v60 = vld.sshfl [vmem:[#allocation1 + $0x10] sm:$0xff pattern:$0x73625140] }
 0x1fd   :  { %6796 = vmatmul.f32.vlgmr.msra.gmra.mxu3 %v12502_v48  ;;  %6756 = vmatmul.f32.vlgmr.msra.gmra.mxu1 %v12504_v2  ;;  %v451_v48 = vld [vmem:[#allocation5 + $0x7e0] sm:$0xff]  ;;  %v12552_v2 = vld.sshfl [vmem:[#allocation1 + $0x8] sm:$0xff pattern:$0x73625140] }
 0x1fe   :  { %v5478_v41 = vadd.f32 %v5477_v32, %v5458_v38  ;;  %6935 = vmatpush.xpose.msra.mxu2 %v449_v29  ;;  %6895 = vmatpush.xpose.msra.mxu0 %v447_v35  ;;  %1147 = vst [vmem:[#allocation1] ss:$4 sm:$0xff] %v142_v54  ;;  %v12560_v63 = vld.sshfl [vmem:[#allocation1 + $0x20] sm:$0xff pattern:$0x73625140]  ;;  %v469_v54 = vld [vmem:[#allocation5 + $0x870] sm:$0xff] }
 0x1ff   :  { %v5497_v42 = vpop.f32.mrf.mxu2  ;;  %6955 = vmatpush.xpose.msra.mxu3 %v450_v33  ;;  %6915 = vmatpush.xpose.msra.mxu1 %v448_v40  ;;  %v12562_v6 = vld.sshfl [vmem:[#allocation1 + $0x38] sm:$0xff pattern:$0x73625140] }
 0x200   :  { %v5498_v39 = vadd.f32 %v5497_v42, %v5478_v41  ;;  %v5517_v45 = vpop.f32.mrf.mxu3  ;;  %v145_v41 = vld [vmem:[#allocation2 + $0x228] sm:$0xff] }
 0x201   :  { %v5537_v46 = vpop.f32.mrf.mxu0 }
 0x202   :  { %v5518_v43 = vadd.f32 %v5517_v45, %v5498_v39  ;;  %v5557_v51 = vpop.f32.mrf.mxu1  ;;  %v466_v39 = vld [vmem:[#allocation5 + $0x858] sm:$0xff]  ;;  %v464_v45 = vld [vmem:[#allocation5 + $0x848] sm:$0xff] }
 0x204   :  { %v5538_v55 = vadd.f32 %v5537_v46, %v5518_v43  ;;  %6856 = vmatmul.f32.vlgmr.msrb.gmra.mxu2 %v12510_v13  ;;  %6816 = vmatmul.f32.vlgmr.msrb.gmra.mxu0 %v12512_v61  ;;  %v12558_v13 = vld.sshfl [vmem:[#allocation1 + $0x30] sm:$0xff pattern:$0x73625140] }
 0x205   :  { %6876 = vmatmul.f32.vlgmr.msrb.gmra.mxu3 %v12514_v0  ;;  %6836 = vmatmul.f32.vlgmr.msrb.gmra.mxu1 %v12516_v19  ;;  %v455_v0 = vld [vmem:[#allocation5 + $0x800] sm:$0xff]  ;;  %v12564_v19 = vld.sshfl [vmem:[#allocation1 + $0x28] sm:$0xff pattern:$0x73625140] }
 0x206   :  { %v5558_v58 = vadd.f32 %v5557_v51, %v5538_v55  ;;  %7015 = vmatpush.xpose.msrb.mxu2 %v453_v49  ;;  %6975 = vmatpush.xpose.msrb.mxu0 %v451_v48  ;;  %1148 = vst [vmem:[#allocation1 + $0x20] ss:$4 sm:$0xff] %v143_v7  ;;  %v12572_v16 = vld.sshfl [vmem:[#allocation1] sm:$0xff pattern:$0x73625140]  ;;  %v473_v7 = vld [vmem:[#allocation5 + $0x890] sm:$0xff] }
 0x207   :  { %v5577_v59 = vpop.f32.mrf.mxu2  ;;  %7035 = vmatpush.xpose.msrb.mxu3 %v454_v52  ;;  %6995 = vmatpush.xpose.msrb.mxu1 %v452_v57  ;;  %v12574_v23 = vld.sshfl [vmem:[#allocation1 + $0x18] sm:$0xff pattern:$0x73625140] }
 0x208   :  { %v5578_v56 = vadd.f32 %v5577_v59, %v5558_v58  ;;  %v5597_v62 = vpop.f32.mrf.mxu3  ;;  %v146_v58 = vld [vmem:[#allocation2 + $0x230] sm:$0xff] }
 0x209   :  { %v5617_v1 = vpop.f32.mrf.mxu0 }
 0x20a   :  { %v5598_v61 = vadd.f32 %v5597_v62, %v5578_v56  ;;  %v5637_v4 = vpop.f32.mrf.mxu1  ;;  %v470_v56 = vld [vmem:[#allocation5 + $0x878] sm:$0xff]  ;;  %v468_v62 = vld [vmem:[#allocation5 + $0x868] sm:$0xff] }
 0x20c   :  { %v5618_v8 = vadd.f32 %v5617_v1, %v5598_v61  ;;  %6936 = vmatmul.f32.vlgmr.msra.gmra.mxu2 %v12522_v30  ;;  %6896 = vmatmul.f32.vlgmr.msra.gmra.mxu0 %v12524_v14  ;;  %v12570_v30 = vld.sshfl [vmem:[#allocation1 + $0x10] sm:$0xff pattern:$0x73625140] }
 0x20d   :  { %6956 = vmatmul.f32.vlgmr.msra.gmra.mxu3 %v12526_v17  ;;  %6916 = vmatmul.f32.vlgmr.msra.gmra.mxu1 %v12528_v36  ;;  %v459_v17 = vld [vmem:[#allocation5 + $0x820] sm:$0xff]  ;;  %v12576_v36 = vld.sshfl [vmem:[#allocation1 + $0x8] sm:$0xff pattern:$0x73625140] }
 0x20e   :  { %v5638_v11 = vadd.f32 %v5637_v4, %v5618_v8  ;;  %7095 = vmatpush.xpose.msra.mxu2 %v457_v3  ;;  %7055 = vmatpush.xpose.msra.mxu0 %v455_v0  ;;  %1157 = vst [vmem:[#allocation1] ss:$4 sm:$0xff] %v144_v24  ;;  %v12584_v33 = vld.sshfl [vmem:[#allocation1 + $0x20] sm:$0xff pattern:$0x73625140]  ;;  %v477_v24 = vld [vmem:[#allocation5 + $0x8b0] sm:$0xff] }
 0x20f   :  { %v5657_v12 = vpop.f32.mrf.mxu2  ;;  %7115 = vmatpush.xpose.msra.mxu3 %v458_v5  ;;  %7075 = vmatpush.xpose.msra.mxu1 %v456_v10  ;;  %v12586_v40 = vld.sshfl [vmem:[#allocation1 + $0x38] sm:$0xff pattern:$0x73625140] }
 0x210   :  { %v5658_v9 = vadd.f32 %v5657_v12, %v5638_v11  ;;  %v5677_v15 = vpop.f32.mrf.mxu3  ;;  %v147_v11 = vld [vmem:[#allocation2 + $0x238] sm:$0xff] }
 0x211   :  { %v5697_v18 = vpop.f32.mrf.mxu0 }
 0x212   :  { %v5678_v14 = vadd.f32 %v5677_v15, %v5658_v9  ;;  %v5717_v21 = vpop.f32.mrf.mxu1  ;;  %v474_v9 = vld [vmem:[#allocation5 + $0x898] sm:$0xff]  ;;  %v472_v15 = vld [vmem:[#allocation5 + $0x888] sm:$0xff] }
 0x214   :  { %v5698_v25 = vadd.f32 %v5697_v18, %v5678_v14  ;;  %7016 = vmatmul.f32.vlgmr.msrb.gmra.mxu2 %v12534_v44  ;;  %6976 = vmatmul.f32.vlgmr.msrb.gmra.mxu0 %v12536_v31  ;;  %v12582_v44 = vld.sshfl [vmem:[#allocation1 + $0x30] sm:$0xff pattern:$0x73625140] }
 0x215   :  { %7036 = vmatmul.f32.vlgmr.msrb.gmra.mxu3 %v12538_v34  ;;  %6996 = vmatmul.f32.vlgmr.msrb.gmra.mxu1 %v12540_v50  ;;  %v463_v34 = vld [vmem:[#allocation5 + $0x840] sm:$0xff]  ;;  %v12588_v50 = vld.sshfl [vmem:[#allocation1 + $0x28] sm:$0xff pattern:$0x73625140] }
 0x216   :  { %v5718_v28 = vadd.f32 %v5717_v21, %v5698_v25  ;;  %7175 = vmatpush.xpose.msrb.mxu2 %v461_v20  ;;  %7135 = vmatpush.xpose.msrb.mxu0 %v459_v17  ;;  %1158 = vst [vmem:[#allocation1 + $0x20] ss:$4 sm:$0xff] %v145_v41  ;;  %v12596_v52 = vld.sshfl [vmem:[#allocation1] sm:$0xff pattern:$0x73625140]  ;;  %v481_v41 = vld [vmem:[#allocation5 + $0x8d0] sm:$0xff] }
 0x217   :  { %v5737_v29 = vpop.f32.mrf.mxu2  ;;  %7195 = vmatpush.xpose.msrb.mxu3 %v462_v22  ;;  %7155 = vmatpush.xpose.msrb.mxu1 %v460_v27  ;;  %v12598_v57 = vld.sshfl [vmem:[#allocation1 + $0x18] sm:$0xff pattern:$0x73625140] }
 0x218   :  { %v5738_v26 = vadd.f32 %v5737_v29, %v5718_v28  ;;  %v5757_v32 = vpop.f32.mrf.mxu3  ;;  %v148_v28 = vld [vmem:[#allocation2 + $0x240] sm:$0xff] }
 0x219   :  { %v5777_v35 = vpop.f32.mrf.mxu0 }
 0x21a   :  { %v5758_v31 = vadd.f32 %v5757_v32, %v5738_v26  ;;  %v5797_v38 = vpop.f32.mrf.mxu1  ;;  %v478_v26 = vld [vmem:[#allocation5 + $0x8b8] sm:$0xff]  ;;  %v476_v32 = vld [vmem:[#allocation5 + $0x8a8] sm:$0xff] }
 0x21c   :  { %v5778_v42 = vadd.f32 %v5777_v35, %v5758_v31  ;;  %7096 = vmatmul.f32.vlgmr.msra.gmra.mxu2 %v12546_v60  ;;  %7056 = vmatmul.f32.vlgmr.msra.gmra.mxu0 %v12548_v47  ;;  %v12594_v60 = vld.sshfl [vmem:[#allocation1 + $0x10] sm:$0xff pattern:$0x73625140] }
 0x21d   :  { %7116 = vmatmul.f32.vlgmr.msra.gmra.mxu3 %v12550_v53  ;;  %7076 = vmatmul.f32.vlgmr.msra.gmra.mxu1 %v12552_v2  ;;  %v467_v53 = vld [vmem:[#allocation5 + $0x860] sm:$0xff]  ;;  %v12600_v2 = vld.sshfl [vmem:[#allocation1 + $0x8] sm:$0xff pattern:$0x73625140] }
 0x21e   :  { %v5798_v46 = vadd.f32 %v5797_v38, %v5778_v42  ;;  %7255 = vmatpush.xpose.msra.mxu2 %v465_v37  ;;  %7215 = vmatpush.xpose.msra.mxu0 %v463_v34  ;;  %1167 = vst [vmem:[#allocation1] ss:$4 sm:$0xff] %v146_v58  ;;  %v12608_v5 = vld.sshfl [vmem:[#allocation1 + $0x20] sm:$0xff pattern:$0x73625140]  ;;  %v485_v58 = vld [vmem:[#allocation5 + $0x8f0] sm:$0xff] }
 0x21f   :  { %v5817_v49 = vpop.f32.mrf.mxu2  ;;  %7275 = vmatpush.xpose.msra.mxu3 %v466_v39  ;;  %7235 = vmatpush.xpose.msra.mxu1 %v464_v45  ;;  %v12610_v10 = vld.sshfl [vmem:[#allocation1 + $0x38] sm:$0xff pattern:$0x73625140] }
 0x220   :  { %v5818_v43 = vadd.f32 %v5817_v49, %v5798_v46  ;;  %v5837_v51 = vpop.f32.mrf.mxu3  ;;  %v149_v46 = vld [vmem:[#allocation2 + $0x248] sm:$0xff] }
 0x221   :  { %v5857_v48 = vpop.f32.mrf.mxu0 }
 0x222   :  { %v5838_v47 = vadd.f32 %v5837_v51, %v5818_v43  ;;  %v5877_v55 = vpop.f32.mrf.mxu1  ;;  %v482_v43 = vld [vmem:[#allocation5 + $0x8d8] sm:$0xff]  ;;  %v480_v51 = vld [vmem:[#allocation5 + $0x8c8] sm:$0xff] }
 0x224   :  { %v5858_v59 = vadd.f32 %v5857_v48, %v5838_v47  ;;  %7176 = vmatmul.f32.vlgmr.msrb.gmra.mxu2 %v12558_v13  ;;  %7136 = vmatmul.f32.vlgmr.msrb.gmra.mxu0 %v12560_v63  ;;  %v12606_v13 = vld.sshfl [vmem:[#allocation1 + $0x30] sm:$0xff pattern:$0x73625140] }
 0x225   :  { %7196 = vmatmul.f32.vlgmr.msrb.gmra.mxu3 %v12562_v6  ;;  %7156 = vmatmul.f32.vlgmr.msrb.gmra.mxu1 %v12564_v19  ;;  %v471_v6 = vld [vmem:[#allocation5 + $0x880] sm:$0xff]  ;;  %v12612_v19 = vld.sshfl [vmem:[#allocation1 + $0x28] sm:$0xff pattern:$0x73625140] }
 0x226   :  { %v5878_v1 = vadd.f32 %v5877_v55, %v5858_v59  ;;  %7335 = vmatpush.xpose.msrb.mxu2 %v469_v54  ;;  %7295 = vmatpush.xpose.msrb.mxu0 %v467_v53  ;;  %1168 = vst [vmem:[#allocation1 + $0x20] ss:$4 sm:$0xff] %v147_v11  ;;  %v12620_v22 = vld.sshfl [vmem:[#allocation1] sm:$0xff pattern:$0x73625140]  ;;  %v489_v11 = vld [vmem:[#allocation5 + $0x910] sm:$0xff] }
 0x227   :  { %v5897_v3 = vpop.f32.mrf.mxu2  ;;  %7355 = vmatpush.xpose.msrb.mxu3 %v470_v56  ;;  %7315 = vmatpush.xpose.msrb.mxu1 %v468_v62  ;;  %v12622_v27 = vld.sshfl [vmem:[#allocation1 + $0x18] sm:$0xff pattern:$0x73625140] }
 0x228   :  { %v5898_v61 = vadd.f32 %v5897_v3, %v5878_v1  ;;  %v5917_v4 = vpop.f32.mrf.mxu3  ;;  %v150_v1 = vld [vmem:[#allocation2 + $0x250] sm:$0xff] }
 0x229   :  { %v5937_v0 = vpop.f32.mrf.mxu0 }
 0x22a   :  { %v5918_v63 = vadd.f32 %v5917_v4, %v5898_v61  ;;  %v5957_v8 = vpop.f32.mrf.mxu1  ;;  %v486_v61 = vld [vmem:[#allocation5 + $0x8f8] sm:$0xff]  ;;  %v484_v4 = vld [vmem:[#allocation5 + $0x8e8] sm:$0xff] }
 0x22c   :  { %v5938_v12 = vadd.f32 %v5937_v0, %v5918_v63  ;;  %7256 = vmatmul.f32.vlgmr.msra.gmra.mxu2 %v12570_v30  ;;  %7216 = vmatmul.f32.vlgmr.msra.gmra.mxu0 %v12572_v16  ;;  %v12618_v30 = vld.sshfl [vmem:[#allocation1 + $0x10] sm:$0xff pattern:$0x73625140] }
 0x22d   :  { %7276 = vmatmul.f32.vlgmr.msra.gmra.mxu3 %v12574_v23  ;;  %7236 = vmatmul.f32.vlgmr.msra.gmra.mxu1 %v12576_v36  ;;  %v475_v23 = vld [vmem:[#allocation5 + $0x8a0] sm:$0xff]  ;;  %v12624_v36 = vld.sshfl [vmem:[#allocation1 + $0x8] sm:$0xff pattern:$0x73625140] }
 0x22e   :  { %v5958_v18 = vadd.f32 %v5957_v8, %v5938_v12  ;;  %7415 = vmatpush.xpose.msra.mxu2 %v473_v7  ;;  %7375 = vmatpush.xpose.msra.mxu0 %v471_v6  ;;  %1177 = vst [vmem:[#allocation1] ss:$4 sm:$0xff] %v148_v28  ;;  %v12632_v39 = vld.sshfl [vmem:[#allocation1 + $0x20] sm:$0xff pattern:$0x73625140]  ;;  %v493_v28 = vld [vmem:[#allocation5 + $0x930] sm:$0xff] }
 0x22f   :  { %v5977_v20 = vpop.f32.mrf.mxu2  ;;  %7435 = vmatpush.xpose.msra.mxu3 %v474_v9  ;;  %7395 = vmatpush.xpose.msra.mxu1 %v472_v15  ;;  %v12634_v45 = vld.sshfl [vmem:[#allocation1 + $0x38] sm:$0xff pattern:$0x73625140] }
 0x230   :  { %v5978_v14 = vadd.f32 %v5977_v20, %v5958_v18  ;;  %v5997_v21 = vpop.f32.mrf.mxu3  ;;  %v151_v18 = vld [vmem:[#allocation2 + $0x258] sm:$0xff] }
 0x231   :  { %v6017_v17 = vpop.f32.mrf.mxu0 }
 0x232   :  { %v5998_v16 = vadd.f32 %v5997_v21, %v5978_v14  ;;  %v6037_v25 = vpop.f32.mrf.mxu1  ;;  %v490_v14 = vld [vmem:[#allocation5 + $0x918] sm:$0xff]  ;;  %v488_v21 = vld [vmem:[#allocation5 + $0x908] sm:$0xff] }
 0x234   :  { %v6018_v29 = vadd.f32 %v6017_v17, %v5998_v16  ;;  %7336 = vmatmul.f32.vlgmr.msrb.gmra.mxu2 %v12582_v44  ;;  %7296 = vmatmul.f32.vlgmr.msrb.gmra.mxu0 %v12584_v33  ;;  %v12630_v44 = vld.sshfl [vmem:[#allocation1 + $0x30] sm:$0xff pattern:$0x73625140] }
 0x235   :  { %7356 = vmatmul.f32.vlgmr.msrb.gmra.mxu3 %v12586_v40  ;;  %7316 = vmatmul.f32.vlgmr.msrb.gmra.mxu1 %v12588_v50  ;;  %v479_v40 = vld [vmem:[#allocation5 + $0x8c0] sm:$0xff]  ;;  %v12636_v50 = vld.sshfl [vmem:[#allocation1 + $0x28] sm:$0xff pattern:$0x73625140] }
 0x236   :  { %v6038_v35 = vadd.f32 %v6037_v25, %v6018_v29  ;;  %7495 = vmatpush.xpose.msrb.mxu2 %v477_v24  ;;  %7455 = vmatpush.xpose.msrb.mxu0 %v475_v23  ;;  %1178 = vst [vmem:[#allocation1 + $0x20] ss:$4 sm:$0xff] %v149_v46  ;;  %v12644_v56 = vld.sshfl [vmem:[#allocation1] sm:$0xff pattern:$0x73625140]  ;;  %v497_v46 = vld [vmem:[#allocation5 + $0x950] sm:$0xff] }
 0x237   :  { %v6057_v37 = vpop.f32.mrf.mxu2  ;;  %7515 = vmatpush.xpose.msrb.mxu3 %v478_v26  ;;  %7475 = vmatpush.xpose.msrb.mxu1 %v476_v32  ;;  %v12646_v62 = vld.sshfl [vmem:[#allocation1 + $0x18] sm:$0xff pattern:$0x73625140] }
 0x238   :  { %v6058_v31 = vadd.f32 %v6057_v37, %v6038_v35  ;;  %v6077_v38 = vpop.f32.mrf.mxu3  ;;  %v152_v35 = vld [vmem:[#allocation2 + $0x260] sm:$0xff] }
 0x239   :  { %v6097_v34 = vpop.f32.mrf.mxu0 }
 0x23a   :  { %v6078_v33 = vadd.f32 %v6077_v38, %v6058_v31  ;;  %v6117_v42 = vpop.f32.mrf.mxu1  ;;  %v494_v31 = vld [vmem:[#allocation5 + $0x938] sm:$0xff]  ;;  %v492_v38 = vld [vmem:[#allocation5 + $0x928] sm:$0xff] }
 0x23c   :  { %v6098_v49 = vadd.f32 %v6097_v34, %v6078_v33  ;;  %7416 = vmatmul.f32.vlgmr.msra.gmra.mxu2 %v12594_v60  ;;  %7376 = vmatmul.f32.vlgmr.msra.gmra.mxu0 %v12596_v52  ;;  %v12642_v60 = vld.sshfl [vmem:[#allocation1 + $0x10] sm:$0xff pattern:$0x73625140] }
 0x23d   :  { %7436 = vmatmul.f32.vlgmr.msra.gmra.mxu3 %v12598_v57  ;;  %7396 = vmatmul.f32.vlgmr.msra.gmra.mxu1 %v12600_v2  ;;  %v483_v57 = vld [vmem:[#allocation5 + $0x8e0] sm:$0xff]  ;;  %v12648_v2 = vld.sshfl [vmem:[#allocation1 + $0x8] sm:$0xff pattern:$0x73625140] }
 0x23e   :  { %v6118_v48 = vadd.f32 %v6117_v42, %v6098_v49  ;;  %7575 = vmatpush.xpose.msra.mxu2 %v481_v41  ;;  %7535 = vmatpush.xpose.msra.mxu0 %v479_v40  ;;  %1187 = vst [vmem:[#allocation1] ss:$4 sm:$0xff] %v150_v1  ;;  %v12656_v9 = vld.sshfl [vmem:[#allocation1 + $0x20] sm:$0xff pattern:$0x73625140]  ;;  %v501_v1 = vld [vmem:[#allocation5 + $0x970] sm:$0xff] }
 0x23f   :  { %v6137_v54 = vpop.f32.mrf.mxu2  ;;  %7595 = vmatpush.xpose.msra.mxu3 %v482_v43  ;;  %7555 = vmatpush.xpose.msra.mxu1 %v480_v51  ;;  %v12658_v15 = vld.sshfl [vmem:[#allocation1 + $0x38] sm:$0xff pattern:$0x73625140] }
 0x240   :  { %v6138_v47 = vadd.f32 %v6137_v54, %v6118_v48  ;;  %v6157_v55 = vpop.f32.mrf.mxu3  ;;  %v153_v48 = vld [vmem:[#allocation2 + $0x268] sm:$0xff] }
 0x241   :  { %v6177_v53 = vpop.f32.mrf.mxu0 }
 0x242   :  { %v6158_v52 = vadd.f32 %v6157_v55, %v6138_v47  ;;  %v6197_v59 = vpop.f32.mrf.mxu1  ;;  %v498_v47 = vld [vmem:[#allocation5 + $0x958] sm:$0xff]  ;;  %v496_v55 = vld [vmem:[#allocation5 + $0x948] sm:$0xff] }
 0x244   :  { %v6178_v3 = vadd.f32 %v6177_v53, %v6158_v52  ;;  %7496 = vmatmul.f32.vlgmr.msrb.gmra.mxu2 %v12606_v13  ;;  %7456 = vmatmul.f32.vlgmr.msrb.gmra.mxu0 %v12608_v5  ;;  %v12654_v13 = vld.sshfl [vmem:[#allocation1 + $0x30] sm:$0xff pattern:$0x73625140] }
 0x245   :  { %7516 = vmatmul.f32.vlgmr.msrb.gmra.mxu3 %v12610_v10  ;;  %7476 = vmatmul.f32.vlgmr.msrb.gmra.mxu1 %v12612_v19  ;;  %v487_v10 = vld [vmem:[#allocation5 + $0x900] sm:$0xff]  ;;  %v12660_v19 = vld.sshfl [vmem:[#allocation1 + $0x28] sm:$0xff pattern:$0x73625140] }
 0x246   :  { %v6198_v0 = vadd.f32 %v6197_v59, %v6178_v3  ;;  %7655 = vmatpush.xpose.msrb.mxu2 %v485_v58  ;;  %7615 = vmatpush.xpose.msrb.mxu0 %v483_v57  ;;  %1188 = vst [vmem:[#allocation1 + $0x20] ss:$4 sm:$0xff] %v151_v18  ;;  %v12668_v26 = vld.sshfl [vmem:[#allocation1] sm:$0xff pattern:$0x73625140]  ;;  %v505_v18 = vld [vmem:[#allocation5 + $0x990] sm:$0xff] }
 0x247   :  { %v6217_v7 = vpop.f32.mrf.mxu2  ;;  %7675 = vmatpush.xpose.msrb.mxu3 %v486_v61  ;;  %7635 = vmatpush.xpose.msrb.mxu1 %v484_v4  ;;  %v12670_v32 = vld.sshfl [vmem:[#allocation1 + $0x18] sm:$0xff pattern:$0x73625140] }
 0x248   :  { %v6218_v63 = vadd.f32 %v6217_v7, %v6198_v0  ;;  %v6237_v8 = vpop.f32.mrf.mxu3  ;;  %v154_v0 = vld [vmem:[#allocation2 + $0x270] sm:$0xff] }
 0x249   :  { %v6257_v6 = vpop.f32.mrf.mxu0 }
 0x24a   :  { %v6238_v5 = vadd.f32 %v6237_v8, %v6218_v63  ;;  %v6277_v12 = vpop.f32.mrf.mxu1  ;;  %v502_v63 = vld [vmem:[#allocation5 + $0x978] sm:$0xff]  ;;  %v500_v8 = vld [vmem:[#allocation5 + $0x968] sm:$0xff] }
 0x24c   :  { %v6258_v20 = vadd.f32 %v6257_v6, %v6238_v5  ;;  %7576 = vmatmul.f32.vlgmr.msra.gmra.mxu2 %v12618_v30  ;;  %7536 = vmatmul.f32.vlgmr.msra.gmra.mxu0 %v12620_v22  ;;  %v12666_v30 = vld.sshfl [vmem:[#allocation1 + $0x10] sm:$0xff pattern:$0x73625140] }
 0x24d   :  { %7596 = vmatmul.f32.vlgmr.msra.gmra.mxu3 %v12622_v27  ;;  %7556 = vmatmul.f32.vlgmr.msra.gmra.mxu1 %v12624_v36  ;;  %v491_v27 = vld [vmem:[#allocation5 + $0x920] sm:$0xff]  ;;  %v12672_v36 = vld.sshfl [vmem:[#allocation1 + $0x8] sm:$0xff pattern:$0x73625140] }
 0x24e   :  { %v6278_v17 = vadd.f32 %v6277_v12, %v6258_v20  ;;  %7735 = vmatpush.xpose.msra.mxu2 %v489_v11  ;;  %7695 = vmatpush.xpose.msra.mxu0 %v487_v10  ;;  %1197 = vst [vmem:[#allocation1] ss:$4 sm:$0xff] %v152_v35  ;;  %v12680_v43 = vld.sshfl [vmem:[#allocation1 + $0x20] sm:$0xff pattern:$0x73625140]  ;;  %v509_v35 = vld [vmem:[#allocation5 + $0x9b0] sm:$0xff] }
 0x24f   :  { %v6297_v24 = vpop.f32.mrf.mxu2  ;;  %7755 = vmatpush.xpose.msra.mxu3 %v490_v14  ;;  %7715 = vmatpush.xpose.msra.mxu1 %v488_v21  ;;  %v12682_v51 = vld.sshfl [vmem:[#allocation1 + $0x38] sm:$0xff pattern:$0x73625140] }
 0x250   :  { %v6298_v16 = vadd.f32 %v6297_v24, %v6278_v17  ;;  %v6317_v25 = vpop.f32.mrf.mxu3  ;;  %v155_v17 = vld [vmem:[#allocation2 + $0x278] sm:$0xff] }
 0x251   :  { %v6337_v23 = vpop.f32.mrf.mxu0 }
 0x252   :  { %v6318_v22 = vadd.f32 %v6317_v25, %v6298_v16  ;;  %v6357_v29 = vpop.f32.mrf.mxu1  ;;  %v506_v16 = vld [vmem:[#allocation5 + $0x998] sm:$0xff]  ;;  %v504_v25 = vld [vmem:[#allocation5 + $0x988] sm:$0xff] }
 0x254   :  { %v6338_v37 = vadd.f32 %v6337_v23, %v6318_v22  ;;  %7656 = vmatmul.f32.vlgmr.msrb.gmra.mxu2 %v12630_v44  ;;  %7616 = vmatmul.f32.vlgmr.msrb.gmra.mxu0 %v12632_v39  ;;  %v12678_v44 = vld.sshfl [vmem:[#allocation1 + $0x30] sm:$0xff pattern:$0x73625140] }
 0x255   :  { %7676 = vmatmul.f32.vlgmr.msrb.gmra.mxu3 %v12634_v45  ;;  %7636 = vmatmul.f32.vlgmr.msrb.gmra.mxu1 %v12636_v50  ;;  %v495_v45 = vld [vmem:[#allocation5 + $0x940] sm:$0xff]  ;;  %v12684_v50 = vld.sshfl [vmem:[#allocation1 + $0x28] sm:$0xff pattern:$0x73625140] }
 0x256   :  { %v6358_v34 = vadd.f32 %v6357_v29, %v6338_v37  ;;  %7815 = vmatpush.xpose.msrb.mxu2 %v493_v28  ;;  %7775 = vmatpush.xpose.msrb.mxu0 %v491_v27  ;;  %1198 = vst [vmem:[#allocation1 + $0x20] ss:$4 sm:$0xff] %v153_v48  ;;  %v12692_v61 = vld.sshfl [vmem:[#allocation1] sm:$0xff pattern:$0x73625140]  ;;  %v513_v48 = vld [vmem:[#allocation5 + $0x9d0] sm:$0xff] }
 0x257   :  { %v6377_v41 = vpop.f32.mrf.mxu2  ;;  %7835 = vmatpush.xpose.msrb.mxu3 %v494_v31  ;;  %7795 = vmatpush.xpose.msrb.mxu1 %v492_v38  ;;  %v12694_v4 = vld.sshfl [vmem:[#allocation1 + $0x18] sm:$0xff pattern:$0x73625140] }
 0x258   :  { %v6378_v33 = vadd.f32 %v6377_v41, %v6358_v34  ;;  %v6397_v42 = vpop.f32.mrf.mxu3  ;;  %v156_v34 = vld [vmem:[#allocation2 + $0x280] sm:$0xff] }
 0x259   :  { %v6417_v40 = vpop.f32.mrf.mxu0 }
 0x25a   :  { %v6398_v39 = vadd.f32 %v6397_v42, %v6378_v33  ;;  %v6437_v49 = vpop.f32.mrf.mxu1  ;;  %v510_v33 = vld [vmem:[#allocation5 + $0x9b8] sm:$0xff]  ;;  %v508_v42 = vld [vmem:[#allocation5 + $0x9a8] sm:$0xff] }
 0x25c   :  { %v6418_v54 = vadd.f32 %v6417_v40, %v6398_v39  ;;  %7736 = vmatmul.f32.vlgmr.msra.gmra.mxu2 %v12642_v60  ;;  %7696 = vmatmul.f32.vlgmr.msra.gmra.mxu0 %v12644_v56  ;;  %v12690_v60 = vld.sshfl [vmem:[#allocation1 + $0x10] sm:$0xff pattern:$0x73625140] }
 0x25d   :  { %7756 = vmatmul.f32.vlgmr.msra.gmra.mxu3 %v12646_v62  ;;  %7716 = vmatmul.f32.vlgmr.msra.gmra.mxu1 %v12648_v2  ;;  %v499_v62 = vld [vmem:[#allocation5 + $0x960] sm:$0xff]  ;;  %v12696_v2 = vld.sshfl [vmem:[#allocation1 + $0x8] sm:$0xff pattern:$0x73625140] }
 0x25e   :  { %v6438_v53 = vadd.f32 %v6437_v49, %v6418_v54  ;;  %7895 = vmatpush.xpose.msra.mxu2 %v497_v46  ;;  %7855 = vmatpush.xpose.msra.mxu0 %v495_v45  ;;  %1207 = vst [vmem:[#allocation1] ss:$4 sm:$0xff] %v154_v0  ;;  %v12704_v14 = vld.sshfl [vmem:[#allocation1 + $0x20] sm:$0xff pattern:$0x73625140]  ;;  %v517_v0 = vld [vmem:[#allocation5 + $0x9f0] sm:$0xff] }
 0x25f   :  { %v6457_v58 = vpop.f32.mrf.mxu2  ;;  %7915 = vmatpush.xpose.msra.mxu3 %v498_v47  ;;  %7875 = vmatpush.xpose.msra.mxu1 %v496_v55  ;;  %v12706_v21 = vld.sshfl [vmem:[#allocation1 + $0x38] sm:$0xff pattern:$0x73625140] }
 0x260   :  { %v6458_v52 = vadd.f32 %v6457_v58, %v6438_v53  ;;  %v6477_v59 = vpop.f32.mrf.mxu3  ;;  %v157_v53 = vld [vmem:[#allocation2 + $0x288] sm:$0xff] }
 0x261   :  { %v6497_v57 = vpop.f32.mrf.mxu0 }
 0x262   :  { %v6478_v56 = vadd.f32 %v6477_v59, %v6458_v52  ;;  %v6517_v3 = vpop.f32.mrf.mxu1  ;;  %v514_v52 = vld [vmem:[#allocation5 + $0x9d8] sm:$0xff]  ;;  %v512_v59 = vld [vmem:[#allocation5 + $0x9c8] sm:$0xff] }
 0x264   :  { %v6498_v7 = vadd.f32 %v6497_v57, %v6478_v56  ;;  %7816 = vmatmul.f32.vlgmr.msrb.gmra.mxu2 %v12654_v13  ;;  %7776 = vmatmul.f32.vlgmr.msrb.gmra.mxu0 %v12656_v9  ;;  %v12702_v13 = vld.sshfl [vmem:[#allocation1 + $0x30] sm:$0xff pattern:$0x73625140] }
 0x265   :  { %7836 = vmatmul.f32.vlgmr.msrb.gmra.mxu3 %v12658_v15  ;;  %7796 = vmatmul.f32.vlgmr.msrb.gmra.mxu1 %v12660_v19  ;;  %v503_v15 = vld [vmem:[#allocation5 + $0x980] sm:$0xff]  ;;  %v12708_v19 = vld.sshfl [vmem:[#allocation1 + $0x28] sm:$0xff pattern:$0x73625140] }
 0x266   :  { %v6518_v6 = vadd.f32 %v6517_v3, %v6498_v7  ;;  %7975 = vmatpush.xpose.msrb.mxu2 %v501_v1  ;;  %7935 = vmatpush.xpose.msrb.mxu0 %v499_v62  ;;  %1208 = vst [vmem:[#allocation1 + $0x20] ss:$4 sm:$0xff] %v155_v17  ;;  %v12716_v31 = vld.sshfl [vmem:[#allocation1] sm:$0xff pattern:$0x73625140]  ;;  %v521_v17 = vld [vmem:[#allocation5 + $0xa10] sm:$0xff] }
 0x267   :  { %v6537_v11 = vpop.f32.mrf.mxu2  ;;  %7995 = vmatpush.xpose.msrb.mxu3 %v502_v63  ;;  %7955 = vmatpush.xpose.msrb.mxu1 %v500_v8  ;;  %v12718_v38 = vld.sshfl [vmem:[#allocation1 + $0x18] sm:$0xff pattern:$0x73625140] }
 0x268   :  { %v6538_v5 = vadd.f32 %v6537_v11, %v6518_v6  ;;  %v6557_v12 = vpop.f32.mrf.mxu3  ;;  %v158_v6 = vld [vmem:[#allocation2 + $0x290] sm:$0xff] }
 0x269   :  { %v6577_v10 = vpop.f32.mrf.mxu0 }
 0x26a   :  { %v6558_v9 = vadd.f32 %v6557_v12, %v6538_v5  ;;  %v6597_v20 = vpop.f32.mrf.mxu1  ;;  %v518_v5 = vld [vmem:[#allocation5 + $0x9f8] sm:$0xff]  ;;  %v516_v12 = vld [vmem:[#allocation5 + $0x9e8] sm:$0xff] }
 0x26c   :  { %v6578_v24 = vadd.f32 %v6577_v10, %v6558_v9  ;;  %7896 = vmatmul.f32.vlgmr.msra.gmra.mxu2 %v12666_v30  ;;  %7856 = vmatmul.f32.vlgmr.msra.gmra.mxu0 %v12668_v26  ;;  %v12714_v30 = vld.sshfl [vmem:[#allocation1 + $0x10] sm:$0xff pattern:$0x73625140] }
 0x26d   :  { %7916 = vmatmul.f32.vlgmr.msra.gmra.mxu3 %v12670_v32  ;;  %7876 = vmatmul.f32.vlgmr.msra.gmra.mxu1 %v12672_v36  ;;  %v507_v32 = vld [vmem:[#allocation5 + $0x9a0] sm:$0xff]  ;;  %v12720_v36 = vld.sshfl [vmem:[#allocation1 + $0x8] sm:$0xff pattern:$0x73625140] }
 0x26e   :  { %v6598_v23 = vadd.f32 %v6597_v20, %v6578_v24  ;;  %8055 = vmatpush.xpose.msra.mxu2 %v505_v18  ;;  %8015 = vmatpush.xpose.msra.mxu0 %v503_v15  ;;  %1217 = vst [vmem:[#allocation1] ss:$4 sm:$0xff] %v156_v34  ;;  %v12728_v47 = vld.sshfl [vmem:[#allocation1 + $0x20] sm:$0xff pattern:$0x73625140]  ;;  %v525_v34 = vld [vmem:[#allocation5 + $0xa30] sm:$0xff] }
 0x26f   :  { %v6617_v28 = vpop.f32.mrf.mxu2  ;;  %8075 = vmatpush.xpose.msra.mxu3 %v506_v16  ;;  %8035 = vmatpush.xpose.msra.mxu1 %v504_v25  ;;  %v12730_v55 = vld.sshfl [vmem:[#allocation1 + $0x38] sm:$0xff pattern:$0x73625140] }
 0x270   :  { %v6618_v22 = vadd.f32 %v6617_v28, %v6598_v23  ;;  %v6637_v29 = vpop.f32.mrf.mxu3  ;;  %v159_v23 = vld [vmem:[#allocation2 + $0x298] sm:$0xff] }
 0x271   :  { %v6657_v27 = vpop.f32.mrf.mxu0 }
 0x272   :  { %v6638_v26 = vadd.f32 %v6637_v29, %v6618_v22  ;;  %v6677_v37 = vpop.f32.mrf.mxu1  ;;  %v522_v22 = vld [vmem:[#allocation5 + $0xa18] sm:$0xff]  ;;  %v520_v29 = vld [vmem:[#allocation5 + $0xa08] sm:$0xff] }
 0x274   :  { %v6658_v41 = vadd.f32 %v6657_v27, %v6638_v26  ;;  %7976 = vmatmul.f32.vlgmr.msrb.gmra.mxu2 %v12678_v44  ;;  %7936 = vmatmul.f32.vlgmr.msrb.gmra.mxu0 %v12680_v43  ;;  %v12726_v44 = vld.sshfl [vmem:[#allocation1 + $0x30] sm:$0xff pattern:$0x73625140] }
 0x275   :  { %7996 = vmatmul.f32.vlgmr.msrb.gmra.mxu3 %v12682_v51  ;;  %7956 = vmatmul.f32.vlgmr.msrb.gmra.mxu1 %v12684_v50  ;;  %v511_v51 = vld [vmem:[#allocation5 + $0x9c0] sm:$0xff]  ;;  %v12732_v50 = vld.sshfl [vmem:[#allocation1 + $0x28] sm:$0xff pattern:$0x73625140] }
 0x276   :  { %v6678_v40 = vadd.f32 %v6677_v37, %v6658_v41  ;;  %8135 = vmatpush.xpose.msrb.mxu2 %v509_v35  ;;  %8095 = vmatpush.xpose.msrb.mxu0 %v507_v32  ;;  %1218 = vst [vmem:[#allocation1 + $0x20] ss:$4 sm:$0xff] %v157_v53  ;;  %v12740_v63 = vld.sshfl [vmem:[#allocation1] sm:$0xff pattern:$0x73625140]  ;;  %v529_v53 = vld [vmem:[#allocation5 + $0xa50] sm:$0xff] }
 0x277   :  { %v6697_v46 = vpop.f32.mrf.mxu2  ;;  %8155 = vmatpush.xpose.msrb.mxu3 %v510_v33  ;;  %8115 = vmatpush.xpose.msrb.mxu1 %v508_v42  ;;  %v12742_v8 = vld.sshfl [vmem:[#allocation1 + $0x18] sm:$0xff pattern:$0x73625140] }
 0x278   :  { %v6698_v39 = vadd.f32 %v6697_v46, %v6678_v40  ;;  %v6717_v49 = vpop.f32.mrf.mxu3  ;;  %v160_v40 = vld [vmem:[#allocation2 + $0x2a0] sm:$0xff] }
 0x279   :  { %v6737_v45 = vpop.f32.mrf.mxu0 }
 0x27a   :  { %v6718_v43 = vadd.f32 %v6717_v49, %v6698_v39  ;;  %v6757_v54 = vpop.f32.mrf.mxu1  ;;  %v526_v39 = vld [vmem:[#allocation5 + $0xa38] sm:$0xff]  ;;  %v524_v49 = vld [vmem:[#allocation5 + $0xa28] sm:$0xff] }
 0x27c   :  { %v6738_v58 = vadd.f32 %v6737_v45, %v6718_v43  ;;  %8056 = vmatmul.f32.vlgmr.msra.gmra.mxu2 %v12690_v60  ;;  %8016 = vmatmul.f32.vlgmr.msra.gmra.mxu0 %v12692_v61  ;;  %v12738_v60 = vld.sshfl [vmem:[#allocation1 + $0x10] sm:$0xff pattern:$0x73625140] }
 0x27d   :  { %8076 = vmatmul.f32.vlgmr.msra.gmra.mxu3 %v12694_v4  ;;  %8036 = vmatmul.f32.vlgmr.msra.gmra.mxu1 %v12696_v2  ;;  %v515_v4 = vld [vmem:[#allocation5 + $0x9e0] sm:$0xff]  ;;  %v12744_v2 = vld.sshfl [vmem:[#allocation1 + $0x8] sm:$0xff pattern:$0x73625140] }
 0x27e   :  { %v6758_v57 = vadd.f32 %v6757_v54, %v6738_v58  ;;  %8215 = vmatpush.xpose.msra.mxu2 %v513_v48  ;;  %8175 = vmatpush.xpose.msra.mxu0 %v511_v51  ;;  %1227 = vst [vmem:[#allocation1] ss:$4 sm:$0xff] %v158_v6  ;;  %v12752_v16 = vld.sshfl [vmem:[#allocation1 + $0x20] sm:$0xff pattern:$0x73625140]  ;;  %v533_v6 = vld [vmem:[#allocation5 + $0xa70] sm:$0xff] }
 0x27f   :  { %v6777_v1 = vpop.f32.mrf.mxu2  ;;  %8235 = vmatpush.xpose.msra.mxu3 %v514_v52  ;;  %8195 = vmatpush.xpose.msra.mxu1 %v512_v59  ;;  %v12754_v25 = vld.sshfl [vmem:[#allocation1 + $0x38] sm:$0xff pattern:$0x73625140] }
 0x280   :  { %v6778_v56 = vadd.f32 %v6777_v1, %v6758_v57  ;;  %v6797_v3 = vpop.f32.mrf.mxu3  ;;  %v161_v57 = vld [vmem:[#allocation2 + $0x2a8] sm:$0xff] }
 0x281   :  { %v6817_v62 = vpop.f32.mrf.mxu0 }
 0x282   :  { %v6798_v61 = vadd.f32 %v6797_v3, %v6778_v56  ;;  %v6837_v7 = vpop.f32.mrf.mxu1  ;;  %v530_v56 = vld [vmem:[#allocation5 + $0xa58] sm:$0xff]  ;;  %v528_v3 = vld [vmem:[#allocation5 + $0xa48] sm:$0xff] }
 0x284   :  { %v6818_v11 = vadd.f32 %v6817_v62, %v6798_v61  ;;  %8136 = vmatmul.f32.vlgmr.msrb.gmra.mxu2 %v12702_v13  ;;  %8096 = vmatmul.f32.vlgmr.msrb.gmra.mxu0 %v12704_v14  ;;  %v12750_v13 = vld.sshfl [vmem:[#allocation1 + $0x30] sm:$0xff pattern:$0x73625140] }
 0x285   :  { %8156 = vmatmul.f32.vlgmr.msrb.gmra.mxu3 %v12706_v21  ;;  %8116 = vmatmul.f32.vlgmr.msrb.gmra.mxu1 %v12708_v19  ;;  %v519_v21 = vld [vmem:[#allocation5 + $0xa00] sm:$0xff]  ;;  %v12756_v19 = vld.sshfl [vmem:[#allocation1 + $0x28] sm:$0xff pattern:$0x73625140] }
 0x286   :  { %v6838_v10 = vadd.f32 %v6837_v7, %v6818_v11  ;;  %8295 = vmatpush.xpose.msrb.mxu2 %v517_v0  ;;  %8255 = vmatpush.xpose.msrb.mxu0 %v515_v4  ;;  %1228 = vst [vmem:[#allocation1 + $0x20] ss:$4 sm:$0xff] %v159_v23  ;;  %v12764_v33 = vld.sshfl [vmem:[#allocation1] sm:$0xff pattern:$0x73625140]  ;;  %v537_v23 = vld [vmem:[#allocation5 + $0xa90] sm:$0xff] }
 0x287   :  { %v6857_v18 = vpop.f32.mrf.mxu2  ;;  %8315 = vmatpush.xpose.msrb.mxu3 %v518_v5  ;;  %8275 = vmatpush.xpose.msrb.mxu1 %v516_v12  ;;  %v12766_v42 = vld.sshfl [vmem:[#allocation1 + $0x18] sm:$0xff pattern:$0x73625140] }
 0x288   :  { %v6858_v9 = vadd.f32 %v6857_v18, %v6838_v10  ;;  %v6877_v20 = vpop.f32.mrf.mxu3  ;;  %v162_v10 = vld [vmem:[#allocation2 + $0x2b0] sm:$0xff] }
 0x289   :  { %v6897_v15 = vpop.f32.mrf.mxu0 }
 0x28a   :  { %v6878_v14 = vadd.f32 %v6877_v20, %v6858_v9  ;;  %v6917_v24 = vpop.f32.mrf.mxu1  ;;  %v534_v9 = vld [vmem:[#allocation5 + $0xa78] sm:$0xff]  ;;  %v532_v20 = vld [vmem:[#allocation5 + $0xa68] sm:$0xff] }
 0x28c   :  { %v6898_v28 = vadd.f32 %v6897_v15, %v6878_v14  ;;  %8216 = vmatmul.f32.vlgmr.msra.gmra.mxu2 %v12714_v30  ;;  %8176 = vmatmul.f32.vlgmr.msra.gmra.mxu0 %v12716_v31  ;;  %v12762_v30 = vld.sshfl [vmem:[#allocation1 + $0x10] sm:$0xff pattern:$0x73625140] }
 0x28d   :  { %8236 = vmatmul.f32.vlgmr.msra.gmra.mxu3 %v12718_v38  ;;  %8196 = vmatmul.f32.vlgmr.msra.gmra.mxu1 %v12720_v36  ;;  %v523_v38 = vld [vmem:[#allocation5 + $0xa20] sm:$0xff]  ;;  %v12768_v36 = vld.sshfl [vmem:[#allocation1 + $0x8] sm:$0xff pattern:$0x73625140] }
 0x28e   :  { %v6918_v27 = vadd.f32 %v6917_v24, %v6898_v28  ;;  %8375 = vmatpush.xpose.msra.mxu2 %v521_v17  ;;  %8335 = vmatpush.xpose.msra.mxu0 %v519_v21  ;;  %1237 = vst [vmem:[#allocation1] ss:$4 sm:$0xff] %v160_v40  ;;  %v12776_v52 = vld.sshfl [vmem:[#allocation1 + $0x20] sm:$0xff pattern:$0x73625140]  ;;  %v541_v40 = vld [vmem:[#allocation5 + $0xab0] sm:$0xff] }
 0x28f   :  { %v6937_v35 = vpop.f32.mrf.mxu2  ;;  %8395 = vmatpush.xpose.msra.mxu3 %v522_v22  ;;  %8355 = vmatpush.xpose.msra.mxu1 %v520_v29  ;;  %v12778_v59 = vld.sshfl [vmem:[#allocation1 + $0x38] sm:$0xff pattern:$0x73625140] }
 0x290   :  { %v6938_v26 = vadd.f32 %v6937_v35, %v6918_v27  ;;  %v6957_v37 = vpop.f32.mrf.mxu3  ;;  %v163_v27 = vld [vmem:[#allocation2 + $0x2b8] sm:$0xff] }
 0x291   :  { %v6977_v32 = vpop.f32.mrf.mxu0 }
 0x292   :  { %v6958_v31 = vadd.f32 %v6957_v37, %v6938_v26  ;;  %v6997_v41 = vpop.f32.mrf.mxu1  ;;  %v538_v26 = vld [vmem:[#allocation5 + $0xa98] sm:$0xff]  ;;  %v536_v37 = vld [vmem:[#allocation5 + $0xa88] sm:$0xff] }
 0x294   :  { %v6978_v46 = vadd.f32 %v6977_v32, %v6958_v31  ;;  %8296 = vmatmul.f32.vlgmr.msrb.gmra.mxu2 %v12726_v44  ;;  %8256 = vmatmul.f32.vlgmr.msrb.gmra.mxu0 %v12728_v47  ;;  %v12774_v44 = vld.sshfl [vmem:[#allocation1 + $0x30] sm:$0xff pattern:$0x73625140] }
 0x295   :  { %8316 = vmatmul.f32.vlgmr.msrb.gmra.mxu3 %v12730_v55  ;;  %8276 = vmatmul.f32.vlgmr.msrb.gmra.mxu1 %v12732_v50  ;;  %v527_v55 = vld [vmem:[#allocation5 + $0xa40] sm:$0xff]  ;;  %v12780_v50 = vld.sshfl [vmem:[#allocation1 + $0x28] sm:$0xff pattern:$0x73625140] }
 0x296   :  { %v6998_v45 = vadd.f32 %v6997_v41, %v6978_v46  ;;  %8455 = vmatpush.xpose.msrb.mxu2 %v525_v34  ;;  %8415 = vmatpush.xpose.msrb.mxu0 %v523_v38  ;;  %1238 = vst [vmem:[#allocation1 + $0x20] ss:$4 sm:$0xff] %v161_v57  ;;  %v12788_v5 = vld.sshfl [vmem:[#allocation1] sm:$0xff pattern:$0x73625140]  ;;  %v545_v57 = vld [vmem:[#allocation5 + $0xad0] sm:$0xff] }
 0x297   :  { %v7017_v48 = vpop.f32.mrf.mxu2  ;;  %8475 = vmatpush.xpose.msrb.mxu3 %v526_v39  ;;  %8435 = vmatpush.xpose.msrb.mxu1 %v524_v49  ;;  %v12790_v12 = vld.sshfl [vmem:[#allocation1 + $0x18] sm:$0xff pattern:$0x73625140] }
 0x298   :  { %v7018_v43 = vadd.f32 %v7017_v48, %v6998_v45  ;;  %v7037_v54 = vpop.f32.mrf.mxu3  ;;  %v164_v45 = vld [vmem:[#allocation2 + $0x2c0] sm:$0xff] }
 0x299   :  { %v7057_v51 = vpop.f32.mrf.mxu0 }
 0x29a   :  { %v7038_v47 = vadd.f32 %v7037_v54, %v7018_v43  ;;  %v7077_v58 = vpop.f32.mrf.mxu1  ;;  %v542_v43 = vld [vmem:[#allocation5 + $0xab8] sm:$0xff]  ;;  %v540_v54 = vld [vmem:[#allocation5 + $0xaa8] sm:$0xff] }
 0x29c   :  { %v7058_v1 = vadd.f32 %v7057_v51, %v7038_v47  ;;  %8376 = vmatmul.f32.vlgmr.msra.gmra.mxu2 %v12738_v60  ;;  %8336 = vmatmul.f32.vlgmr.msra.gmra.mxu0 %v12740_v63  ;;  %v12786_v60 = vld.sshfl [vmem:[#allocation1 + $0x10] sm:$0xff pattern:$0x73625140] }
 0x29d   :  { %8396 = vmatmul.f32.vlgmr.msra.gmra.mxu3 %v12742_v8  ;;  %8356 = vmatmul.f32.vlgmr.msra.gmra.mxu1 %v12744_v2  ;;  %v531_v8 = vld [vmem:[#allocation5 + $0xa60] sm:$0xff]  ;;  %v12792_v2 = vld.sshfl [vmem:[#allocation1 + $0x8] sm:$0xff pattern:$0x73625140] }
 0x29e   :  { %v7078_v62 = vadd.f32 %v7077_v58, %v7058_v1  ;;  %8535 = vmatpush.xpose.msra.mxu2 %v529_v53  ;;  %8495 = vmatpush.xpose.msra.mxu0 %v527_v55  ;;  %1247 = vst [vmem:[#allocation1] ss:$4 sm:$0xff] %v162_v10  ;;  %v12800_v22 = vld.sshfl [vmem:[#allocation1 + $0x20] sm:$0xff pattern:$0x73625140]  ;;  %v549_v10 = vld [vmem:[#allocation5 + $0xaf0] sm:$0xff] }
 0x29f   :  { %v7097_v0 = vpop.f32.mrf.mxu2  ;;  %8555 = vmatpush.xpose.msra.mxu3 %v530_v56  ;;  %8515 = vmatpush.xpose.msra.mxu1 %v528_v3  ;;  %v12802_v29 = vld.sshfl [vmem:[#allocation1 + $0x38] sm:$0xff pattern:$0x73625140] }
 0x2a0   :  { %v7098_v61 = vadd.f32 %v7097_v0, %v7078_v62  ;;  %v7117_v7 = vpop.f32.mrf.mxu3  ;;  %v165_v62 = vld [vmem:[#allocation2 + $0x2c8] sm:$0xff] }
 0x2a1   :  { %v7137_v4 = vpop.f32.mrf.mxu0 }
 0x2a2   :  { %v7118_v63 = vadd.f32 %v7117_v7, %v7098_v61  ;;  %v7157_v11 = vpop.f32.mrf.mxu1  ;;  %v546_v61 = vld [vmem:[#allocation5 + $0xad8] sm:$0xff]  ;;  %v544_v7 = vld [vmem:[#allocation5 + $0xac8] sm:$0xff] }
 0x2a4   :  { %v7138_v18 = vadd.f32 %v7137_v4, %v7118_v63  ;;  %8456 = vmatmul.f32.vlgmr.msrb.gmra.mxu2 %v12750_v13  ;;  %8416 = vmatmul.f32.vlgmr.msrb.gmra.mxu0 %v12752_v16  ;;  %v12798_v13 = vld.sshfl [vmem:[#allocation1 + $0x30] sm:$0xff pattern:$0x73625140] }
 0x2a5   :  { %8476 = vmatmul.f32.vlgmr.msrb.gmra.mxu3 %v12754_v25  ;;  %8436 = vmatmul.f32.vlgmr.msrb.gmra.mxu1 %v12756_v19  ;;  %v535_v25 = vld [vmem:[#allocation5 + $0xa80] sm:$0xff]  ;;  %v12804_v19 = vld.sshfl [vmem:[#allocation1 + $0x28] sm:$0xff pattern:$0x73625140] }
 0x2a6   :  { %v7158_v15 = vadd.f32 %v7157_v11, %v7138_v18  ;;  %8615 = vmatpush.xpose.msrb.mxu2 %v533_v6  ;;  %8575 = vmatpush.xpose.msrb.mxu0 %v531_v8  ;;  %1248 = vst [vmem:[#allocation1 + $0x20] ss:$4 sm:$0xff] %v163_v27  ;;  %v12812_v39 = vld.sshfl [vmem:[#allocation1] sm:$0xff pattern:$0x73625140]  ;;  %v553_v27 = vld [vmem:[#allocation5 + $0xb10] sm:$0xff] }
 0x2a7   :  { %v7177_v17 = vpop.f32.mrf.mxu2  ;;  %8635 = vmatpush.xpose.msrb.mxu3 %v534_v9  ;;  %8595 = vmatpush.xpose.msrb.mxu1 %v532_v20  ;;  %v12814_v49 = vld.sshfl [vmem:[#allocation1 + $0x18] sm:$0xff pattern:$0x73625140] }
 0x2a8   :  { %v7178_v14 = vadd.f32 %v7177_v17, %v7158_v15  ;;  %v7197_v24 = vpop.f32.mrf.mxu3  ;;  %v166_v15 = vld [vmem:[#allocation2 + $0x2d0] sm:$0xff] }
 0x2a9   :  { %v7217_v21 = vpop.f32.mrf.mxu0 }
 0x2aa   :  { %v7198_v16 = vadd.f32 %v7197_v24, %v7178_v14  ;;  %v7237_v28 = vpop.f32.mrf.mxu1  ;;  %v550_v14 = vld [vmem:[#allocation5 + $0xaf8] sm:$0xff]  ;;  %v548_v24 = vld [vmem:[#allocation5 + $0xae8] sm:$0xff] }
 0x2ac   :  { %v7218_v35 = vadd.f32 %v7217_v21, %v7198_v16  ;;  %8536 = vmatmul.f32.vlgmr.msra.gmra.mxu2 %v12762_v30  ;;  %8496 = vmatmul.f32.vlgmr.msra.gmra.mxu0 %v12764_v33  ;;  %v12810_v30 = vld.sshfl [vmem:[#allocation1 + $0x10] sm:$0xff pattern:$0x73625140] }
 0x2ad   :  { %8556 = vmatmul.f32.vlgmr.msra.gmra.mxu3 %v12766_v42  ;;  %8516 = vmatmul.f32.vlgmr.msra.gmra.mxu1 %v12768_v36  ;;  %v539_v42 = vld [vmem:[#allocation5 + $0xaa0] sm:$0xff]  ;;  %v12816_v36 = vld.sshfl [vmem:[#allocation1 + $0x8] sm:$0xff pattern:$0x73625140] }
 0x2ae   :  { %v7238_v32 = vadd.f32 %v7237_v28, %v7218_v35  ;;  %8695 = vmatpush.xpose.msra.mxu2 %v537_v23  ;;  %8655 = vmatpush.xpose.msra.mxu0 %v535_v25  ;;  %1257 = vst [vmem:[#allocation1] ss:$4 sm:$0xff] %v164_v45  ;;  %v12824_v56 = vld.sshfl [vmem:[#allocation1 + $0x20] sm:$0xff pattern:$0x73625140]  ;;  %v557_v45 = vld [vmem:[#allocation5 + $0xb30] sm:$0xff] }
 0x2af   :  { %v7257_v34 = vpop.f32.mrf.mxu2  ;;  %8715 = vmatpush.xpose.msra.mxu3 %v538_v26  ;;  %8675 = vmatpush.xpose.msra.mxu1 %v536_v37  ;;  %v12826_v3 = vld.sshfl [vmem:[#allocation1 + $0x38] sm:$0xff pattern:$0x73625140] }
 0x2b0   :  { %v7258_v31 = vadd.f32 %v7257_v34, %v7238_v32  ;;  %v7277_v41 = vpop.f32.mrf.mxu3  ;;  %v167_v32 = vld [vmem:[#allocation2 + $0x2d8] sm:$0xff] }
 0x2b1   :  { %v7297_v38 = vpop.f32.mrf.mxu0 }
 0x2b2   :  { %v7278_v33 = vadd.f32 %v7277_v41, %v7258_v31  ;;  %v7317_v46 = vpop.f32.mrf.mxu1  ;;  %v554_v31 = vld [vmem:[#allocation5 + $0xb18] sm:$0xff]  ;;  %v552_v41 = vld [vmem:[#allocation5 + $0xb08] sm:$0xff] }
 0x2b4   :  { %v7298_v48 = vadd.f32 %v7297_v38, %v7278_v33  ;;  %8616 = vmatmul.f32.vlgmr.msrb.gmra.mxu2 %v12774_v44  ;;  %8576 = vmatmul.f32.vlgmr.msrb.gmra.mxu0 %v12776_v52  ;;  %v12822_v44 = vld.sshfl [vmem:[#allocation1 + $0x30] sm:$0xff pattern:$0x73625140] }
 0x2b5   :  { %8636 = vmatmul.f32.vlgmr.msrb.gmra.mxu3 %v12778_v59  ;;  %8596 = vmatmul.f32.vlgmr.msrb.gmra.mxu1 %v12780_v50  ;;  %v543_v59 = vld [vmem:[#allocation5 + $0xac0] sm:$0xff]  ;;  %v12828_v50 = vld.sshfl [vmem:[#allocation1 + $0x28] sm:$0xff pattern:$0x73625140] }
 0x2b6   :  { %v7318_v51 = vadd.f32 %v7317_v46, %v7298_v48  ;;  %8775 = vmatpush.xpose.msrb.mxu2 %v541_v40  ;;  %8735 = vmatpush.xpose.msrb.mxu0 %v539_v42  ;;  %1258 = vst [vmem:[#allocation1 + $0x20] ss:$4 sm:$0xff] %v165_v62  ;;  %v12836_v9 = vld.sshfl [vmem:[#allocation1] sm:$0xff pattern:$0x73625140]  ;;  %v561_v62 = vld [vmem:[#allocation5 + $0xb50] sm:$0xff] }
 0x2b7   :  { %v7337_v53 = vpop.f32.mrf.mxu2  ;;  %8795 = vmatpush.xpose.msrb.mxu3 %v542_v43  ;;  %8755 = vmatpush.xpose.msrb.mxu1 %v540_v54  ;;  %v12838_v20 = vld.sshfl [vmem:[#allocation1 + $0x18] sm:$0xff pattern:$0x73625140] }
 0x2b8   :  { %v7338_v47 = vadd.f32 %v7337_v53, %v7318_v51  ;;  %v7357_v58 = vpop.f32.mrf.mxu3  ;;  %v168_v51 = vld [vmem:[#allocation2 + $0x2e0] sm:$0xff] }
 0x2b9   :  { %v7377_v55 = vpop.f32.mrf.mxu0 }
 0x2ba   :  { %v7358_v52 = vadd.f32 %v7357_v58, %v7338_v47  ;;  %v7397_v1 = vpop.f32.mrf.mxu1  ;;  %v558_v47 = vld [vmem:[#allocation5 + $0xb38] sm:$0xff]  ;;  %v556_v58 = vld [vmem:[#allocation5 + $0xb28] sm:$0xff] }
 0x2bc   :  { %v7378_v0 = vadd.f32 %v7377_v55, %v7358_v52  ;;  %8696 = vmatmul.f32.vlgmr.msra.gmra.mxu2 %v12786_v60  ;;  %8656 = vmatmul.f32.vlgmr.msra.gmra.mxu0 %v12788_v5  ;;  %v12834_v60 = vld.sshfl [vmem:[#allocation1 + $0x10] sm:$0xff pattern:$0x73625140] }
 0x2bd   :  { %8716 = vmatmul.f32.vlgmr.msra.gmra.mxu3 %v12790_v12  ;;  %8676 = vmatmul.f32.vlgmr.msra.gmra.mxu1 %v12792_v2  ;;  %v547_v12 = vld [vmem:[#allocation5 + $0xae0] sm:$0xff]  ;;  %v12840_v2 = vld.sshfl [vmem:[#allocation1 + $0x8] sm:$0xff pattern:$0x73625140] }
 0x2be   :  { %v7398_v4 = vadd.f32 %v7397_v1, %v7378_v0  ;;  %8855 = vmatpush.xpose.msra.mxu2 %v545_v57  ;;  %8815 = vmatpush.xpose.msra.mxu0 %v543_v59  ;;  %1267 = vst [vmem:[#allocation1] ss:$4 sm:$0xff] %v166_v15  ;;  %v12848_v26 = vld.sshfl [vmem:[#allocation1 + $0x20] sm:$0xff pattern:$0x73625140]  ;;  %v565_v15 = vld [vmem:[#allocation5 + $0xb70] sm:$0xff] }
 0x2bf   :  { %v7417_v6 = vpop.f32.mrf.mxu2  ;;  %8875 = vmatpush.xpose.msra.mxu3 %v546_v61  ;;  %8835 = vmatpush.xpose.msra.mxu1 %v544_v7  ;;  %v12850_v37 = vld.sshfl [vmem:[#allocation1 + $0x38] sm:$0xff pattern:$0x73625140] }
 0x2c0   :  { %v7418_v63 = vadd.f32 %v7417_v6, %v7398_v4  ;;  %v7437_v11 = vpop.f32.mrf.mxu3  ;;  %v169_v4 = vld [vmem:[#allocation2 + $0x2e8] sm:$0xff] }
 0x2c1   :  { %v7457_v8 = vpop.f32.mrf.mxu0 }
 0x2c2   :  { %v7438_v5 = vadd.f32 %v7437_v11, %v7418_v63  ;;  %v7477_v18 = vpop.f32.mrf.mxu1  ;;  %v562_v63 = vld [vmem:[#allocation5 + $0xb58] sm:$0xff]  ;;  %v560_v11 = vld [vmem:[#allocation5 + $0xb48] sm:$0xff] }
 0x2c4   :  { %v7458_v17 = vadd.f32 %v7457_v8, %v7438_v5  ;;  %8776 = vmatmul.f32.vlgmr.msrb.gmra.mxu2 %v12798_v13  ;;  %8736 = vmatmul.f32.vlgmr.msrb.gmra.mxu0 %v12800_v22  ;;  %v12846_v13 = vld.sshfl [vmem:[#allocation1 + $0x30] sm:$0xff pattern:$0x73625140] }
 0x2c5   :  { %8796 = vmatmul.f32.vlgmr.msrb.gmra.mxu3 %v12802_v29  ;;  %8756 = vmatmul.f32.vlgmr.msrb.gmra.mxu1 %v12804_v19  ;;  %v551_v29 = vld [vmem:[#allocation5 + $0xb00] sm:$0xff]  ;;  %v12852_v19 = vld.sshfl [vmem:[#allocation1 + $0x28] sm:$0xff pattern:$0x73625140] }
 0x2c6   :  { %v7478_v21 = vadd.f32 %v7477_v18, %v7458_v17  ;;  %8935 = vmatpush.xpose.msrb.mxu2 %v549_v10  ;;  %8895 = vmatpush.xpose.msrb.mxu0 %v547_v12  ;;  %1268 = vst [vmem:[#allocation1 + $0x20] ss:$4 sm:$0xff] %v167_v32  ;;  %v12860_v43 = vld.sshfl [vmem:[#allocation1] sm:$0xff pattern:$0x73625140]  ;;  %v569_v32 = vld [vmem:[#allocation5 + $0xb90] sm:$0xff] }
 0x2c7   :  { %v7497_v23 = vpop.f32.mrf.mxu2  ;;  %8955 = vmatpush.xpose.msrb.mxu3 %v550_v14  ;;  %8915 = vmatpush.xpose.msrb.mxu1 %v548_v24  ;;  %v12862_v54 = vld.sshfl [vmem:[#allocation1 + $0x18] sm:$0xff pattern:$0x73625140] }
 0x2c8   :  { %v7498_v16 = vadd.f32 %v7497_v23, %v7478_v21  ;;  %v7517_v28 = vpop.f32.mrf.mxu3  ;;  %v170_v21 = vld [vmem:[#allocation2 + $0x2f0] sm:$0xff] }
 0x2c9   :  { %v7537_v25 = vpop.f32.mrf.mxu0 }
 0x2ca   :  { %v7518_v22 = vadd.f32 %v7517_v28, %v7498_v16  ;;  %v7557_v35 = vpop.f32.mrf.mxu1  ;;  %v566_v16 = vld [vmem:[#allocation5 + $0xb78] sm:$0xff]  ;;  %v564_v28 = vld [vmem:[#allocation5 + $0xb68] sm:$0xff] }
 0x2cc   :  { %v7538_v34 = vadd.f32 %v7537_v25, %v7518_v22  ;;  %8856 = vmatmul.f32.vlgmr.msra.gmra.mxu2 %v12810_v30  ;;  %8816 = vmatmul.f32.vlgmr.msra.gmra.mxu0 %v12812_v39  ;;  %v12858_v30 = vld.sshfl [vmem:[#allocation1 + $0x10] sm:$0xff pattern:$0x73625140] }
 0x2cd   :  { %8876 = vmatmul.f32.vlgmr.msra.gmra.mxu3 %v12814_v49  ;;  %8836 = vmatmul.f32.vlgmr.msra.gmra.mxu1 %v12816_v36  ;;  %v555_v49 = vld [vmem:[#allocation5 + $0xb20] sm:$0xff]  ;;  %v12864_v36 = vld.sshfl [vmem:[#allocation1 + $0x8] sm:$0xff pattern:$0x73625140] }
 0x2ce   :  { %v7558_v38 = vadd.f32 %v7557_v35, %v7538_v34  ;;  %9015 = vmatpush.xpose.msra.mxu2 %v553_v27  ;;  %8975 = vmatpush.xpose.msra.mxu0 %v551_v29  ;;  %1277 = vst [vmem:[#allocation1] ss:$4 sm:$0xff] %v168_v51  ;;  %v12872_v61 = vld.sshfl [vmem:[#allocation1 + $0x20] sm:$0xff pattern:$0x73625140]  ;;  %v573_v51 = vld [vmem:[#allocation5 + $0xbb0] sm:$0xff] }
 0x2cf   :  { %v7577_v40 = vpop.f32.mrf.mxu2  ;;  %9035 = vmatpush.xpose.msra.mxu3 %v554_v31  ;;  %8995 = vmatpush.xpose.msra.mxu1 %v552_v41  ;;  %v12874_v7 = vld.sshfl [vmem:[#allocation1 + $0x38] sm:$0xff pattern:$0x73625140] }
 0x2d0   :  { %v7578_v33 = vadd.f32 %v7577_v40, %v7558_v38  ;;  %v7597_v46 = vpop.f32.mrf.mxu3  ;;  %v171_v38 = vld [vmem:[#allocation2 + $0x2f8] sm:$0xff] }
 0x2d1   :  { %v7617_v42 = vpop.f32.mrf.mxu0 }
 0x2d2   :  { %v7598_v39 = vadd.f32 %v7597_v46, %v7578_v33  ;;  %v7637_v48 = vpop.f32.mrf.mxu1  ;;  %v570_v33 = vld [vmem:[#allocation5 + $0xb98] sm:$0xff]  ;;  %v568_v46 = vld [vmem:[#allocation5 + $0xb88] sm:$0xff] }
 0x2d4   :  { %v7618_v53 = vadd.f32 %v7617_v42, %v7598_v39  ;;  %8936 = vmatmul.f32.vlgmr.msrb.gmra.mxu2 %v12822_v44  ;;  %8896 = vmatmul.f32.vlgmr.msrb.gmra.mxu0 %v12824_v56  ;;  %v12870_v44 = vld.sshfl [vmem:[#allocation1 + $0x30] sm:$0xff pattern:$0x73625140] }
 0x2d5   :  { %8956 = vmatmul.f32.vlgmr.msrb.gmra.mxu3 %v12826_v3  ;;  %8916 = vmatmul.f32.vlgmr.msrb.gmra.mxu1 %v12828_v50  ;;  %v559_v3 = vld [vmem:[#allocation5 + $0xb40] sm:$0xff]  ;;  %v12876_v50 = vld.sshfl [vmem:[#allocation1 + $0x28] sm:$0xff pattern:$0x73625140] }
 0x2d6   :  { %v7638_v55 = vadd.f32 %v7637_v48, %v7618_v53  ;;  %9095 = vmatpush.xpose.msrb.mxu2 %v557_v45  ;;  %9055 = vmatpush.xpose.msrb.mxu0 %v555_v49  ;;  %1278 = vst [vmem:[#allocation1 + $0x20] ss:$4 sm:$0xff] %v169_v4  ;;  %v12884_v14 = vld.sshfl [vmem:[#allocation1] sm:$0xff pattern:$0x73625140]  ;;  %v577_v4 = vld [vmem:[#allocation5 + $0xbd0] sm:$0xff] }
 0x2d7   :  { %v7657_v57 = vpop.f32.mrf.mxu2  ;;  %9115 = vmatpush.xpose.msrb.mxu3 %v558_v47  ;;  %9075 = vmatpush.xpose.msrb.mxu1 %v556_v58  ;;  %v12886_v24 = vld.sshfl [vmem:[#allocation1 + $0x18] sm:$0xff pattern:$0x73625140] }
 0x2d8   :  { %v7658_v52 = vadd.f32 %v7657_v57, %v7638_v55  ;;  %v7677_v1 = vpop.f32.mrf.mxu3  ;;  %v172_v55 = vld [vmem:[#allocation2 + $0x300] sm:$0xff] }
 0x2d9   :  { %v7697_v59 = vpop.f32.mrf.mxu0 }
 0x2da   :  { %v7678_v56 = vadd.f32 %v7677_v1, %v7658_v52  ;;  %v7717_v0 = vpop.f32.mrf.mxu1  ;;  %v574_v52 = vld [vmem:[#allocation5 + $0xbb8] sm:$0xff]  ;;  %v572_v1 = vld [vmem:[#allocation5 + $0xba8] sm:$0xff] }
 0x2dc   :  { %v7698_v6 = vadd.f32 %v7697_v59, %v7678_v56  ;;  %9016 = vmatmul.f32.vlgmr.msra.gmra.mxu2 %v12834_v60  ;;  %8976 = vmatmul.f32.vlgmr.msra.gmra.mxu0 %v12836_v9  ;;  %v12882_v60 = vld.sshfl [vmem:[#allocation1 + $0x10] sm:$0xff pattern:$0x73625140] }
 0x2dd   :  { %9036 = vmatmul.f32.vlgmr.msra.gmra.mxu3 %v12838_v20  ;;  %8996 = vmatmul.f32.vlgmr.msra.gmra.mxu1 %v12840_v2  ;;  %v563_v20 = vld [vmem:[#allocation5 + $0xb60] sm:$0xff]  ;;  %v12888_v2 = vld.sshfl [vmem:[#allocation1 + $0x8] sm:$0xff pattern:$0x73625140] }
 0x2de   :  { %v7718_v8 = vadd.f32 %v7717_v0, %v7698_v6  ;;  %9175 = vmatpush.xpose.msra.mxu2 %v561_v62  ;;  %9135 = vmatpush.xpose.msra.mxu0 %v559_v3  ;;  %1287 = vst [vmem:[#allocation1] ss:$4 sm:$0xff] %v170_v21  ;;  %v12896_v31 = vld.sshfl [vmem:[#allocation1 + $0x20] sm:$0xff pattern:$0x73625140]  ;;  %v581_v21 = vld [vmem:[#allocation5 + $0xbf0] sm:$0xff] }
 0x2df   :  { %v7737_v10 = vpop.f32.mrf.mxu2  ;;  %9195 = vmatpush.xpose.msra.mxu3 %v562_v63  ;;  %9155 = vmatpush.xpose.msra.mxu1 %v560_v11  ;;  %v12898_v41 = vld.sshfl [vmem:[#allocation1 + $0x38] sm:$0xff pattern:$0x73625140] }
 0x2e0   :  { %v7738_v5 = vadd.f32 %v7737_v10, %v7718_v8  ;;  %v7757_v18 = vpop.f32.mrf.mxu3  ;;  %v173_v8 = vld [vmem:[#allocation2 + $0x308] sm:$0xff] }
 0x2e1   :  { %v7777_v12 = vpop.f32.mrf.mxu0 }
 0x2e2   :  { %v7758_v9 = vadd.f32 %v7757_v18, %v7738_v5  ;;  %v7797_v17 = vpop.f32.mrf.mxu1  ;;  %v578_v5 = vld [vmem:[#allocation5 + $0xbd8] sm:$0xff]  ;;  %v576_v18 = vld [vmem:[#allocation5 + $0xbc8] sm:$0xff] }
 0x2e4   :  { %v7778_v23 = vadd.f32 %v7777_v12, %v7758_v9  ;;  %9096 = vmatmul.f32.vlgmr.msrb.gmra.mxu2 %v12846_v13  ;;  %9056 = vmatmul.f32.vlgmr.msrb.gmra.mxu0 %v12848_v26  ;;  %v12894_v13 = vld.sshfl [vmem:[#allocation1 + $0x30] sm:$0xff pattern:$0x73625140] }
 0x2e5   :  { %9116 = vmatmul.f32.vlgmr.msrb.gmra.mxu3 %v12850_v37  ;;  %9076 = vmatmul.f32.vlgmr.msrb.gmra.mxu1 %v12852_v19  ;;  %v567_v37 = vld [vmem:[#allocation5 + $0xb80] sm:$0xff]  ;;  %v12900_v19 = vld.sshfl [vmem:[#allocation1 + $0x28] sm:$0xff pattern:$0x73625140] }
 0x2e6   :  { %v7798_v25 = vadd.f32 %v7797_v17, %v7778_v23  ;;  %9255 = vmatpush.xpose.msrb.mxu2 %v565_v15  ;;  %9215 = vmatpush.xpose.msrb.mxu0 %v563_v20  ;;  %1288 = vst [vmem:[#allocation1 + $0x20] ss:$4 sm:$0xff] %v171_v38  ;;  %v12908_v47 = vld.sshfl [vmem:[#allocation1] sm:$0xff pattern:$0x73625140]  ;;  %v585_v38 = vld [vmem:[#allocation5 + $0xc10] sm:$0xff] }
 0x2e7   :  { %v7817_v27 = vpop.f32.mrf.mxu2  ;;  %9275 = vmatpush.xpose.msrb.mxu3 %v566_v16  ;;  %9235 = vmatpush.xpose.msrb.mxu1 %v564_v28  ;;  %v12910_v58 = vld.sshfl [vmem:[#allocation1 + $0x18] sm:$0xff pattern:$0x73625140] }
 0x2e8   :  { %v7818_v22 = vadd.f32 %v7817_v27, %v7798_v25  ;;  %v7837_v35 = vpop.f32.mrf.mxu3  ;;  %v174_v25 = vld [vmem:[#allocation2 + $0x310] sm:$0xff] }
 0x2e9   :  { %v7857_v29 = vpop.f32.mrf.mxu0 }
 0x2ea   :  { %v7838_v26 = vadd.f32 %v7837_v35, %v7818_v22  ;;  %v7877_v34 = vpop.f32.mrf.mxu1  ;;  %v582_v22 = vld [vmem:[#allocation5 + $0xbf8] sm:$0xff]  ;;  %v580_v35 = vld [vmem:[#allocation5 + $0xbe8] sm:$0xff] }
 0x2ec   :  { %v7858_v40 = vadd.f32 %v7857_v29, %v7838_v26  ;;  %9176 = vmatmul.f32.vlgmr.msra.gmra.mxu2 %v12858_v30  ;;  %9136 = vmatmul.f32.vlgmr.msra.gmra.mxu0 %v12860_v43  ;;  %v12906_v30 = vld.sshfl [vmem:[#allocation1 + $0x10] sm:$0xff pattern:$0x73625140] }
 0x2ed   :  { %9196 = vmatmul.f32.vlgmr.msra.gmra.mxu3 %v12862_v54  ;;  %9156 = vmatmul.f32.vlgmr.msra.gmra.mxu1 %v12864_v36  ;;  %v571_v54 = vld [vmem:[#allocation5 + $0xba0] sm:$0xff]  ;;  %v12912_v36 = vld.sshfl [vmem:[#allocation1 + $0x8] sm:$0xff pattern:$0x73625140] }
 0x2ee   :  { %v7878_v42 = vadd.f32 %v7877_v34, %v7858_v40  ;;  %9335 = vmatpush.xpose.msra.mxu2 %v569_v32  ;;  %9295 = vmatpush.xpose.msra.mxu0 %v567_v37  ;;  %1297 = vst [vmem:[#allocation1] ss:$4 sm:$0xff] %v172_v55  ;;  %v12920_v63 = vld.sshfl [vmem:[#allocation1 + $0x20] sm:$0xff pattern:$0x73625140]  ;;  %v589_v55 = vld [vmem:[#allocation5 + $0xc30] sm:$0xff] }
 0x2ef   :  { %v7897_v45 = vpop.f32.mrf.mxu2  ;;  %9355 = vmatpush.xpose.msra.mxu3 %v570_v33  ;;  %9315 = vmatpush.xpose.msra.mxu1 %v568_v46  ;;  %v12922_v11 = vld.sshfl [vmem:[#allocation1 + $0x38] sm:$0xff pattern:$0x73625140] }
 0x2f0   :  { %v7898_v39 = vadd.f32 %v7897_v45, %v7878_v42  ;;  %v7917_v48 = vpop.f32.mrf.mxu3  ;;  %v175_v42 = vld [vmem:[#allocation2 + $0x318] sm:$0xff] }
 0x2f1   :  { %v7937_v49 = vpop.f32.mrf.mxu0 }
 0x2f2   :  { %v7918_v43 = vadd.f32 %v7917_v48, %v7898_v39  ;;  %v7957_v53 = vpop.f32.mrf.mxu1  ;;  %v586_v39 = vld [vmem:[#allocation5 + $0xc18] sm:$0xff]  ;;  %v584_v48 = vld [vmem:[#allocation5 + $0xc08] sm:$0xff] }
 0x2f4   :  { %v7938_v57 = vadd.f32 %v7937_v49, %v7918_v43  ;;  %9256 = vmatmul.f32.vlgmr.msrb.gmra.mxu2 %v12870_v44  ;;  %9216 = vmatmul.f32.vlgmr.msrb.gmra.mxu0 %v12872_v61  ;;  %v12918_v44 = vld.sshfl [vmem:[#allocation1 + $0x30] sm:$0xff pattern:$0x73625140] }
 0x2f5   :  { %9276 = vmatmul.f32.vlgmr.msrb.gmra.mxu3 %v12874_v7  ;;  %9236 = vmatmul.f32.vlgmr.msrb.gmra.mxu1 %v12876_v50  ;;  %v575_v7 = vld [vmem:[#allocation5 + $0xbc0] sm:$0xff]  ;;  %v12924_v50 = vld.sshfl [vmem:[#allocation1 + $0x28] sm:$0xff pattern:$0x73625140] }
 0x2f6   :  { %v7958_v59 = vadd.f32 %v7957_v53, %v7938_v57  ;;  %9415 = vmatpush.xpose.msrb.mxu2 %v573_v51  ;;  %9375 = vmatpush.xpose.msrb.mxu0 %v571_v54  ;;  %1298 = vst [vmem:[#allocation1 + $0x20] ss:$4 sm:$0xff] %v173_v8  ;;  %v12932_v16 = vld.sshfl [vmem:[#allocation1] sm:$0xff pattern:$0x73625140]  ;;  %v593_v8 = vld [vmem:[#allocation5 + $0xc50] sm:$0xff] }
 0x2f7   :  { %v7977_v62 = vpop.f32.mrf.mxu2  ;;  %9435 = vmatpush.xpose.msrb.mxu3 %v574_v52  ;;  %9395 = vmatpush.xpose.msrb.mxu1 %v572_v1  ;;  %v12934_v28 = vld.sshfl [vmem:[#allocation1 + $0x18] sm:$0xff pattern:$0x73625140] }
 0x2f8   :  { %v7978_v56 = vadd.f32 %v7977_v62, %v7958_v59  ;;  %v7997_v0 = vpop.f32.mrf.mxu3  ;;  %v176_v59 = vld [vmem:[#allocation2 + $0x320] sm:$0xff] }
 0x2f9   :  { %v8017_v3 = vpop.f32.mrf.mxu0 }
 0x2fa   :  { %v7998_v61 = vadd.f32 %v7997_v0, %v7978_v56  ;;  %v8037_v6 = vpop.f32.mrf.mxu1  ;;  %v590_v56 = vld [vmem:[#allocation5 + $0xc38] sm:$0xff]  ;;  %v588_v0 = vld [vmem:[#allocation5 + $0xc28] sm:$0xff] }
 0x2fc   :  { %v8018_v10 = vadd.f32 %v8017_v3, %v7998_v61  ;;  %9336 = vmatmul.f32.vlgmr.msra.gmra.mxu2 %v12882_v60  ;;  %9296 = vmatmul.f32.vlgmr.msra.gmra.mxu0 %v12884_v14  ;;  %v12930_v60 = vld.sshfl [vmem:[#allocation1 + $0x10] sm:$0xff pattern:$0x73625140] }
 0x2fd   :  { %9356 = vmatmul.f32.vlgmr.msra.gmra.mxu3 %v12886_v24  ;;  %9316 = vmatmul.f32.vlgmr.msra.gmra.mxu1 %v12888_v2  ;;  %v579_v24 = vld [vmem:[#allocation5 + $0xbe0] sm:$0xff]  ;;  %v12936_v2 = vld.sshfl [vmem:[#allocation1 + $0x8] sm:$0xff pattern:$0x73625140] }
 0x2fe   :  { %v8038_v12 = vadd.f32 %v8037_v6, %v8018_v10  ;;  %9495 = vmatpush.xpose.msra.mxu2 %v577_v4  ;;  %9455 = vmatpush.xpose.msra.mxu0 %v575_v7  ;;  %1307 = vst [vmem:[#allocation1] ss:$4 sm:$0xff] %v174_v25  ;;  %v12944_v33 = vld.sshfl [vmem:[#allocation1 + $0x20] sm:$0xff pattern:$0x73625140]  ;;  %v597_v25 = vld [vmem:[#allocation5 + $0xc70] sm:$0xff] }
 0x2ff   :  { %v8057_v15 = vpop.f32.mrf.mxu2  ;;  %9515 = vmatpush.xpose.msra.mxu3 %v578_v5  ;;  %9475 = vmatpush.xpose.msra.mxu1 %v576_v18  ;;  %v12946_v46 = vld.sshfl [vmem:[#allocation1 + $0x38] sm:$0xff pattern:$0x73625140] }
 0x300   :  { %v8058_v9 = vadd.f32 %v8057_v15, %v8038_v12  ;;  %v8077_v17 = vpop.f32.mrf.mxu3  ;;  %v177_v12 = vld [vmem:[#allocation2 + $0x328] sm:$0xff] }
 0x301   :  { %v8097_v20 = vpop.f32.mrf.mxu0 }
 0x302   :  { %v8078_v14 = vadd.f32 %v8077_v17, %v8058_v9  ;;  %v8117_v23 = vpop.f32.mrf.mxu1  ;;  %v594_v9 = vld [vmem:[#allocation5 + $0xc58] sm:$0xff]  ;;  %v592_v17 = vld [vmem:[#allocation5 + $0xc48] sm:$0xff] }
 0x304   :  { %v8098_v27 = vadd.f32 %v8097_v20, %v8078_v14  ;;  %9416 = vmatmul.f32.vlgmr.msrb.gmra.mxu2 %v12894_v13  ;;  %9376 = vmatmul.f32.vlgmr.msrb.gmra.mxu0 %v12896_v31  ;;  %v12942_v13 = vld.sshfl [vmem:[#allocation1 + $0x30] sm:$0xff pattern:$0x73625140] }
 0x305   :  { %9436 = vmatmul.f32.vlgmr.msrb.gmra.mxu3 %v12898_v41  ;;  %9396 = vmatmul.f32.vlgmr.msrb.gmra.mxu1 %v12900_v19  ;;  %v583_v41 = vld [vmem:[#allocation5 + $0xc00] sm:$0xff]  ;;  %v12948_v19 = vld.sshfl [vmem:[#allocation1 + $0x28] sm:$0xff pattern:$0x73625140] }
 0x306   :  { %v8118_v29 = vadd.f32 %v8117_v23, %v8098_v27  ;;  %9575 = vmatpush.xpose.msrb.mxu2 %v581_v21  ;;  %9535 = vmatpush.xpose.msrb.mxu0 %v579_v24  ;;  %1308 = vst [vmem:[#allocation1 + $0x20] ss:$4 sm:$0xff] %v175_v42  ;;  %v12956_v52 = vld.sshfl [vmem:[#allocation1] sm:$0xff pattern:$0x73625140]  ;;  %v601_v42 = vld [vmem:[#allocation5 + $0xc90] sm:$0xff] }
 0x307   :  { %v8137_v32 = vpop.f32.mrf.mxu2  ;;  %9595 = vmatpush.xpose.msrb.mxu3 %v582_v22  ;;  %9555 = vmatpush.xpose.msrb.mxu1 %v580_v35  ;;  %v12958_v1 = vld.sshfl [vmem:[#allocation1 + $0x18] sm:$0xff pattern:$0x73625140] }
 0x308   :  { %v8138_v26 = vadd.f32 %v8137_v32, %v8118_v29  ;;  %v8157_v34 = vpop.f32.mrf.mxu3  ;;  %v178_v29 = vld [vmem:[#allocation2 + $0x330] sm:$0xff] }
 0x309   :  { %v8177_v37 = vpop.f32.mrf.mxu0 }
 0x30a   :  { %v8158_v31 = vadd.f32 %v8157_v34, %v8138_v26  ;;  %v8197_v40 = vpop.f32.mrf.mxu1  ;;  %v598_v26 = vld [vmem:[#allocation5 + $0xc78] sm:$0xff]  ;;  %v596_v34 = vld [vmem:[#allocation5 + $0xc68] sm:$0xff] }
 0x30c   :  { %v8178_v45 = vadd.f32 %v8177_v37, %v8158_v31  ;;  %9496 = vmatmul.f32.vlgmr.msra.gmra.mxu2 %v12906_v30  ;;  %9456 = vmatmul.f32.vlgmr.msra.gmra.mxu0 %v12908_v47  ;;  %v12954_v30 = vld.sshfl [vmem:[#allocation1 + $0x10] sm:$0xff pattern:$0x73625140] }
 0x30d   :  { %9516 = vmatmul.f32.vlgmr.msra.gmra.mxu3 %v12910_v58  ;;  %9476 = vmatmul.f32.vlgmr.msra.gmra.mxu1 %v12912_v36  ;;  %v587_v58 = vld [vmem:[#allocation5 + $0xc20] sm:$0xff]  ;;  %v12960_v36 = vld.sshfl [vmem:[#allocation1 + $0x8] sm:$0xff pattern:$0x73625140] }
 0x30e   :  { %v8198_v49 = vadd.f32 %v8197_v40, %v8178_v45  ;;  %9655 = vmatpush.xpose.msra.mxu2 %v585_v38  ;;  %9615 = vmatpush.xpose.msra.mxu0 %v583_v41  ;;  %1317 = vst [vmem:[#allocation1] ss:$4 sm:$0xff] %v176_v59  ;;  %v12968_v5 = vld.sshfl [vmem:[#allocation1 + $0x20] sm:$0xff pattern:$0x73625140]  ;;  %v605_v59 = vld [vmem:[#allocation5 + $0xcb0] sm:$0xff] }
 0x30f   :  { %v8217_v51 = vpop.f32.mrf.mxu2  ;;  %9675 = vmatpush.xpose.msra.mxu3 %v586_v39  ;;  %9635 = vmatpush.xpose.msra.mxu1 %v584_v48  ;;  %v12970_v18 = vld.sshfl [vmem:[#allocation1 + $0x38] sm:$0xff pattern:$0x73625140] }
 0x310   :  { %v8218_v43 = vadd.f32 %v8217_v51, %v8198_v49  ;;  %v8237_v53 = vpop.f32.mrf.mxu3  ;;  %v179_v49 = vld [vmem:[#allocation2 + $0x338] sm:$0xff] }
 0x311   :  { %v8257_v54 = vpop.f32.mrf.mxu0 }
 0x312   :  { %v8238_v47 = vadd.f32 %v8237_v53, %v8218_v43  ;;  %v8277_v57 = vpop.f32.mrf.mxu1  ;;  %v602_v43 = vld [vmem:[#allocation5 + $0xc98] sm:$0xff]  ;;  %v600_v53 = vld [vmem:[#allocation5 + $0xc88] sm:$0xff] }
 0x314   :  { %v8258_v62 = vadd.f32 %v8257_v54, %v8238_v47  ;;  %9576 = vmatmul.f32.vlgmr.msrb.gmra.mxu2 %v12918_v44  ;;  %9536 = vmatmul.f32.vlgmr.msrb.gmra.mxu0 %v12920_v63  ;;  %v12966_v44 = vld.sshfl [vmem:[#allocation1 + $0x30] sm:$0xff pattern:$0x73625140] }
 0x315   :  { %9596 = vmatmul.f32.vlgmr.msrb.gmra.mxu3 %v12922_v11  ;;  %9556 = vmatmul.f32.vlgmr.msrb.gmra.mxu1 %v12924_v50  ;;  %v591_v11 = vld [vmem:[#allocation5 + $0xc40] sm:$0xff]  ;;  %v12972_v50 = vld.sshfl [vmem:[#allocation1 + $0x28] sm:$0xff pattern:$0x73625140] }
 0x316   :  { %v8278_v3 = vadd.f32 %v8277_v57, %v8258_v62  ;;  %9735 = vmatpush.xpose.msrb.mxu2 %v589_v55  ;;  %9695 = vmatpush.xpose.msrb.mxu0 %v587_v58  ;;  %1318 = vst [vmem:[#allocation1 + $0x20] ss:$4 sm:$0xff] %v177_v12  ;;  %v12980_v22 = vld.sshfl [vmem:[#allocation1] sm:$0xff pattern:$0x73625140]  ;;  %v609_v12 = vld [vmem:[#allocation5 + $0xcd0] sm:$0xff] }
 0x317   :  { %v8297_v4 = vpop.f32.mrf.mxu2  ;;  %9755 = vmatpush.xpose.msrb.mxu3 %v590_v56  ;;  %9715 = vmatpush.xpose.msrb.mxu1 %v588_v0  ;;  %v12982_v35 = vld.sshfl [vmem:[#allocation1 + $0x18] sm:$0xff pattern:$0x73625140] }
 0x318   :  { %v8298_v61 = vadd.f32 %v8297_v4, %v8278_v3  ;;  %v8317_v6 = vpop.f32.mrf.mxu3  ;;  %v180_v3 = vld [vmem:[#allocation2 + $0x340] sm:$0xff] }
 0x319   :  { %v8337_v7 = vpop.f32.mrf.mxu0 }
 0x31a   :  { %v8318_v63 = vadd.f32 %v8317_v6, %v8298_v61  ;;  %v8357_v10 = vpop.f32.mrf.mxu1  ;;  %v606_v61 = vld [vmem:[#allocation5 + $0xcb8] sm:$0xff]  ;;  %v604_v6 = vld [vmem:[#allocation5 + $0xca8] sm:$0xff] }
 0x31c   :  { %v8338_v15 = vadd.f32 %v8337_v7, %v8318_v63  ;;  %9656 = vmatmul.f32.vlgmr.msra.gmra.mxu2 %v12930_v60  ;;  %9616 = vmatmul.f32.vlgmr.msra.gmra.mxu0 %v12932_v16  ;;  %v12978_v60 = vld.sshfl [vmem:[#allocation1 + $0x10] sm:$0xff pattern:$0x73625140] }
 0x31d   :  { %9676 = vmatmul.f32.vlgmr.msra.gmra.mxu3 %v12934_v28  ;;  %9636 = vmatmul.f32.vlgmr.msra.gmra.mxu1 %v12936_v2  ;;  %v595_v28 = vld [vmem:[#allocation5 + $0xc60] sm:$0xff]  ;;  %v12984_v2 = vld.sshfl [vmem:[#allocation1 + $0x8] sm:$0xff pattern:$0x73625140] }
 0x31e   :  { %v8358_v20 = vadd.f32 %v8357_v10, %v8338_v15  ;;  %9815 = vmatpush.xpose.msra.mxu2 %v593_v8  ;;  %9775 = vmatpush.xpose.msra.mxu0 %v591_v11  ;;  %1327 = vst [vmem:[#allocation1] ss:$4 sm:$0xff] %v178_v29  ;;  %v12992_v39 = vld.sshfl [vmem:[#allocation1 + $0x20] sm:$0xff pattern:$0x73625140]  ;;  %v613_v29 = vld [vmem:[#allocation5 + $0xcf0] sm:$0xff] }
 0x31f   :  { %v8377_v21 = vpop.f32.mrf.mxu2  ;;  %9835 = vmatpush.xpose.msra.mxu3 %v594_v9  ;;  %9795 = vmatpush.xpose.msra.mxu1 %v592_v17  ;;  %v12994_v48 = vld.sshfl [vmem:[#allocation1 + $0x38] sm:$0xff pattern:$0x73625140] }
 0x320   :  { %v8378_v14 = vadd.f32 %v8377_v21, %v8358_v20  ;;  %v8397_v23 = vpop.f32.mrf.mxu3  ;;  %v181_v20 = vld [vmem:[#allocation2 + $0x348] sm:$0xff] }
 0x321   :  { %v8417_v24 = vpop.f32.mrf.mxu0 }
 0x322   :  { %v8398_v16 = vadd.f32 %v8397_v23, %v8378_v14  ;;  %v8437_v27 = vpop.f32.mrf.mxu1  ;;  %v610_v14 = vld [vmem:[#allocation5 + $0xcd8] sm:$0xff]  ;;  %v608_v23 = vld [vmem:[#allocation5 + $0xcc8] sm:$0xff] }
 0x324   :  { %v8418_v32 = vadd.f32 %v8417_v24, %v8398_v16  ;;  %9736 = vmatmul.f32.vlgmr.msrb.gmra.mxu2 %v12942_v13  ;;  %9696 = vmatmul.f32.vlgmr.msrb.gmra.mxu0 %v12944_v33  ;;  %v12990_v13 = vld.sshfl [vmem:[#allocation1 + $0x30] sm:$0xff pattern:$0x73625140] }
 0x325   :  { %9756 = vmatmul.f32.vlgmr.msrb.gmra.mxu3 %v12946_v46  ;;  %9716 = vmatmul.f32.vlgmr.msrb.gmra.mxu1 %v12948_v19  ;;  %v599_v46 = vld [vmem:[#allocation5 + $0xc80] sm:$0xff]  ;;  %v12996_v19 = vld.sshfl [vmem:[#allocation1 + $0x28] sm:$0xff pattern:$0x73625140] }
 0x326   :  { %v8438_v37 = vadd.f32 %v8437_v27, %v8418_v32  ;;  %9895 = vmatpush.xpose.msrb.mxu2 %v597_v25  ;;  %9855 = vmatpush.xpose.msrb.mxu0 %v595_v28  ;;  %1328 = vst [vmem:[#allocation1 + $0x20] ss:$4 sm:$0xff] %v179_v49  ;;  %v13004_v56 = vld.sshfl [vmem:[#allocation1] sm:$0xff pattern:$0x73625140]  ;;  %v617_v49 = vld [vmem:[#allocation5 + $0xd10] sm:$0xff] }
 0x327   :  { %v8457_v38 = vpop.f32.mrf.mxu2  ;;  %9915 = vmatpush.xpose.msrb.mxu3 %v598_v26  ;;  %9875 = vmatpush.xpose.msrb.mxu1 %v596_v34  ;;  %v13006_v0 = vld.sshfl [vmem:[#allocation1 + $0x18] sm:$0xff pattern:$0x73625140] }
 0x328   :  { %v8458_v31 = vadd.f32 %v8457_v38, %v8438_v37  ;;  %v8477_v40 = vpop.f32.mrf.mxu3  ;;  %v182_v37 = vld [vmem:[#allocation2 + $0x350] sm:$0xff] }
 0x329   :  { %v8497_v41 = vpop.f32.mrf.mxu0 }
 0x32a   :  { %v8478_v33 = vadd.f32 %v8477_v40, %v8458_v31  ;;  %v8517_v45 = vpop.f32.mrf.mxu1  ;;  %v614_v31 = vld [vmem:[#allocation5 + $0xcf8] sm:$0xff]  ;;  %v612_v40 = vld [vmem:[#allocation5 + $0xce8] sm:$0xff] }
 0x32c   :  { %v8498_v51 = vadd.f32 %v8497_v41, %v8478_v33  ;;  %9816 = vmatmul.f32.vlgmr.msra.gmra.mxu2 %v12954_v30  ;;  %9776 = vmatmul.f32.vlgmr.msra.gmra.mxu0 %v12956_v52  ;;  %v13002_v30 = vld.sshfl [vmem:[#allocation1 + $0x10] sm:$0xff pattern:$0x73625140] }
 0x32d   :  { %9836 = vmatmul.f32.vlgmr.msra.gmra.mxu3 %v12958_v1  ;;  %9796 = vmatmul.f32.vlgmr.msra.gmra.mxu1 %v12960_v36  ;;  %v603_v1 = vld [vmem:[#allocation5 + $0xca0] sm:$0xff]  ;;  %v13008_v36 = vld.sshfl [vmem:[#allocation1 + $0x8] sm:$0xff pattern:$0x73625140] }
 0x32e   :  { %v8518_v54 = vadd.f32 %v8517_v45, %v8498_v51  ;;  %9975 = vmatpush.xpose.msra.mxu2 %v601_v42  ;;  %9935 = vmatpush.xpose.msra.mxu0 %v599_v46  ;;  %1337 = vst [vmem:[#allocation1] ss:$4 sm:$0xff] %v180_v3  ;;  %v13016_v9 = vld.sshfl [vmem:[#allocation1 + $0x20] sm:$0xff pattern:$0x73625140]  ;;  %v621_v3 = vld [vmem:[#allocation5 + $0xd30] sm:$0xff] }
 0x32f   :  { %v8537_v55 = vpop.f32.mrf.mxu2  ;;  %9995 = vmatpush.xpose.msra.mxu3 %v602_v43  ;;  %9955 = vmatpush.xpose.msra.mxu1 %v600_v53  ;;  %v13018_v17 = vld.sshfl [vmem:[#allocation1 + $0x38] sm:$0xff pattern:$0x73625140] }
 0x330   :  { %v8538_v47 = vadd.f32 %v8537_v55, %v8518_v54  ;;  %v8557_v57 = vpop.f32.mrf.mxu3  ;;  %v183_v54 = vld [vmem:[#allocation2 + $0x358] sm:$0xff] }
 0x331   :  { %v8577_v58 = vpop.f32.mrf.mxu0 }
 0x332   :  { %v8558_v52 = vadd.f32 %v8557_v57, %v8538_v47  ;;  %v8597_v62 = vpop.f32.mrf.mxu1  ;;  %v618_v47 = vld [vmem:[#allocation5 + $0xd18] sm:$0xff]  ;;  %v616_v57 = vld [vmem:[#allocation5 + $0xd08] sm:$0xff] }
 0x334   :  { %v8578_v4 = vadd.f32 %v8577_v58, %v8558_v52  ;;  %9896 = vmatmul.f32.vlgmr.msrb.gmra.mxu2 %v12966_v44  ;;  %9856 = vmatmul.f32.vlgmr.msrb.gmra.mxu0 %v12968_v5  ;;  %v13014_v44 = vld.sshfl [vmem:[#allocation1 + $0x30] sm:$0xff pattern:$0x73625140] }
 0x335   :  { %9916 = vmatmul.f32.vlgmr.msrb.gmra.mxu3 %v12970_v18  ;;  %9876 = vmatmul.f32.vlgmr.msrb.gmra.mxu1 %v12972_v50  ;;  %v607_v18 = vld [vmem:[#allocation5 + $0xcc0] sm:$0xff]  ;;  %v13020_v50 = vld.sshfl [vmem:[#allocation1 + $0x28] sm:$0xff pattern:$0x73625140] }
 0x336   :  { %v8598_v7 = vadd.f32 %v8597_v62, %v8578_v4  ;;  %10055 = vmatpush.xpose.msrb.mxu2 %v605_v59  ;;  %10015 = vmatpush.xpose.msrb.mxu0 %v603_v1  ;;  %1338 = vst [vmem:[#allocation1 + $0x20] ss:$4 sm:$0xff] %v181_v20  ;;  %v13028_v26 = vld.sshfl [vmem:[#allocation1] sm:$0xff pattern:$0x73625140]  ;;  %v625_v20 = vld [vmem:[#allocation5 + $0xd50] sm:$0xff] }
 0x337   :  { %v8617_v8 = vpop.f32.mrf.mxu2  ;;  %10075 = vmatpush.xpose.msrb.mxu3 %v606_v61  ;;  %10035 = vmatpush.xpose.msrb.mxu1 %v604_v6  ;;  %v13030_v34 = vld.sshfl [vmem:[#allocation1 + $0x18] sm:$0xff pattern:$0x73625140] }
 0x338   :  { %v8618_v63 = vadd.f32 %v8617_v8, %v8598_v7  ;;  %v8637_v10 = vpop.f32.mrf.mxu3  ;;  %v184_v7 = vld [vmem:[#allocation2 + $0x360] sm:$0xff] }
 0x339   :  { %v8657_v11 = vpop.f32.mrf.mxu0 }
 0x33a   :  { %v8638_v5 = vadd.f32 %v8637_v10, %v8618_v63  ;;  %v8677_v15 = vpop.f32.mrf.mxu1  ;;  %v622_v63 = vld [vmem:[#allocation5 + $0xd38] sm:$0xff]  ;;  %v620_v10 = vld [vmem:[#allocation5 + $0xd28] sm:$0xff] }
 0x33c   :  { %v8658_v21 = vadd.f32 %v8657_v11, %v8638_v5  ;;  %9976 = vmatmul.f32.vlgmr.msra.gmra.mxu2 %v12978_v60  ;;  %9936 = vmatmul.f32.vlgmr.msra.gmra.mxu0 %v12980_v22  ;;  %v13026_v60 = vld.sshfl [vmem:[#allocation1 + $0x10] sm:$0xff pattern:$0x73625140] }
 0x33d   :  { %9996 = vmatmul.f32.vlgmr.msra.gmra.mxu3 %v12982_v35  ;;  %9956 = vmatmul.f32.vlgmr.msra.gmra.mxu1 %v12984_v2  ;;  %v611_v35 = vld [vmem:[#allocation5 + $0xce0] sm:$0xff]  ;;  %v13032_v2 = vld.sshfl [vmem:[#allocation1 + $0x8] sm:$0xff pattern:$0x73625140] }
 0x33e   :  { %v8678_v24 = vadd.f32 %v8677_v15, %v8658_v21  ;;  %10135 = vmatpush.xpose.msra.mxu2 %v609_v12  ;;  %10095 = vmatpush.xpose.msra.mxu0 %v607_v18  ;;  %1347 = vst [vmem:[#allocation1] ss:$4 sm:$0xff] %v182_v37  ;;  %v13040_v43 = vld.sshfl [vmem:[#allocation1 + $0x20] sm:$0xff pattern:$0x73625140]  ;;  %v629_v37 = vld [vmem:[#allocation5 + $0xd70] sm:$0xff] }
 0x33f   :  { %v8697_v25 = vpop.f32.mrf.mxu2  ;;  %10155 = vmatpush.xpose.msra.mxu3 %v610_v14  ;;  %10115 = vmatpush.xpose.msra.mxu1 %v608_v23  ;;  %v13042_v53 = vld.sshfl [vmem:[#allocation1 + $0x38] sm:$0xff pattern:$0x73625140] }
 0x340   :  { %v8698_v16 = vadd.f32 %v8697_v25, %v8678_v24  ;;  %v8717_v27 = vpop.f32.mrf.mxu3  ;;  %v185_v24 = vld [vmem:[#allocation2 + $0x368] sm:$0xff] }
 0x341   :  { %v8737_v28 = vpop.f32.mrf.mxu0 }
 0x342   :  { %v8718_v22 = vadd.f32 %v8717_v27, %v8698_v16  ;;  %v8757_v32 = vpop.f32.mrf.mxu1  ;;  %v626_v16 = vld [vmem:[#allocation5 + $0xd58] sm:$0xff]  ;;  %v624_v27 = vld [vmem:[#allocation5 + $0xd48] sm:$0xff] }
 0x344   :  { %v8738_v38 = vadd.f32 %v8737_v28, %v8718_v22  ;;  %10056 = vmatmul.f32.vlgmr.msrb.gmra.mxu2 %v12990_v13  ;;  %10016 = vmatmul.f32.vlgmr.msrb.gmra.mxu0 %v12992_v39  ;;  %v13038_v13 = vld.sshfl [vmem:[#allocation1 + $0x30] sm:$0xff pattern:$0x73625140] }
 0x345   :  { %10076 = vmatmul.f32.vlgmr.msrb.gmra.mxu3 %v12994_v48  ;;  %10036 = vmatmul.f32.vlgmr.msrb.gmra.mxu1 %v12996_v19  ;;  %v615_v48 = vld [vmem:[#allocation5 + $0xd00] sm:$0xff]  ;;  %v13044_v19 = vld.sshfl [vmem:[#allocation1 + $0x28] sm:$0xff pattern:$0x73625140] }
 0x346   :  { %v8758_v41 = vadd.f32 %v8757_v32, %v8738_v38  ;;  %10215 = vmatpush.xpose.msrb.mxu2 %v613_v29  ;;  %10175 = vmatpush.xpose.msrb.mxu0 %v611_v35  ;;  %1348 = vst [vmem:[#allocation1 + $0x20] ss:$4 sm:$0xff] %v183_v54  ;;  %v13052_v61 = vld.sshfl [vmem:[#allocation1] sm:$0xff pattern:$0x73625140]  ;;  %v633_v54 = vld [vmem:[#allocation5 + $0xd90] sm:$0xff] }
 0x347   :  { %v8777_v42 = vpop.f32.mrf.mxu2  ;;  %10235 = vmatpush.xpose.msrb.mxu3 %v614_v31  ;;  %10195 = vmatpush.xpose.msrb.mxu1 %v612_v40  ;;  %v13054_v6 = vld.sshfl [vmem:[#allocation1 + $0x18] sm:$0xff pattern:$0x73625140] }
 0x348   :  { %v8778_v33 = vadd.f32 %v8777_v42, %v8758_v41  ;;  %v8797_v45 = vpop.f32.mrf.mxu3  ;;  %v186_v41 = vld [vmem:[#allocation2 + $0x370] sm:$0xff] }
 0x349   :  { %v8817_v46 = vpop.f32.mrf.mxu0 }
 0x34a   :  { %v8798_v39 = vadd.f32 %v8797_v45, %v8778_v33  ;;  %v8837_v51 = vpop.f32.mrf.mxu1  ;;  %v630_v33 = vld [vmem:[#allocation5 + $0xd78] sm:$0xff]  ;;  %v628_v45 = vld [vmem:[#allocation5 + $0xd68] sm:$0xff] }
 0x34c   :  { %v8818_v55 = vadd.f32 %v8817_v46, %v8798_v39  ;;  %10136 = vmatmul.f32.vlgmr.msra.gmra.mxu2 %v13002_v30  ;;  %10096 = vmatmul.f32.vlgmr.msra.gmra.mxu0 %v13004_v56  ;;  %v13050_v30 = vld.sshfl [vmem:[#allocation1 + $0x10] sm:$0xff pattern:$0x73625140] }
 0x34d   :  { %10156 = vmatmul.f32.vlgmr.msra.gmra.mxu3 %v13006_v0  ;;  %10116 = vmatmul.f32.vlgmr.msra.gmra.mxu1 %v13008_v36  ;;  %v619_v0 = vld [vmem:[#allocation5 + $0xd20] sm:$0xff]  ;;  %v13056_v36 = vld.sshfl [vmem:[#allocation1 + $0x8] sm:$0xff pattern:$0x73625140] }
 0x34e   :  { %v8838_v58 = vadd.f32 %v8837_v51, %v8818_v55  ;;  %10295 = vmatpush.xpose.msra.mxu2 %v617_v49  ;;  %10255 = vmatpush.xpose.msra.mxu0 %v615_v48  ;;  %1357 = vst [vmem:[#allocation1] ss:$4 sm:$0xff] %v184_v7  ;;  %v13064_v14 = vld.sshfl [vmem:[#allocation1 + $0x20] sm:$0xff pattern:$0x73625140]  ;;  %v637_v7 = vld [vmem:[#allocation5 + $0xdb0] sm:$0xff] }
 0x34f   :  { %v8857_v59 = vpop.f32.mrf.mxu2  ;;  %10315 = vmatpush.xpose.msra.mxu3 %v618_v47  ;;  %10275 = vmatpush.xpose.msra.mxu1 %v616_v57  ;;  %v13066_v23 = vld.sshfl [vmem:[#allocation1 + $0x38] sm:$0xff pattern:$0x73625140] }
 0x350   :  { %v8858_v52 = vadd.f32 %v8857_v59, %v8838_v58  ;;  %v8877_v62 = vpop.f32.mrf.mxu3  ;;  %v187_v58 = vld [vmem:[#allocation2 + $0x378] sm:$0xff] }
 0x351   :  { %v8897_v1 = vpop.f32.mrf.mxu0 }
 0x352   :  { %v8878_v56 = vadd.f32 %v8877_v62, %v8858_v52  ;;  %v8917_v4 = vpop.f32.mrf.mxu1  ;;  %v634_v52 = vld [vmem:[#allocation5 + $0xd98] sm:$0xff]  ;;  %v632_v62 = vld [vmem:[#allocation5 + $0xd88] sm:$0xff] }
 0x354   :  { %v8898_v8 = vadd.f32 %v8897_v1, %v8878_v56  ;;  %10216 = vmatmul.f32.vlgmr.msrb.gmra.mxu2 %v13014_v44  ;;  %10176 = vmatmul.f32.vlgmr.msrb.gmra.mxu0 %v13016_v9  ;;  %v13062_v44 = vld.sshfl [vmem:[#allocation1 + $0x30] sm:$0xff pattern:$0x73625140] }
 0x355   :  { %10236 = vmatmul.f32.vlgmr.msrb.gmra.mxu3 %v13018_v17  ;;  %10196 = vmatmul.f32.vlgmr.msrb.gmra.mxu1 %v13020_v50  ;;  %v623_v17 = vld [vmem:[#allocation5 + $0xd40] sm:$0xff]  ;;  %v13068_v50 = vld.sshfl [vmem:[#allocation1 + $0x28] sm:$0xff pattern:$0x73625140] }
 0x356   :  { %v8918_v11 = vadd.f32 %v8917_v4, %v8898_v8  ;;  %10375 = vmatpush.xpose.msrb.mxu2 %v621_v3  ;;  %10335 = vmatpush.xpose.msrb.mxu0 %v619_v0  ;;  %1358 = vst [vmem:[#allocation1 + $0x20] ss:$4 sm:$0xff] %v185_v24  ;;  %v13076_v31 = vld.sshfl [vmem:[#allocation1] sm:$0xff pattern:$0x73625140]  ;;  %v641_v24 = vld [vmem:[#allocation5 + $0xdd0] sm:$0xff] }
 0x357   :  { %v8937_v12 = vpop.f32.mrf.mxu2  ;;  %10395 = vmatpush.xpose.msrb.mxu3 %v622_v63  ;;  %10355 = vmatpush.xpose.msrb.mxu1 %v620_v10  ;;  %v13078_v40 = vld.sshfl [vmem:[#allocation1 + $0x18] sm:$0xff pattern:$0x73625140] }
 0x358   :  { %v8938_v5 = vadd.f32 %v8937_v12, %v8918_v11  ;;  %v8957_v15 = vpop.f32.mrf.mxu3  ;;  %v188_v11 = vld [vmem:[#allocation2 + $0x380] sm:$0xff] }
 0x359   :  { %v8977_v18 = vpop.f32.mrf.mxu0 }
 0x35a   :  { %v8958_v9 = vadd.f32 %v8957_v15, %v8938_v5  ;;  %v8997_v21 = vpop.f32.mrf.mxu1  ;;  %v638_v5 = vld [vmem:[#allocation5 + $0xdb8] sm:$0xff]  ;;  %v636_v15 = vld [vmem:[#allocation5 + $0xda8] sm:$0xff] }
 0x35c   :  { %v8978_v25 = vadd.f32 %v8977_v18, %v8958_v9  ;;  %10296 = vmatmul.f32.vlgmr.msra.gmra.mxu2 %v13026_v60  ;;  %10256 = vmatmul.f32.vlgmr.msra.gmra.mxu0 %v13028_v26  ;;  %v13074_v60 = vld.sshfl [vmem:[#allocation1 + $0x10] sm:$0xff pattern:$0x73625140] }
 0x35d   :  { %10316 = vmatmul.f32.vlgmr.msra.gmra.mxu3 %v13030_v34  ;;  %10276 = vmatmul.f32.vlgmr.msra.gmra.mxu1 %v13032_v2  ;;  %v627_v34 = vld [vmem:[#allocation5 + $0xd60] sm:$0xff]  ;;  %v13080_v2 = vld.sshfl [vmem:[#allocation1 + $0x8] sm:$0xff pattern:$0x73625140] }
 0x35e   :  { %v8998_v28 = vadd.f32 %v8997_v21, %v8978_v25  ;;  %10455 = vmatpush.xpose.msra.mxu2 %v625_v20  ;;  %10415 = vmatpush.xpose.msra.mxu0 %v623_v17  ;;  %1367 = vst [vmem:[#allocation1] ss:$4 sm:$0xff] %v186_v41  ;;  %v13088_v47 = vld.sshfl [vmem:[#allocation1 + $0x20] sm:$0xff pattern:$0x73625140]  ;;  %v645_v41 = vld [vmem:[#allocation5 + $0xdf0] sm:$0xff] }
 0x35f   :  { %v9017_v29 = vpop.f32.mrf.mxu2  ;;  %10475 = vmatpush.xpose.msra.mxu3 %v626_v16  ;;  %10435 = vmatpush.xpose.msra.mxu1 %v624_v27  ;;  %v13090_v57 = vld.sshfl [vmem:[#allocation1 + $0x38] sm:$0xff pattern:$0x73625140] }
 0x360   :  { %v9018_v22 = vadd.f32 %v9017_v29, %v8998_v28  ;;  %v9037_v32 = vpop.f32.mrf.mxu3  ;;  %v189_v28 = vld [vmem:[#allocation2 + $0x388] sm:$0xff] }
 0x361   :  { %v9057_v35 = vpop.f32.mrf.mxu0 }
 0x362   :  { %v9038_v26 = vadd.f32 %v9037_v32, %v9018_v22  ;;  %v9077_v38 = vpop.f32.mrf.mxu1  ;;  %v642_v22 = vld [vmem:[#allocation5 + $0xdd8] sm:$0xff]  ;;  %v640_v32 = vld [vmem:[#allocation5 + $0xdc8] sm:$0xff] }
 0x364   :  { %v9058_v42 = vadd.f32 %v9057_v35, %v9038_v26  ;;  %10376 = vmatmul.f32.vlgmr.msrb.gmra.mxu2 %v13038_v13  ;;  %10336 = vmatmul.f32.vlgmr.msrb.gmra.mxu0 %v13040_v43  ;;  %v13086_v13 = vld.sshfl [vmem:[#allocation1 + $0x30] sm:$0xff pattern:$0x73625140] }
 0x365   :  { %10396 = vmatmul.f32.vlgmr.msrb.gmra.mxu3 %v13042_v53  ;;  %10356 = vmatmul.f32.vlgmr.msrb.gmra.mxu1 %v13044_v19  ;;  %v631_v53 = vld [vmem:[#allocation5 + $0xd80] sm:$0xff]  ;;  %v13092_v19 = vld.sshfl [vmem:[#allocation1 + $0x28] sm:$0xff pattern:$0x73625140] }
 0x366   :  { %v9078_v46 = vadd.f32 %v9077_v38, %v9058_v42  ;;  %10535 = vmatpush.xpose.msrb.mxu2 %v629_v37  ;;  %10495 = vmatpush.xpose.msrb.mxu0 %v627_v34  ;;  %1368 = vst [vmem:[#allocation1 + $0x20] ss:$4 sm:$0xff] %v187_v58  ;;  %v13100_v63 = vld.sshfl [vmem:[#allocation1] sm:$0xff pattern:$0x73625140]  ;;  %v649_v58 = vld [vmem:[#allocation5 + $0xe10] sm:$0xff] }
 0x367   :  { %v9097_v49 = vpop.f32.mrf.mxu2  ;;  %10555 = vmatpush.xpose.msrb.mxu3 %v630_v33  ;;  %10515 = vmatpush.xpose.msrb.mxu1 %v628_v45  ;;  %v13102_v10 = vld.sshfl [vmem:[#allocation1 + $0x18] sm:$0xff pattern:$0x73625140] }
 0x368   :  { %v9098_v39 = vadd.f32 %v9097_v49, %v9078_v46  ;;  %v9117_v51 = vpop.f32.mrf.mxu3  ;;  %v190_v46 = vld [vmem:[#allocation2 + $0x390] sm:$0xff] }
 0x369   :  { %v9137_v48 = vpop.f32.mrf.mxu0 }
 0x36a   :  { %v9118_v43 = vadd.f32 %v9117_v51, %v9098_v39  ;;  %v9157_v55 = vpop.f32.mrf.mxu1  ;;  %v646_v39 = vld [vmem:[#allocation5 + $0xdf8] sm:$0xff]  ;;  %v644_v51 = vld [vmem:[#allocation5 + $0xde8] sm:$0xff] }
 0x36c   :  { %v9138_v59 = vadd.f32 %v9137_v48, %v9118_v43  ;;  %10456 = vmatmul.f32.vlgmr.msra.gmra.mxu2 %v13050_v30  ;;  %10416 = vmatmul.f32.vlgmr.msra.gmra.mxu0 %v13052_v61  ;;  %v13098_v30 = vld.sshfl [vmem:[#allocation1 + $0x10] sm:$0xff pattern:$0x73625140] }
 0x36d   :  { %10476 = vmatmul.f32.vlgmr.msra.gmra.mxu3 %v13054_v6  ;;  %10436 = vmatmul.f32.vlgmr.msra.gmra.mxu1 %v13056_v36  ;;  %v635_v6 = vld [vmem:[#allocation5 + $0xda0] sm:$0xff]  ;;  %v13104_v36 = vld.sshfl [vmem:[#allocation1 + $0x8] sm:$0xff pattern:$0x73625140] }
 0x36e   :  { %v9158_v1 = vadd.f32 %v9157_v55, %v9138_v59  ;;  %10615 = vmatpush.xpose.msra.mxu2 %v633_v54  ;;  %10575 = vmatpush.xpose.msra.mxu0 %v631_v53  ;;  %1377 = vst [vmem:[#allocation1] ss:$4 sm:$0xff] %v188_v11  ;;  %v13112_v16 = vld.sshfl [vmem:[#allocation1 + $0x20] sm:$0xff pattern:$0x73625140]  ;;  %v653_v11 = vld [vmem:[#allocation5 + $0xe30] sm:$0xff] }
 0x36f   :  { %v9177_v3 = vpop.f32.mrf.mxu2  ;;  %10635 = vmatpush.xpose.msra.mxu3 %v634_v52  ;;  %10595 = vmatpush.xpose.msra.mxu1 %v632_v62  ;;  %v13114_v27 = vld.sshfl [vmem:[#allocation1 + $0x38] sm:$0xff pattern:$0x73625140] }
 0x370   :  { %v9178_v56 = vadd.f32 %v9177_v3, %v9158_v1  ;;  %v9197_v4 = vpop.f32.mrf.mxu3  ;;  %v191_v1 = vld [vmem:[#allocation2 + $0x398] sm:$0xff] }
 0x371   :  { %v9217_v0 = vpop.f32.mrf.mxu0 }
 0x372   :  { %v9198_v61 = vadd.f32 %v9197_v4, %v9178_v56  ;;  %v9237_v8 = vpop.f32.mrf.mxu1  ;;  %v650_v56 = vld [vmem:[#allocation5 + $0xe18] sm:$0xff]  ;;  %v648_v4 = vld [vmem:[#allocation5 + $0xe08] sm:$0xff] }
 0x374   :  { %v9218_v12 = vadd.f32 %v9217_v0, %v9198_v61  ;;  %10536 = vmatmul.f32.vlgmr.msrb.gmra.mxu2 %v13062_v44  ;;  %10496 = vmatmul.f32.vlgmr.msrb.gmra.mxu0 %v13064_v14  ;;  %v13110_v44 = vld.sshfl [vmem:[#allocation1 + $0x30] sm:$0xff pattern:$0x73625140] }
 0x375   :  { %10556 = vmatmul.f32.vlgmr.msrb.gmra.mxu3 %v13066_v23  ;;  %10516 = vmatmul.f32.vlgmr.msrb.gmra.mxu1 %v13068_v50  ;;  %v639_v23 = vld [vmem:[#allocation5 + $0xdc0] sm:$0xff]  ;;  %v13116_v50 = vld.sshfl [vmem:[#allocation1 + $0x28] sm:$0xff pattern:$0x73625140] }
 0x376   :  { %v9238_v18 = vadd.f32 %v9237_v8, %v9218_v12  ;;  %10695 = vmatpush.xpose.msrb.mxu2 %v637_v7  ;;  %10655 = vmatpush.xpose.msrb.mxu0 %v635_v6  ;;  %1378 = vst [vmem:[#allocation1 + $0x20] ss:$4 sm:$0xff] %v189_v28  ;;  %v13124_v33 = vld.sshfl [vmem:[#allocation1] sm:$0xff pattern:$0x73625140]  ;;  %v657_v28 = vld [vmem:[#allocation5 + $0xe50] sm:$0xff] }
 0x377   :  { %v9257_v20 = vpop.f32.mrf.mxu2  ;;  %10715 = vmatpush.xpose.msrb.mxu3 %v638_v5  ;;  %10675 = vmatpush.xpose.msrb.mxu1 %v636_v15  ;;  %v13126_v45 = vld.sshfl [vmem:[#allocation1 + $0x18] sm:$0xff pattern:$0x73625140] }
 0x378   :  { %v9258_v9 = vadd.f32 %v9257_v20, %v9238_v18  ;;  %v9277_v21 = vpop.f32.mrf.mxu3  ;;  %v192_v18 = vld [vmem:[#allocation2 + $0x3a0] sm:$0xff] }
 0x379   :  { %v9297_v17 = vpop.f32.mrf.mxu0 }
 0x37a   :  { %v9278_v14 = vadd.f32 %v9277_v21, %v9258_v9  ;;  %v9317_v25 = vpop.f32.mrf.mxu1  ;;  %v654_v9 = vld [vmem:[#allocation5 + $0xe38] sm:$0xff]  ;;  %v652_v21 = vld [vmem:[#allocation5 + $0xe28] sm:$0xff] }
 0x37c   :  { %v9298_v29 = vadd.f32 %v9297_v17, %v9278_v14  ;;  %10616 = vmatmul.f32.vlgmr.msra.gmra.mxu2 %v13074_v60  ;;  %10576 = vmatmul.f32.vlgmr.msra.gmra.mxu0 %v13076_v31  ;;  %v13122_v60 = vld.sshfl [vmem:[#allocation1 + $0x10] sm:$0xff pattern:$0x73625140] }
 0x37d   :  { %10636 = vmatmul.f32.vlgmr.msra.gmra.mxu3 %v13078_v40  ;;  %10596 = vmatmul.f32.vlgmr.msra.gmra.mxu1 %v13080_v2  ;;  %v643_v40 = vld [vmem:[#allocation5 + $0xde0] sm:$0xff]  ;;  %v13128_v2 = vld.sshfl [vmem:[#allocation1 + $0x8] sm:$0xff pattern:$0x73625140] }
 0x37e   :  { %v9318_v35 = vadd.f32 %v9317_v25, %v9298_v29  ;;  %10775 = vmatpush.xpose.msra.mxu2 %v641_v24  ;;  %10735 = vmatpush.xpose.msra.mxu0 %v639_v23  ;;  %1387 = vst [vmem:[#allocation1] ss:$4 sm:$0xff] %v190_v46  ;;  %v13136_v52 = vld.sshfl [vmem:[#allocation1 + $0x20] sm:$0xff pattern:$0x73625140]  ;;  %v661_v46 = vld [vmem:[#allocation5 + $0xe70] sm:$0xff] }
 0x37f   :  { %v9337_v37 = vpop.f32.mrf.mxu2  ;;  %10795 = vmatpush.xpose.msra.mxu3 %v642_v22  ;;  %10755 = vmatpush.xpose.msra.mxu1 %v640_v32  ;;  %v13138_v62 = vld.sshfl [vmem:[#allocation1 + $0x38] sm:$0xff pattern:$0x73625140] }
 0x380   :  { %v9338_v26 = vadd.f32 %v9337_v37, %v9318_v35  ;;  %v9357_v38 = vpop.f32.mrf.mxu3  ;;  %v193_v35 = vld [vmem:[#allocation2 + $0x3a8] sm:$0xff] }
 0x381   :  { %v9377_v34 = vpop.f32.mrf.mxu0 }
 0x382   :  { %v9358_v31 = vadd.f32 %v9357_v38, %v9338_v26  ;;  %v9397_v42 = vpop.f32.mrf.mxu1  ;;  %v658_v26 = vld [vmem:[#allocation5 + $0xe58] sm:$0xff]  ;;  %v656_v38 = vld [vmem:[#allocation5 + $0xe48] sm:$0xff] }
 0x384   :  { %v9378_v49 = vadd.f32 %v9377_v34, %v9358_v31  ;;  %10696 = vmatmul.f32.vlgmr.msrb.gmra.mxu2 %v13086_v13  ;;  %10656 = vmatmul.f32.vlgmr.msrb.gmra.mxu0 %v13088_v47  ;;  %v13134_v13 = vld.sshfl [vmem:[#allocation1 + $0x30] sm:$0xff pattern:$0x73625140] }
 0x385   :  { %10716 = vmatmul.f32.vlgmr.msrb.gmra.mxu3 %v13090_v57  ;;  %10676 = vmatmul.f32.vlgmr.msrb.gmra.mxu1 %v13092_v19  ;;  %v647_v57 = vld [vmem:[#allocation5 + $0xe00] sm:$0xff]  ;;  %v13140_v19 = vld.sshfl [vmem:[#allocation1 + $0x28] sm:$0xff pattern:$0x73625140] }
 0x386   :  { %v9398_v48 = vadd.f32 %v9397_v42, %v9378_v49  ;;  %10855 = vmatpush.xpose.msrb.mxu2 %v645_v41  ;;  %10815 = vmatpush.xpose.msrb.mxu0 %v643_v40  ;;  %1388 = vst [vmem:[#allocation1 + $0x20] ss:$4 sm:$0xff] %v191_v1  ;;  %v13148_v5 = vld.sshfl [vmem:[#allocation1] sm:$0xff pattern:$0x73625140]  ;;  %v665_v1 = vld [vmem:[#allocation5 + $0xe90] sm:$0xff] }
 0x387   :  { %v9417_v54 = vpop.f32.mrf.mxu2  ;;  %10875 = vmatpush.xpose.msrb.mxu3 %v646_v39  ;;  %10835 = vmatpush.xpose.msrb.mxu1 %v644_v51  ;;  %v13150_v15 = vld.sshfl [vmem:[#allocation1 + $0x18] sm:$0xff pattern:$0x73625140] }
 0x388   :  { %v9418_v43 = vadd.f32 %v9417_v54, %v9398_v48  ;;  %v9437_v55 = vpop.f32.mrf.mxu3  ;;  %v194_v48 = vld [vmem:[#allocation2 + $0x3b0] sm:$0xff] }
 0x389   :  { %v9457_v53 = vpop.f32.mrf.mxu0 }
 0x38a   :  { %v9438_v47 = vadd.f32 %v9437_v55, %v9418_v43  ;;  %v9477_v59 = vpop.f32.mrf.mxu1  ;;  %v662_v43 = vld [vmem:[#allocation5 + $0xe78] sm:$0xff]  ;;  %v660_v55 = vld [vmem:[#allocation5 + $0xe68] sm:$0xff] }
 0x38c   :  { %v9458_v3 = vadd.f32 %v9457_v53, %v9438_v47  ;;  %10776 = vmatmul.f32.vlgmr.msra.gmra.mxu2 %v13098_v30  ;;  %10736 = vmatmul.f32.vlgmr.msra.gmra.mxu0 %v13100_v63  ;;  %v13146_v30 = vld.sshfl [vmem:[#allocation1 + $0x10] sm:$0xff pattern:$0x73625140] }
 0x38d   :  { %10796 = vmatmul.f32.vlgmr.msra.gmra.mxu3 %v13102_v10  ;;  %10756 = vmatmul.f32.vlgmr.msra.gmra.mxu1 %v13104_v36  ;;  %v651_v10 = vld [vmem:[#allocation5 + $0xe20] sm:$0xff]  ;;  %v13152_v36 = vld.sshfl [vmem:[#allocation1 + $0x8] sm:$0xff pattern:$0x73625140] }
 0x38e   :  { %v9478_v0 = vadd.f32 %v9477_v59, %v9458_v3  ;;  %10935 = vmatpush.xpose.msra.mxu2 %v649_v58  ;;  %10895 = vmatpush.xpose.msra.mxu0 %v647_v57  ;;  %1397 = vst [vmem:[#allocation1] ss:$4 sm:$0xff] %v192_v18  ;;  %v13160_v22 = vld.sshfl [vmem:[#allocation1 + $0x20] sm:$0xff pattern:$0x73625140]  ;;  %v669_v18 = vld [vmem:[#allocation5 + $0xeb0] sm:$0xff] }
 0x38f   :  { %v9497_v7 = vpop.f32.mrf.mxu2  ;;  %10955 = vmatpush.xpose.msra.mxu3 %v650_v56  ;;  %10915 = vmatpush.xpose.msra.mxu1 %v648_v4  ;;  %v13162_v32 = vld.sshfl [vmem:[#allocation1 + $0x38] sm:$0xff pattern:$0x73625140] }
 0x390   :  { %v9498_v61 = vadd.f32 %v9497_v7, %v9478_v0  ;;  %v9517_v8 = vpop.f32.mrf.mxu3  ;;  %v195_v0 = vld [vmem:[#allocation2 + $0x3b8] sm:$0xff] }
 0x391   :  { %v9537_v6 = vpop.f32.mrf.mxu0 }
 0x392   :  { %v9518_v63 = vadd.f32 %v9517_v8, %v9498_v61  ;;  %v9557_v12 = vpop.f32.mrf.mxu1  ;;  %v666_v61 = vld [vmem:[#allocation5 + $0xe98] sm:$0xff]  ;;  %v664_v8 = vld [vmem:[#allocation5 + $0xe88] sm:$0xff] }
 0x394   :  { %v9538_v20 = vadd.f32 %v9537_v6, %v9518_v63  ;;  %10856 = vmatmul.f32.vlgmr.msrb.gmra.mxu2 %v13110_v44  ;;  %10816 = vmatmul.f32.vlgmr.msrb.gmra.mxu0 %v13112_v16  ;;  %v13158_v44 = vld.sshfl [vmem:[#allocation1 + $0x30] sm:$0xff pattern:$0x73625140] }
 0x395   :  { %10876 = vmatmul.f32.vlgmr.msrb.gmra.mxu3 %v13114_v27  ;;  %10836 = vmatmul.f32.vlgmr.msrb.gmra.mxu1 %v13116_v50  ;;  %v655_v27 = vld [vmem:[#allocation5 + $0xe40] sm:$0xff]  ;;  %v13164_v50 = vld.sshfl [vmem:[#allocation1 + $0x28] sm:$0xff pattern:$0x73625140] }
 0x396   :  { %v9558_v17 = vadd.f32 %v9557_v12, %v9538_v20  ;;  %11015 = vmatpush.xpose.msrb.mxu2 %v653_v11  ;;  %10975 = vmatpush.xpose.msrb.mxu0 %v651_v10  ;;  %1398 = vst [vmem:[#allocation1 + $0x20] ss:$4 sm:$0xff] %v193_v35  ;;  %v13172_v39 = vld.sshfl [vmem:[#allocation1] sm:$0xff pattern:$0x73625140]  ;;  %v673_v35 = vld [vmem:[#allocation5 + $0xed0] sm:$0xff] }
 0x397   :  { %v9577_v24 = vpop.f32.mrf.mxu2  ;;  %11035 = vmatpush.xpose.msrb.mxu3 %v654_v9  ;;  %10995 = vmatpush.xpose.msrb.mxu1 %v652_v21  ;;  %v13174_v51 = vld.sshfl [vmem:[#allocation1 + $0x18] sm:$0xff pattern:$0x73625140] }
 0x398   :  { %v9578_v14 = vadd.f32 %v9577_v24, %v9558_v17  ;;  %v9597_v25 = vpop.f32.mrf.mxu3  ;;  %v196_v17 = vld [vmem:[#allocation2 + $0x3c0] sm:$0xff] }
 0x399   :  { %v9617_v23 = vpop.f32.mrf.mxu0 }
 0x39a   :  { %v9598_v16 = vadd.f32 %v9597_v25, %v9578_v14  ;;  %v9637_v29 = vpop.f32.mrf.mxu1  ;;  %v670_v14 = vld [vmem:[#allocation5 + $0xeb8] sm:$0xff]  ;;  %v668_v25 = vld [vmem:[#allocation5 + $0xea8] sm:$0xff] }
 0x39c   :  { %v9618_v37 = vadd.f32 %v9617_v23, %v9598_v16  ;;  %10936 = vmatmul.f32.vlgmr.msra.gmra.mxu2 %v13122_v60  ;;  %10896 = vmatmul.f32.vlgmr.msra.gmra.mxu0 %v13124_v33  ;;  %v13170_v60 = vld.sshfl [vmem:[#allocation1 + $0x10] sm:$0xff pattern:$0x73625140] }
 0x39d   :  { %10956 = vmatmul.f32.vlgmr.msra.gmra.mxu3 %v13126_v45  ;;  %10916 = vmatmul.f32.vlgmr.msra.gmra.mxu1 %v13128_v2  ;;  %v659_v45 = vld [vmem:[#allocation5 + $0xe60] sm:$0xff]  ;;  %v13176_v2 = vld.sshfl [vmem:[#allocation1 + $0x8] sm:$0xff pattern:$0x73625140] }
 0x39e   :  { %v9638_v34 = vadd.f32 %v9637_v29, %v9618_v37  ;;  %11095 = vmatpush.xpose.msra.mxu2 %v657_v28  ;;  %11055 = vmatpush.xpose.msra.mxu0 %v655_v27  ;;  %1407 = vst [vmem:[#allocation1] ss:$4 sm:$0xff] %v194_v48  ;;  %v13184_v56 = vld.sshfl [vmem:[#allocation1 + $0x20] sm:$0xff pattern:$0x73625140] }
 0x39f   :  { %v9657_v41 = vpop.f32.mrf.mxu2  ;;  %11115 = vmatpush.xpose.msra.mxu3 %v658_v26  ;;  %11075 = vmatpush.xpose.msra.mxu1 %v656_v38  ;;  %v13186_v4 = vld.sshfl [vmem:[#allocation1 + $0x38] sm:$0xff pattern:$0x73625140] }
 0x3a0   :  { %v9658_v31 = vadd.f32 %v9657_v41, %v9638_v34  ;;  %v9677_v42 = vpop.f32.mrf.mxu3  ;;  %v197_v34 = vld [vmem:[#allocation2 + $0x3c8] sm:$0xff] }
 0x3a1   :  { %v9697_v40 = vpop.f32.mrf.mxu0 }
 0x3a2   :  { %v9678_v33 = vadd.f32 %v9677_v42, %v9658_v31  ;;  %v9717_v49 = vpop.f32.mrf.mxu1  ;;  %v674_v31 = vld [vmem:[#allocation5 + $0xed8] sm:$0xff]  ;;  %v672_v42 = vld [vmem:[#allocation5 + $0xec8] sm:$0xff] }
 0x3a4   :  { %v9698_v54 = vadd.f32 %v9697_v40, %v9678_v33  ;;  %11016 = vmatmul.f32.vlgmr.msrb.gmra.mxu2 %v13134_v13  ;;  %10976 = vmatmul.f32.vlgmr.msrb.gmra.mxu0 %v13136_v52  ;;  %v13182_v13 = vld.sshfl [vmem:[#allocation1 + $0x30] sm:$0xff pattern:$0x73625140] }
 0x3a5   :  { %11036 = vmatmul.f32.vlgmr.msrb.gmra.mxu3 %v13138_v62  ;;  %10996 = vmatmul.f32.vlgmr.msrb.gmra.mxu1 %v13140_v19  ;;  %v663_v62 = vld [vmem:[#allocation5 + $0xe80] sm:$0xff]  ;;  %v13188_v19 = vld.sshfl [vmem:[#allocation1 + $0x28] sm:$0xff pattern:$0x73625140] }
 0x3a6   :  { %v9718_v53 = vadd.f32 %v9717_v49, %v9698_v54  ;;  %11175 = vmatpush.xpose.msrb.mxu2 %v661_v46  ;;  %11135 = vmatpush.xpose.msrb.mxu0 %v659_v45  ;;  %1408 = vst [vmem:[#allocation1 + $0x20] ss:$4 sm:$0xff] %v195_v0  ;;  %v13196_v9 = vld.sshfl [vmem:[#allocation1] sm:$0xff pattern:$0x73625140]  ;;  %v677_v54 = vld [vmem:[#allocation5 + $0xef0] sm:$0xff] }
 0x3a7   :  { %v9737_v58 = vpop.f32.mrf.mxu2  ;;  %11195 = vmatpush.xpose.msrb.mxu3 %v662_v43  ;;  %11155 = vmatpush.xpose.msrb.mxu1 %v660_v55  ;;  %v13198_v21 = vld.sshfl [vmem:[#allocation1 + $0x18] sm:$0xff pattern:$0x73625140]  ;;  %v681_v0 = vld [vmem:[#allocation5 + $0xf10] sm:$0xff] }
 0x3a8   :  { %v9738_v47 = vadd.f32 %v9737_v58, %v9718_v53  ;;  %v9757_v59 = vpop.f32.mrf.mxu3 }
 0x3a9   :  { %v9777_v57 = vpop.f32.mrf.mxu0 }
 0x3aa   :  { %v9758_v52 = vadd.f32 %v9757_v59, %v9738_v47  ;;  %v9797_v3 = vpop.f32.mrf.mxu1 }
 0x3ac   :  { %v9778_v7 = vadd.f32 %v9777_v57, %v9758_v52  ;;  %11096 = vmatmul.f32.vlgmr.msra.gmra.mxu2 %v13146_v30  ;;  %11056 = vmatmul.f32.vlgmr.msra.gmra.mxu0 %v13148_v5  ;;  %v13194_v30 = vld.sshfl [vmem:[#allocation1 + $0x10] sm:$0xff pattern:$0x73625140]  ;;  %v198_v57 = vld [vmem:[#allocation2 + $0x3d0] sm:$0xf] }
 0x3ad   :  { %11116 = vmatmul.f32.vlgmr.msra.gmra.mxu3 %v13150_v15  ;;  %11076 = vmatmul.f32.vlgmr.msra.gmra.mxu1 %v13152_v36  ;;  %v667_v15 = vld [vmem:[#allocation5 + $0xea0] sm:$0xff]  ;;  %v13200_v36 = vld.sshfl [vmem:[#allocation1 + $0x8] sm:$0xff pattern:$0x73625140] }
 0x3ae   :  { %v9798_v6 = vadd.f32 %v9797_v3, %v9778_v7  ;;  %11255 = vmatpush.xpose.msra.mxu2 %v665_v1  ;;  %11215 = vmatpush.xpose.msra.mxu0 %v663_v62  ;;  %1417 = vst [vmem:[#allocation1] ss:$4 sm:$0xff] %v196_v17  ;;  %v13208_v26 = vld.sshfl [vmem:[#allocation1 + $0x20] sm:$0xff pattern:$0x73625140] }
 0x3af   :  { %v9817_v11 = vpop.f32.mrf.mxu2  ;;  %11275 = vmatpush.xpose.msra.mxu3 %v666_v61  ;;  %11235 = vmatpush.xpose.msra.mxu1 %v664_v8  ;;  %v13210_v38 = vld.sshfl [vmem:[#allocation1 + $0x38] sm:$0xff pattern:$0x73625140]  ;;  %v680_v61 = vld [vmem:[#allocation5 + $0xf08] sm:$0xff] }
 0x3b0   :  { %v9818_v63 = vadd.f32 %v9817_v11, %v9798_v6  ;;  %v9837_v12 = vpop.f32.mrf.mxu3 }
 0x3b1   :  { %v9857_v10 = vpop.f32.mrf.mxu0 }
 0x3b2   :  { %v9838_v5 = vadd.f32 %v9837_v12, %v9818_v63  ;;  %v9877_v20 = vpop.f32.mrf.mxu1 }
 0x3b4   :  { %v9858_v24 = vadd.f32 %v9857_v10, %v9838_v5  ;;  %11176 = vmatmul.f32.vlgmr.msrb.gmra.mxu2 %v13158_v44  ;;  %11136 = vmatmul.f32.vlgmr.msrb.gmra.mxu0 %v13160_v22  ;;  %v13206_v44 = vld.sshfl [vmem:[#allocation1 + $0x30] sm:$0xff pattern:$0x73625140]  ;;  %v683_v5 = vld [vmem:[#allocation5 + $0xf20] sm:$0xff] }
 0x3b5   :  { %11196 = vmatmul.f32.vlgmr.msrb.gmra.mxu3 %v13162_v32  ;;  %11156 = vmatmul.f32.vlgmr.msrb.gmra.mxu1 %v13164_v50  ;;  %v671_v32 = vld [vmem:[#allocation5 + $0xec0] sm:$0xff]  ;;  %v13212_v50 = vld.sshfl [vmem:[#allocation1 + $0x28] sm:$0xff pattern:$0x73625140] }
 0x3b6   :  { %v9878_v23 = vadd.f32 %v9877_v20, %v9858_v24  ;;  %11335 = vmatpush.xpose.msrb.mxu2 %v669_v18  ;;  %11295 = vmatpush.xpose.msrb.mxu0 %v667_v15  ;;  %1418 = vst [vmem:[#allocation1 + $0x20] ss:$4 sm:$0xff] %v197_v34  ;;  %v1421_v55 = vld.sshfl [vmem:[#allocation1 + $0x10] sm:$0xff pattern:$0x73625140] }
 0x3b7   :  { %v9897_v28 = vpop.f32.mrf.mxu2  ;;  %11355 = vmatpush.xpose.msrb.mxu3 %v670_v14  ;;  %11315 = vmatpush.xpose.msrb.mxu1 %v668_v25  ;;  %v1419_v53 = vld.sshfl [vmem:[#allocation1] sm:$0xff pattern:$0x73625140]  ;;  %v1422_v58 = vld.sshfl [vmem:[#allocation1 + $0x18] sm:$0xff pattern:$0x73625140] }
 0x3b8   :  { %v9898_v16 = vadd.f32 %v9897_v28, %v9878_v23  ;;  %v9917_v29 = vpop.f32.mrf.mxu3  ;;  %v1420_v59 = vld.sshfl [vmem:[#allocation1 + $0x8] sm:$0xff pattern:$0x73625140]  ;;  %v687_v28 = vld [vmem:[#allocation5 + $0xf40] sm:$0xff] }
 0x3b9   :  { %v9937_v27 = vpop.f32.mrf.mxu0  ;;  %1427 = vst [vmem:[#allocation1] ss:$4 sm:$0xff] %v198_v57 }
 0x3ba   :  { %v9918_v22 = vadd.f32 %v9917_v29, %v9898_v16  ;;  %v9957_v37 = vpop.f32.mrf.mxu1  ;;  %v688_v16 = vld [vmem:[#allocation5 + $0xf48] sm:$0xff] }
 0x3bc   :  { %v9938_v41 = vadd.f32 %v9937_v27, %v9918_v22  ;;  %11256 = vmatmul.f32.vlgmr.msra.gmra.mxu2 %v13170_v60  ;;  %11216 = vmatmul.f32.vlgmr.msra.gmra.mxu0 %v13172_v39  ;;  %v675_v39 = vld [vmem:[#allocation5 + $0xee0] sm:$0xff] }
 0x3bd   :  { %11276 = vmatmul.f32.vlgmr.msra.gmra.mxu3 %v13174_v51  ;;  %11236 = vmatmul.f32.vlgmr.msra.gmra.mxu1 %v13176_v2  ;;  %v678_v51 = vld [vmem:[#allocation5 + $0xef8] sm:$0xff]  ;;  %v676_v2 = vld [vmem:[#allocation5 + $0xee8] sm:$0xff] }
 0x3be   :  { %v9958_v40 = vadd.f32 %v9957_v37, %v9938_v41  ;;  %11415 = vmatpush.xpose.msra.mxu2 %v673_v35  ;;  %11375 = vmatpush.xpose.msra.mxu0 %v671_v32  ;;  %v1426_v34 = vld.sshfl [vmem:[#allocation1 + $0x38] sm:$0xff pattern:$0x73625140]  ;;  %v1424_v41 = vld.sshfl [vmem:[#allocation1 + $0x28] sm:$0xff pattern:$0x73625140] }
 0x3bf   :  { %v9977_v46 = vpop.f32.mrf.mxu2  ;;  %11435 = vmatpush.xpose.msra.mxu3 %v674_v31  ;;  %11395 = vmatpush.xpose.msra.mxu1 %v672_v42 }
 0x3c0   :  { %v9978_v33 = vadd.f32 %v9977_v46, %v9958_v40  ;;  %v9997_v49 = vpop.f32.mrf.mxu3 }
 0x3c1   :  { %v10017_v45 = vpop.f32.mrf.mxu0 }
 0x3c2   :  { %v9998_v48 = vadd.f32 %v9997_v49, %v9978_v33  ;;  %v10037_v60 = vpop.f32.mrf.mxu1 }
 0x3c4   :  { %v10018_v43 = vadd.f32 %v10017_v45, %v9998_v48  ;;  %11336 = vmatmul.f32.vlgmr.msrb.gmra.mxu2 %v13182_v13  ;;  %11296 = vmatmul.f32.vlgmr.msrb.gmra.mxu0 %v13184_v56  ;;  %v1428_v45 = vld.sshfl [vmem:[#allocation1] sm:$0xff pattern:$0x73625140] }
 0x3c5   :  { %11356 = vmatmul.f32.vlgmr.msrb.gmra.mxu3 %v13186_v4  ;;  %11316 = vmatmul.f32.vlgmr.msrb.gmra.mxu1 %v13188_v19  ;;  %v679_v4 = vld [vmem:[#allocation5 + $0xf00] sm:$0xff]  ;;  %v682_v19 = vld [vmem:[#allocation5 + $0xf18] sm:$0xff] }
 0x3c6   :  { %v10038_v47 = vadd.f32 %v10037_v60, %v10018_v43  ;;  %11495 = vmatpush.xpose.msrb.mxu2 %v677_v54  ;;  %11455 = vmatpush.xpose.msrb.mxu0 %v675_v39  ;;  %v1429_v54 = vld.sshfl [vmem:[#allocation1 + $0x8] sm:$0xff pattern:$0x73625140] }
 0x3c7   :  { %v10057_v1 = vpop.f32.mrf.mxu2  ;;  %11515 = vmatpush.xpose.msrb.mxu3 %v678_v51  ;;  %11475 = vmatpush.xpose.msrb.mxu1 %v676_v2 }
 0x3c8   :  { %v10058_v13 = vadd.f32 %v10057_v1, %v10038_v47  ;;  %v10077_v52 = vpop.f32.mrf.mxu3 }
 0x3c9   :  { %v10097_v3 = vpop.f32.mrf.mxu0 }
 0x3ca   :  { %v10078_v56 = vadd.f32 %v10077_v52, %v10058_v13  ;;  %v10117_v62 = vpop.f32.mrf.mxu1 }
 0x3cc   :  { %v10098_v7 = vadd.f32 %v10097_v3, %v10078_v56  ;;  %11416 = vmatmul.f32.vlgmr.msra.gmra.mxu2 %v13194_v30  ;;  %11376 = vmatmul.f32.vlgmr.msra.gmra.mxu0 %v13196_v9  ;;  %v685_v30 = vld [vmem:[#allocation5 + $0xf30] sm:$0xff]  ;;  %v686_v9 = vld [vmem:[#allocation5 + $0xf38] sm:$0xff] }
 0x3cd   :  { %11436 = vmatmul.f32.vlgmr.msra.gmra.mxu3 %v13198_v21  ;;  %11396 = vmatmul.f32.vlgmr.msra.gmra.mxu1 %v13200_v36  ;;  %v684_v21 = vld [vmem:[#allocation5 + $0xf28] sm:$0xff] }
 0x3ce   :  { %v10118_v8 = vadd.f32 %v10117_v62, %v10098_v7  ;;  %11575 = vmatpush.xpose.msra.mxu2 %v681_v0  ;;  %11535 = vmatpush.xpose.msra.mxu0 %v679_v4 }
 0x3cf   :  { %v10137_v6 = vpop.f32.mrf.mxu2  ;;  %11595 = vmatpush.xpose.msra.mxu3 %v682_v19  ;;  %11555 = vmatpush.xpose.msra.mxu1 %v680_v61 }
 0x3d0   :  { %v10138_v11 = vadd.f32 %v10137_v6, %v10118_v8  ;;  %v10157_v63 = vpop.f32.mrf.mxu3 }
 0x3d1   :  { %v10177_v12 = vpop.f32.mrf.mxu0 }
 0x3d2   :  { %v10158_v10 = vadd.f32 %v10157_v63, %v10138_v11  ;;  %v10197_v18 = vpop.f32.mrf.mxu1 }
 0x3d4   :  { %v10178_v20 = vadd.f32 %v10177_v12, %v10158_v10  ;;  %11496 = vmatmul.f32.vlgmr.msrb.gmra.mxu2 %v13206_v44  ;;  %11456 = vmatmul.f32.vlgmr.msrb.gmra.mxu0 %v13208_v26  ;;  %v1425_v26 = vld.sshfl [vmem:[#allocation1 + $0x30] sm:$0xff pattern:$0x73625140] }
 0x3d5   :  { %11516 = vmatmul.f32.vlgmr.msrb.gmra.mxu3 %v13210_v38  ;;  %11476 = vmatmul.f32.vlgmr.msrb.gmra.mxu1 %v13212_v50  ;;  %v1423_v38 = vld.sshfl [vmem:[#allocation1 + $0x20] sm:$0xff pattern:$0x73625140] }
 0x3d6   :  { %v10198_v15 = vadd.f32 %v10197_v18, %v10178_v20  ;;  %11655 = vmatpush.xpose.msrb.mxu2 %v685_v30  ;;  %11615 = vmatpush.xpose.msrb.mxu0 %v683_v5 }
 0x3d7   :  { %v10217_v36 = vpop.f32.mrf.mxu2  ;;  %11675 = vmatpush.xpose.msrb.mxu3 %v686_v9  ;;  %11635 = vmatpush.xpose.msrb.mxu1 %v684_v21 }
 0x3d8   :  { %v10218_v17 = vadd.f32 %v10217_v36, %v10198_v15  ;;  %v10237_v24 = vpop.f32.mrf.mxu3 }
 0x3d9   :  { %v10257_v14 = vpop.f32.mrf.mxu0 }
 0x3da   :  { %v10238_v25 = vadd.f32 %v10237_v24, %v10218_v17  ;;  %v10277_v23 = vpop.f32.mrf.mxu1 }
 0x3dc   :  { %v10258_v29 = vadd.f32 %v10257_v14, %v10238_v25  ;;  %11576 = vmatmul.f32.vlgmr.msra.gmra.mxu2 %v1421_v55  ;;  %11536 = vmatmul.f32.vlgmr.msra.gmra.mxu0 %v1419_v53 }
 0x3dd   :  { %11596 = vmatmul.f32.vlgmr.msra.gmra.mxu3 %v1422_v58  ;;  %11556 = vmatmul.f32.vlgmr.msra.gmra.mxu1 %v1420_v59 }
 0x3de   :  { %v10278_v27 = vadd.f32 %v10277_v23, %v10258_v29  ;;  %11695 = vmatpush.xpose.msra.mxu0 %v687_v28  ;;  %11715 = vmatpush.xpose.msra.mxu1 %v688_v16 }
 0x3df   :  { %v10297_v35 = vpop.f32.mrf.mxu2 }
 0x3e0   :  { %v10298_v44 = vadd.f32 %v10297_v35, %v10278_v27  ;;  %v10317_v22 = vpop.f32.mrf.mxu3 }
 0x3e1   :  { %v10337_v37 = vpop.f32.mrf.mxu0 }
 0x3e2   :  { %v10318_v32 = vadd.f32 %v10317_v22, %v10298_v44  ;;  %v10357_v50 = vpop.f32.mrf.mxu1 }
 0x3e4   :  { %v10338_v31 = vadd.f32 %v10337_v37, %v10318_v32  ;;  %11656 = vmatmul.f32.vlgmr.msrb.gmra.mxu2 %v1425_v26  ;;  %11616 = vmatmul.f32.vlgmr.msrb.gmra.mxu0 %v1423_v38 }
 0x3e5   :  { %11676 = vmatmul.f32.vlgmr.msrb.gmra.mxu3 %v1426_v34  ;;  %11636 = vmatmul.f32.vlgmr.msrb.gmra.mxu1 %v1424_v41 }
 0x3e6   :  { %v10358_v42 = vadd.f32 %v10357_v50, %v10338_v31 }
 0x3e7   :  { %v10377_v40 = vpop.f32.mrf.mxu2 }
 0x3e8   :  { %v10378_v46 = vadd.f32 %v10377_v40, %v10358_v42  ;;  %v10397_v33 = vpop.f32.mrf.mxu3 }
 0x3e9   :  { %v10417_v49 = vpop.f32.mrf.mxu0 }
 0x3ea   :  { %v10398_v48 = vadd.f32 %v10397_v33, %v10378_v46  ;;  %v10437_v60 = vpop.f32.mrf.mxu1 }
 0x3ec   :  { %v10418_v39 = vadd.f32 %v10417_v49, %v10398_v48  ;;  %11696 = vmatmul.f32.vlgmr.msra.gmra.mxu0 %v1428_v45 }
 0x3ed   :  { %11716 = vmatmul.f32.vlgmr.msra.gmra.mxu1 %v1429_v54 }
 0x3ee   :  { %v10438_v43 = vadd.f32 %v10437_v60, %v10418_v39 }
 0x3ef   :  { %v10457_v51 = vpop.f32.mrf.mxu2 }
 0x3f0   :  { %v10458_v2 = vadd.f32 %v10457_v51, %v10438_v43  ;;  %v10477_v55 = vpop.f32.mrf.mxu3 }
 0x3f1   :  { %v10497_v53 = vpop.f32.mrf.mxu0 }
 0x3f2   :  { %v10478_v58 = vadd.f32 %v10477_v55, %v10458_v2  ;;  %v10517_v47 = vpop.f32.mrf.mxu1 }
 0x3f4   :  { %v10498_v59 = vadd.f32 %v10497_v53, %v10478_v58 }
 0x3f6   :  { %v10518_v57 = vadd.f32 %v10517_v47, %v10498_v59 }
 0x3f7   :  { %v10537_v1 = vpop.f32.mrf.mxu2 }
 0x3f8   :  { %v10538_v13 = vadd.f32 %v10537_v1, %v10518_v57  ;;  %v10557_v52 = vpop.f32.mrf.mxu3 }
 0x3f9   :  { %v10577_v3 = vpop.f32.mrf.mxu0 }
 0x3fa   :  { %v10558_v56 = vadd.f32 %v10557_v52, %v10538_v13  ;;  %v10597_v62 = vpop.f32.mrf.mxu1 }
 0x3fc   :  { %v10578_v0 = vadd.f32 %v10577_v3, %v10558_v56 }
 0x3fe   :  { %v10598_v4 = vadd.f32 %v10597_v62, %v10578_v0 }
 0x3ff   :  { %v10617_v7 = vpop.f32.mrf.mxu2 }
 0x400   :  { %v10618_v19 = vadd.f32 %v10617_v7, %v10598_v4  ;;  %v10637_v61 = vpop.f32.mrf.mxu3 }
 0x401   :  { %v10657_v8 = vpop.f32.mrf.mxu0 }
 0x402   :  { %v10638_v6 = vadd.f32 %v10637_v61, %v10618_v19  ;;  %v10677_v11 = vpop.f32.mrf.mxu1 }
 0x404   :  { %v10658_v63 = vadd.f32 %v10657_v8, %v10638_v6 }
 0x406   :  { %v10678_v12 = vadd.f32 %v10677_v11, %v10658_v63 }
 0x407   :  { %v10697_v10 = vpop.f32.mrf.mxu2 }
 0x408   :  { %v10698_v18 = vadd.f32 %v10697_v10, %v10678_v12  ;;  %v10717_v30 = vpop.f32.mrf.mxu3 }
 0x409   :  { %v10737_v5 = vpop.f32.mrf.mxu0 }
 0x40a   :  { %v10718_v20 = vadd.f32 %v10717_v30, %v10698_v18  ;;  %v10757_v9 = vpop.f32.mrf.mxu1 }
 0x40c   :  { %v10738_v21 = vadd.f32 %v10737_v5, %v10718_v20 }
 0x40e   :  { %v10758_v15 = vadd.f32 %v10757_v9, %v10738_v21  ;;  %v11721_v21 = vld [vmem:[%s13242_s3] sm:$0xff]  ;;  %s11939_s3 = smov [#allocation10]  }
 0x40f   :  { %v10777_v36 = vpop.f32.mrf.mxu2  ;;  %11745 = vmatpush.msra.mxu2 %v11721_v21  ;;  %s11781_s11 = sshll.u32 %s11939_s3, 4  ;;  %s11782_s11 = int_to_ptr.vmem [resolvable:$true] %s11781_s11 }
 0x410   :  { %v10778_v17 = vadd.f32 %v10777_v36, %v10758_v15  ;;  %v10797_v24 = vpop.f32.mrf.mxu3 }
 0x411   :  { %v10817_v14 = vpop.f32.mrf.mxu0 }
 0x412   :  { %v10798_v25 = vadd.f32 %v10797_v24, %v10778_v17  ;;  %v10837_v23 = vpop.f32.mrf.mxu1 }
 0x414   :  { %v10818_v28 = vadd.f32 %v10817_v14, %v10798_v25 }
 0x416   :  { %v10838_v16 = vadd.f32 %v10837_v23, %v10818_v28 }
 0x417   :  { %v10857_v29 = vpop.f32.mrf.mxu2 }
 0x418   :  { %v10858_v27 = vadd.f32 %v10857_v29, %v10838_v16  ;;  %v10877_v35 = vpop.f32.mrf.mxu3 }
 0x419   :  { %v10897_v44 = vpop.f32.mrf.mxu0 }
 0x41a   :  { %v10878_v22 = vadd.f32 %v10877_v35, %v10858_v27  ;;  %v10917_v37 = vpop.f32.mrf.mxu1 }
 0x41c   :  { %v10898_v26 = vadd.f32 %v10897_v44, %v10878_v22 }
 0x41e   :  { %v10918_v38 = vadd.f32 %v10917_v37, %v10898_v26 }
 0x41f   :  { %v10937_v32 = vpop.f32.mrf.mxu2 }
 0x420   :  { %v10938_v50 = vadd.f32 %v10937_v32, %v10918_v38  ;;  %v10957_v34 = vpop.f32.mrf.mxu3 }
 0x421   :  { %v10977_v41 = vpop.f32.mrf.mxu0 }
 0x422   :  { %v10958_v31 = vadd.f32 %v10957_v34, %v10938_v50  ;;  %v10997_v42 = vpop.f32.mrf.mxu1 }
 0x424   :  { %v10978_v40 = vadd.f32 %v10977_v41, %v10958_v31 }
 0x426   :  { %v10998_v46 = vadd.f32 %v10997_v42, %v10978_v40 }
 0x427   :  { %v11017_v33 = vpop.f32.mrf.mxu2 }
 0x428   :  { %v11018_v49 = vadd.f32 %v11017_v33, %v10998_v46  ;;  %v11037_v45 = vpop.f32.mrf.mxu3 }
 0x429   :  { %v11057_v48 = vpop.f32.mrf.mxu0 }
 0x42a   :  { %v11038_v60 = vadd.f32 %v11037_v45, %v11018_v49  ;;  %v11077_v54 = vpop.f32.mrf.mxu1 }
 0x42c   :  { %v11058_v39 = vadd.f32 %v11057_v48, %v11038_v60 }
 0x42e   :  { %v11078_v43 = vadd.f32 %v11077_v54, %v11058_v39 }
 0x42f   :  { %v11097_v51 = vpop.f32.mrf.mxu2 }
 0x430   :  { %v11098_v2 = vadd.f32 %v11097_v51, %v11078_v43  ;;  %v11117_v55 = vpop.f32.mrf.mxu3 }
 0x431   :  { %v11137_v53 = vpop.f32.mrf.mxu0 }
 0x432   :  { %v11118_v58 = vadd.f32 %v11117_v55, %v11098_v2  ;;  %v11157_v47 = vpop.f32.mrf.mxu1  ;;  %v11802_v55 = vld [vmem:[#allocation8] ss:$0 sm:$0xff] }
 0x434   :  { %v11138_v59 = vadd.f32 %v11137_v53, %v11118_v58 }
 0x436   :  { %v11158_v57 = vadd.f32 %v11157_v47, %v11138_v59 }
 0x437   :  { %v11177_v1 = vpop.f32.mrf.mxu2 }
 0x438   :  { %v11178_v13 = vadd.f32 %v11177_v1, %v11158_v57  ;;  %v11197_v52 = vpop.f32.mrf.mxu3 }
 0x439   :  { %v11217_v3 = vpop.f32.mrf.mxu0 }
 0x43a   :  { %v11198_v56 = vadd.f32 %v11197_v52, %v11178_v13  ;;  %v11237_v62 = vpop.f32.mrf.mxu1 }
 0x43c   :  { %v11218_v0 = vadd.f32 %v11217_v3, %v11198_v56 }
 0x43e   :  { %v11238_v4 = vadd.f32 %v11237_v62, %v11218_v0 }
 0x43f   :  { %v11257_v7 = vpop.f32.mrf.mxu2 }
 0x440   :  { %v11258_v19 = vadd.f32 %v11257_v7, %v11238_v4  ;;  %v11277_v61 = vpop.f32.mrf.mxu3 }
 0x441   :  { %v11297_v8 = vpop.f32.mrf.mxu0 }
 0x442   :  { %v11278_v6 = vadd.f32 %v11277_v61, %v11258_v19  ;;  %v11317_v11 = vpop.f32.mrf.mxu1 }
 0x444   :  { %v11298_v63 = vadd.f32 %v11297_v8, %v11278_v6 }
 0x446   :  { %v11318_v12 = vadd.f32 %v11317_v11, %v11298_v63 }
 0x447   :  { %v11337_v10 = vpop.f32.mrf.mxu2 }
 0x448   :  { %v11338_v18 = vadd.f32 %v11337_v10, %v11318_v12  ;;  %v11357_v30 = vpop.f32.mrf.mxu3 }
 0x449   :  { %v11377_v5 = vpop.f32.mrf.mxu0 }
 0x44a   :  { %v11358_v20 = vadd.f32 %v11357_v30, %v11338_v18  ;;  %v11397_v9 = vpop.f32.mrf.mxu1 }
 0x44c   :  { %v11378_v15 = vadd.f32 %v11377_v5, %v11358_v20 }
 0x44e   :  { %v11398_v36 = vadd.f32 %v11397_v9, %v11378_v15 }
 0x44f   :  { %v11417_v17 = vpop.f32.mrf.mxu2 }
 0x450   :  { %v11418_v24 = vadd.f32 %v11417_v17, %v11398_v36  ;;  %v11437_v14 = vpop.f32.mrf.mxu3 }
 0x451   :  { %v11457_v25 = vpop.f32.mrf.mxu0 }
 0x452   :  { %v11438_v23 = vadd.f32 %v11437_v14, %v11418_v24  ;;  %v11477_v28 = vpop.f32.mrf.mxu1 }
 0x454   :  { %v11458_v16 = vadd.f32 %v11457_v25, %v11438_v23 }
 0x456   :  { %v11478_v29 = vadd.f32 %v11477_v28, %v11458_v16 }
 0x457   :  { %v11497_v27 = vpop.f32.mrf.mxu2 }
 0x458   :  { %v11498_v35 = vadd.f32 %v11497_v27, %v11478_v29  ;;  %v11517_v44 = vpop.f32.mrf.mxu3 }
 0x459   :  { %v11537_v22 = vpop.f32.mrf.mxu0 }
 0x45a   :  { %v11518_v37 = vadd.f32 %v11517_v44, %v11498_v35  ;;  %v11557_v26 = vpop.f32.mrf.mxu1 }
 0x45c   :  { %v11538_v38 = vadd.f32 %v11537_v22, %v11518_v37 }
 0x45e   :  { %v11558_v32 = vadd.f32 %v11557_v26, %v11538_v38 }
 0x45f   :  { %v11577_v50 = vpop.f32.mrf.mxu2 }
 0x460   :  { %v11578_v34 = vadd.f32 %v11577_v50, %v11558_v32  ;;  %v11597_v41 = vpop.f32.mrf.mxu3 }
 0x461   :  { %v11617_v31 = vpop.f32.mrf.mxu0 }
 0x462   :  { %v11598_v42 = vadd.f32 %v11597_v41, %v11578_v34  ;;  %v11637_v40 = vpop.f32.mrf.mxu1 }
 0x464   :  { %v11618_v46 = vadd.f32 %v11617_v31, %v11598_v42 }
 0x466   :  { %v11638_v33 = vadd.f32 %v11637_v40, %v11618_v46 }
 0x467   :  { %v11657_v49 = vpop.f32.mrf.mxu2 }
 0x468   :  { %v11658_v45 = vadd.f32 %v11657_v49, %v11638_v33  ;;  %v11677_v48 = vpop.f32.mrf.mxu3 }
 0x469   :  { %v11697_v60 = vpop.f32.mrf.mxu0 }
 0x46a   :  { %v11678_v54 = vadd.f32 %v11677_v48, %v11658_v45  ;;  %v11717_v39 = vpop.f32.mrf.mxu1 }
 0x46c   :  { %v11698_v43 = vadd.f32 %v11697_v60, %v11678_v54 }
 0x46e   :  { %v11718_v51 = vadd.f32 %v11717_v39, %v11698_v43 }
 0x470   :  { %v11720_v2 = vmax.f32 %v11718_v51, 0.0 }
 0x472   :  { %11795 = vmatmul.msk.f32.vlgmr.msra.gmra.mxu2 %vm11726_vm0, %v11720_v2 }
 0x4f5   :  { %v11747_v53 = vpop.f32.mrf.mxu2 }
 0x4f6   :  { %v11748_v58 = vadd.f32 %v11802_v55, %v11747_v53 }
 0x4f8   :  { %v11751_v47 = vsel %vm11750_vm1, %v11748_v58, -inf }
 0x4f9   :  { %11752 = vmax.xlane.f32.xlu0 %v11751_v47 }
 0x56c   :  { %v11753_v59 = vpop.xlane.xlu0 %11752 }
 0x56d   :  { %v11754_v57 = vsub.f32 %v11748_v58, %v11753_v59 }
 0x56f   :  { %v11755_v1 = vmul.f32 1.442695, %v11754_v57 }
 0x571   :  { %11803 = vpow2.f32 %v11755_v1 }
 0x577   :  { %v11804_v13 = vpop.eup %11803 }
 0x578   :  { %v11757_v52 = vsel %vm11750_vm1, %v11804_v13, 0.0 }
 0x579   :  { %11758 = vadd.xlane.f32.xlu0 %v11757_v52 }
 0x5ec   :  { %v11759_v3 = vpop.xlane.xlu0 %11758 }
 0x5ed   :  { %11805 = vrcp.f32 %v11759_v3  ;;  %v11771_v4 = vand.u32 2147483648, %v11759_v3  ;;  %v11769_v19 = vand.u32 2147483647, %v11759_v3  ;;  %vm11765_vm3 = vweird.f32 %v11759_v3 }
 0x5ef   :  { %v11772_v8 = vor.u32 1.1754944e-38, %v11771_v4  ;;  %vm11770_vm5 = vcmp.eq.f32.partialorder %v11769_v19, 8.507059e+37 }
 0x5f3   :  { %v11806_v56 = vpop.eup %11805 }
 0x5f4   :  { %v11761_v62 = vmul.f32 %v11806_v56, %v11759_v3  ;;  %vm11766_vm2 = vweird.f32 %v11806_v56 }
 0x5f5   :  { %vm11767_vm4 = vmor %vm11765_vm3, %vm11766_vm2 }
 0x5f6   :  { %v11762_v0 = vsub.f32 1.0, %v11761_v62 }
 0x5f8   :  { %v11763_v7 = vmul.f32 %v11806_v56, %v11762_v0 }
 0x5fa   :  { %v11764_v61 = vadd.f32 %v11806_v56, %v11763_v7 }
 0x5fc   :  { %v11768_v6 = vsel %vm11767_vm4, %v11806_v56, %v11764_v61 }
 0x5fd   :  { %v11773_v11 = vsel %vm11770_vm5, %v11772_v8, %v11768_v6 }
 0x5fe   :  { %v11774_v63 = vmul.f32 %v11804_v13, %v11773_v11 }
 0x600   :  { %11775 = vst.msk [vmem:[#allocation10] sm:$0x3] %vm11750_vm1, %v11774_v63 }
 0x601   :  { %11786 = dma.vmem_to_hbm [thread:$0]  %s11782_s11, 32, %s11784_s14, [#allocation4]  }
 0x602   :  { %11933 = dma.done.wait [#allocation4], 32  }
 0x603   :  { %11934 = vsyncadd [#allocation4], 4294967264 }
 0x604   :  { %11791 = vsyncpa [#allocation3], 1 }
 0x605   :  { %11792 = vsyncpa [#allocation6], 1 }
 0x606   :  { %11793 = vsyncpa [#allocation9], 1 }
 0x607   :  { %11794 = vsyncpa [#allocation4], 1 }

</bundles_post_ra>
